<compile_context>
chip_gen: v7x
topology: tpu7x:2x2x1
jax: 0.10.0
libtpu: 0.0.40
codegen_flags: <defaults>
</compile_context>

<pallas_src>
import functools

import numpy as np
import jax
import jax.numpy as jnp
from jax.experimental import pallas as pl
from jax.experimental.pallas import tpu as pltpu


def _round_up(x, m):
    return (x + m - 1) // m * m


# name, h_in, h_out, stride, pad, transposed, cin, cout, in_oh_major, out_oh_major,
# in_cols_pad, out_cols_pad, bn (None | (msum_name, OW, C))
_CONV_CFGS = (
    ("c1", 28, 14, 2, 1, False, 1,  8,  False, False, None, None, None),
    ("c2", 14, 7,  2, 1, False, 8,  16, False, False, None, None, ("m2", 7, 16)),
    ("c3", 7,  3,  2, 0, False, 16, 32, False, True,  None, 128,  None),
    ("c4", 3,  7,  2, 0, True,  32, 16, True,  False, 128,  None, ("m4", 7, 16)),
    ("c5", 7,  14, 2, 1, True,  16, 8,  False, False, None, None, ("m5", 14, 8)),
    ("c6", 14, 28, 2, 1, True,  8,  1,  False, False, None, None, None),
)

_NAME2PARAM = {"c1": "e_conv1", "c2": "e_conv2", "c3": "e_conv3",
               "c4": "d_ct1", "c5": "d_ct2", "c6": "d_ct3"}


def _sel_matrix(n_out, n_in, stride, pad, tap, transposed, k=3):
    """M[o, h] = 1 iff input index h feeds output o at kernel offset `tap`."""
    m = np.zeros((n_out, n_in), np.float32)
    for o in range(n_out):
        if transposed:
            num = o + tap - (k - 1 - pad)        # dilate-by-stride + pad folded in
            if num < 0 or num % stride:
                continue
            h = num // stride
        else:
            h = stride * o + tap - pad
        if 0 <= h < n_in:
            m[o, h] = 1.0
    return m


def _build_layout(batch, latent):
    """Static (pure-Python) row layout of the two constant slabs + per-conv geometry."""
    s16, s32 = {}, {}
    rows = {"s16": 0, "s32": 0}

    def res(which, name, nrows, ncols, align):
        off = _round_up(rows[which], align)
        (s16 if which == "s16" else s32)[name] = (off, nrows, ncols)
        rows[which] = off + nrows

    convs = {}
    for (name, h_in, h_out, stride, pad, tr, cin, cout,
         in_oh, out_oh, in_pad, out_pad, bn) in _CONV_CFGS:
        K = in_pad if in_pad is not None else h_in * cin          # input lane count
        outc = out_pad if out_pad is not None else h_out * cout   # output lane count
        M = batch * h_out
        P = _round_up(M, 16)                                      # per-tap row block
        Kp = _round_up(K, 16)                                     # per-tap N row block
        convs[name] = dict(P=P, M=M, K=K, Kp=Kp, outc=outc, bn=bn)
        res("s16", name + "_r", 3 * P, batch * h_in, 16)
        res("s16", name + "_n", 3 * Kp, outc, 16)
        res("s32", name + "_b", 1, outc, 8)
        if bn is not None:
            msum_name, ow, c = bn
            res("s32", msum_name, ow * c, c, 8)

    res("s16", "w1cat", 3 * 128, 128, 16)
    res("s16", "wms", 128, 2 * latent, 16)
    res("s16", "wd1", latent, 128, 16)
    res("s32", "b1", 1, 128, 8)
    res("s32", "bms", 1, 2 * latent, 8)
    res("s32", "bd1", 1, 128, 8)
    res("s32", "b2blk", 3, 128, 8)

    return dict(s16=s16, s32=s32, convs=convs,
                rows16=_round_up(rows["s16"], 16),
                rows32=_round_up(rows["s32"], 8))


# ----------------------------------------------------------------------------
# The fused Pallas kernel
# ----------------------------------------------------------------------------
def _vae_kernel(x_ref, eps_ref, s16_ref, w2w_ref, s32_ref, out_ref,
                *, meta, batch, latent):
    convs = meta["convs"]

    def g16(name):
        off, r, c = meta["s16"][name]
        return s16_ref[off:off + r, :c]

    def g32(name):
        off, r, c = meta["s32"][name]
        return s32_ref[off:off + r, :c]

    def mmf(a, b):
        # bf16 MXU inputs, f32 accumulation (stats dots stay f32 x f32).
        return jnp.dot(a, b, preferred_element_type=jnp.float32)

    def bcast_channels(v, reps):
        # (1, C) -> (1, reps*C) by lane concatenation (avoids reshape-based tiling).
        return jnp.concatenate([v] * reps, axis=1)

    def batchnorm(y, msum_name, ow, count):
        # Training-mode BatchNorm2d (gamma=1, beta=0), centered two-pass variance.
        msum = g32(msum_name)                                          # (OW*C, C) f32
        inv_n = 1.0 / float(count)
        rs = jnp.sum(y, axis=0, keepdims=True)                         # (1, OW*C)
        mean_c = jnp.dot(rs, msum, preferred_element_type=jnp.float32) * inv_n
        d = y - bcast_channels(mean_c, ow)
        ss = jnp.sum(d * d, axis=0, keepdims=True)
        var_c = jnp.dot(ss, msum, preferred_element_type=jnp.float32) * inv_n
        scale_c = jax.lax.rsqrt(var_c + 1e-5)
        return d * bcast_channels(scale_c, ow)

    def conv(name, x_bf16, act):
        """3x3 (transposed) conv in (B*H, W*Cin) layout: 1 + 3 MXU matmuls."""
        g = convs[name]
        P, M, K, Kp, outc = g["P"], g["M"], g["K"], g["Kp"], g["outc"]
        # Stage 1: all 3 kernel-row taps in one matmul (row selection folded into Rcat).
        t = mmf(g16(name + "_r"), x_bf16).astype(jnp.bfloat16)        # (3P, K), exact copies
        n_off = meta["s16"][name + "_n"][0]
        acc = None
        for i in range(3):                                            # Stage 2: 3 matmuls
            n_i = s16_ref[n_off + i * Kp: n_off + i * Kp + K, :outc]
            yi = mmf(t[i * P: i * P + M, :], n_i)
            acc = yi if acc is None else acc + yi
        y = acc + g32(name + "_b")
        if g["bn"] is not None:
            msum_name, ow, _c = g["bn"]
            y = batchnorm(y, msum_name, ow, M * ow)
        if act == "relu":
            y = jnp.maximum(y, 0.0)
        else:
            y = jax.nn.sigmoid(y)
        return y                                                      # f32

    # ---------------- ConvEncoder ----------------
    xb = x_ref[...].astype(jnp.bfloat16)                              # (B*28, 28)
    y1 = conv("c1", xb, "relu")                                       # (B*14, 112)
    y2 = conv("c2", y1.astype(jnp.bfloat16), "relu")                  # (B*7, 112)  conv+BN+ReLU
    y3 = conv("c3", y2.astype(jnp.bfloat16), "relu")                  # (3B, 128), rows oh*B+b

    # NCHW flatten: lane-concatenate the three 128-aligned oh row-blocks -> one matmul.
    y3b = y3.astype(jnp.bfloat16)
    y3w = jnp.concatenate([y3b[0 * batch:1 * batch],
                           y3b[1 * batch:2 * batch],
                           y3b[2 * batch:3 * batch]], axis=1)         # (B, 384)
    h = jnp.maximum(mmf(y3w, g16("w1cat")) + g32("b1"), 0.0)          # (B, 128)

    ms = mmf(h.astype(jnp.bfloat16), g16("wms")) + g32("bms")         # (B, 2L) = [mu | logsig]
    mu = ms[:, :latent]
    sigma = jnp.exp(ms[:, latent:2 * latent])
    z = mu + sigma * eps_ref[...]                                     # reparameterization
    # TODO(synk): ConvEncoder also stores self.kl as a side attribute; it is not part
    #             of mConvVAE.forward's return value, so it is not computed here.

    # ---------------- ConvDecoder ----------------
    d1 = jnp.maximum(mmf(z.astype(jnp.bfloat16), g16("wd1")) + g32("bd1"), 0.0)   # (B, 128)
    u = mmf(d1.astype(jnp.bfloat16), w2w_ref[...])                    # (B, 384), one wide matmul
    b2 = g32("b2blk")                                                 # (3, 128)
    x0 = jnp.concatenate(
        [jnp.maximum(u[:, oh * 128:(oh + 1) * 128] + b2[oh:oh + 1, :], 0.0)
         for oh in range(3)], axis=0).astype(jnp.bfloat16)            # (3B, 128), rows oh*B+b

    y4 = conv("c4", x0, "relu")                                       # (B*7, 112)  ct1+BN+ReLU
    y5 = conv("c5", y4.astype(jnp.bfloat16), "relu")                  # (B*14, 112) ct2+BN+ReLU
    y6 = conv("c6", y5.astype(jnp.bfloat16), "sigmoid")               # (B*28, 28)  ct3+sigmoid
    out_ref[...] = y6


# ----------------------------------------------------------------------------
# Parameters (deterministic synthetic init) + one-time slab packing
# ----------------------------------------------------------------------------
def init_params(key, latent_dims=4):
    def nrm(k, shape, scale):
        return scale * jax.random.normal(k, shape, dtype=jnp.float32)

    keys = jax.random.split(key, 24)
    p = {}
    # ConvEncoder
    p["e_conv1_w"] = nrm(keys[0], (3, 3, 1, 8), 0.2);    p["e_conv1_b"] = nrm(keys[1], (8,), 0.02)
    p["e_conv2_w"] = nrm(keys[2], (3, 3, 8, 16), 0.1);   p["e_conv2_b"] = nrm(keys[3], (16,), 0.02)
    p["e_conv3_w"] = nrm(keys[4], (3, 3, 16, 32), 0.08); p["e_conv3_b"] = nrm(keys[5], (32,), 0.02)
    p["e_lin1_w"] = nrm(keys[6], (288, 128), 0.05);      p["e_lin1_b"] = nrm(keys[7], (128,), 0.02)
    p["e_mu_w"] = nrm(keys[8], (128, latent_dims), 0.05);  p["e_mu_b"] = nrm(keys[9], (latent_dims,), 0.02)
    p["e_sig_w"] = nrm(keys[10], (128, latent_dims), 0.05); p["e_sig_b"] = nrm(keys[11], (latent_dims,), 0.02)
    # ConvDecoder
    p["d_lin1_w"] = nrm(keys[12], (latent_dims, 128), 0.1); p["d_lin1_b"] = nrm(keys[13], (128,), 0.02)
    p["d_lin2_w"] = nrm(keys[14], (128, 288), 0.05);        p["d_lin2_b"] = nrm(keys[15], (288,), 0.02)
    # TODO(synk): ConvTranspose weights are stored directly as the equivalent-conv kernel
    #             in (kh, kw, Cin, Cout) layout; loading real PyTorch ConvTranspose2d
    #             checkpoints would additionally need a spatial flip + channel transpose.
    p["d_ct1_w"] = nrm(keys[16], (3, 3, 32, 16), 0.08);     p["d_ct1_b"] = nrm(keys[17], (16,), 0.02)
    p["d_ct2_w"] = nrm(keys[18], (3, 3, 16, 8), 0.1);       p["d_ct2_b"] = nrm(keys[19], (8,), 0.02)
    p["d_ct3_w"] = nrm(keys[20], (3, 3, 8, 1), 0.15);       p["d_ct3_b"] = nrm(keys[21], (1,), 0.02)
    return p


def preprocess_params(params, batch, latent_dims):
    """One-time weight pre-packing into two constant slabs (outside the hot path)."""
    lay = _build_layout(batch, latent_dims)
    s16 = np.zeros((lay["rows16"], 128), np.float32)
    s32 = np.zeros((lay["rows32"], 128), np.float32)

    def put(slab, table, name, mat):
        off, r, c = table[name]
        assert mat.shape == (r, c), (name, mat.shape, (r, c))
        slab[off:off + r, :c] = mat

    put16 = functools.partial(put, s16, lay["s16"])
    put32 = functools.partial(put, s32, lay["s32"])

    for (name, h_in, h_out, stride, pad, tr, cin, cout,
         in_oh, out_oh, in_pad, out_pad, bn) in _CONV_CFGS:
        g = lay["convs"][name]
        w = np.asarray(params[_NAME2PARAM[name] + "_w"], np.float32)   # (3, 3, Cin, Cout)
        b = np.asarray(params[_NAME2PARAM[name] + "_b"], np.float32)   # (Cout,)
        nat_out = h_out * cout

        # Rcat: 3 row-selection taps stacked vertically, each padded to P (16-aligned).
        rcat = np.zeros((3 * g["P"], batch * h_in), np.float32)
        for tap in range(3):
            r = _sel_matrix(h_out, h_in, stride, pad, tap, tr)
            for bb in range(batch):
                for o in range(h_out):
                    row = tap * g["P"] + (o * batch + bb if out_oh else bb * h_out + o)
                    for h in range(h_in):
                        if r[o, h]:
                            col = h * batch + bb if in_oh else bb * h_in + h
                            rcat[row, col] = 1.0
        put16(name + "_r", rcat)

        # Ncat: per-tap column-selection + channel contraction, stacked vertically.
        ncat = np.zeros((3 * g["Kp"], g["outc"]), np.float32)
        for i in range(3):
            n_i = np.zeros((h_in * cin, nat_out), np.float32)
            for j in range(3):
                s_j = _sel_matrix(h_out, h_in, stride, pad, j, tr)     # (OW, W)
                n_i += np.einsum("ow,cd->wcod", s_j, w[i, j]).reshape(h_in * cin, nat_out)
            ncat[i * g["Kp"]:i * g["Kp"] + h_in * cin, :nat_out] = n_i
        put16(name + "_n", ncat)

        brow = np.zeros((1, g["outc"]), np.float32)
        brow[0, :nat_out] = np.tile(b, h_out)
        put32(name + "_b", brow)

        if bn is not None:
            msum_name, ow, c = bn
            idx = np.arange(ow * c) % c
            put32(msum_name, (idx[:, None] == np.arange(c)[None, :]).astype(np.float32))

    # Encoder linear1: fold PyTorch NCHW-flatten order (c*9 + oh*3 + ow) into one
    # (3*128, 128) weight whose oh blocks match the 128-aligned lane-concat of y3.
    w1 = np.asarray(params["e_lin1_w"], np.float32)
    w1cat = np.zeros((3 * 128, 128), np.float32)
    for oh in range(3):
        for ow in range(3):
            for ci in range(32):
                w1cat[oh * 128 + ow * 32 + ci, :] = w1[ci * 9 + oh * 3 + ow, :]
    put16("w1cat", w1cat)
    put32("b1", np.asarray(params["e_lin1_b"], np.float32).reshape(1, 128))

    wms = np.concatenate([np.asarray(params["e_mu_w"], np.float32),
                          np.asarray(params["e_sig_w"], np.float32)], axis=1)
    put16("wms", wms)
    put32("bms", np.concatenate([np.asarray(params["e_mu_b"], np.float32),
                                 np.asarray(params["e_sig_b"], np.float32)]).reshape(1, -1))

    put16("wd1", np.asarray(params["d_lin1_w"], np.float32))
    put32("bd1", np.asarray(params["d_lin1_b"], np.float32).reshape(1, 128))

    # Decoder linear2 as one wide (128, 3*128) matrix (its own input; wider than the
    # 128-lane slab).  nn.Unflatten's NCHW order folded into the column permutation.
    w2 = np.asarray(params["d_lin2_w"], np.float32)   # (128, 288)
    b2 = np.asarray(params["d_lin2_b"], np.float32)   # (288,)
    w2wide = np.zeros((128, 3 * 128), np.float32)
    b2blk = np.zeros((3, 128), np.float32)
    for oh in range(3):
        for ow in range(3):
            for ci in range(32):
                src = ci * 9 + oh * 3 + ow
                w2wide[:, oh * 128 + ow * 32 + ci] = w2[:, src]
                b2blk[oh, ow * 32 + ci] = b2[src]
    put32("b2blk", b2blk)

    return {"slab16": jnp.asarray(s16, dtype=jnp.bfloat16),
            "slab32": jnp.asarray(s32, dtype=jnp.float32),
            "w2wide": jnp.asarray(w2wide, dtype=jnp.bfloat16)}


# ----------------------------------------------------------------------------
# Forward: reshape -> single fused pallas_call -> reshape
# ----------------------------------------------------------------------------
def mconv_vae_forward(prep, x_nchw, eps):
    """x: (B, 1, 28, 28) NCHW.  Returns (B, 1, 28, 28), sigmoid-activated."""
    b = x_nchw.shape[0]
    latent = eps.shape[1]
    meta = _build_layout(b, latent)                          # pure-Python, trace-time
    x2 = x_nchw.reshape(b * 28, 28).astype(jnp.float32)      # Cin=1 -> pure reshape
    kernel = functools.partial(_vae_kernel, meta=meta, batch=b, latent=latent)
    out2 = pl.pallas_call(
        kernel,
        out_shape=jax.ShapeDtypeStruct((b * 28, 28), jnp.float32),
        compiler_params=pltpu.CompilerParams(vmem_limit_bytes=32 * 1024 * 1024),
    )(x2, eps.astype(jnp.float32), prep["slab16"], prep["w2wide"], prep["slab32"])
    return out2.reshape(b, 1, 28, 28)


if __name__ == "__main__":
    key = jax.random.PRNGKey(0)
    k_params, k_x, k_eps = jax.random.split(key, 3)

    latent_dims = 4
    batch = 2
    params = init_params(k_params, latent_dims=latent_dims)
    prep = preprocess_params(params, batch, latent_dims)                      # one-time pre-pack

    x = jax.random.uniform(k_x, (batch, 1, 28, 28), dtype=jnp.float32)        # MNIST-sized input
    eps = jax.random.normal(k_eps, (batch, latent_dims), dtype=jnp.float32)   # N(0,1) sample

    fwd = jax.jit(mconv_vae_forward)
    out = jax.block_until_ready(fwd(prep, x, eps))

    assert out.shape == (batch, 1, 28, 28), out.shape
    assert out.dtype == jnp.float32
    assert bool(jnp.all(jnp.isfinite(out)))
    assert bool(jnp.all((out >= 0.0) & (out <= 1.0)))  # sigmoid output
    print("KERNEL_OK")
</pallas_src>

<mosaic_0001>
module attributes {stable_mosaic.version = 11 : i64} {
  func.func @_vae_kernel(%arg0: memref<56x28xf32, #tpu.memory_space<vmem>>, %arg1: memref<2x4xf32, #tpu.memory_space<vmem>>, %arg2: memref<2880x128xbf16, #tpu.memory_space<vmem>>, %arg3: memref<128x384xbf16, #tpu.memory_space<vmem>>, %arg4: memref<416x128xf32, #tpu.memory_space<vmem>>, %arg5: memref<56x28xf32, #tpu.memory_space<vmem>>) attributes {dimension_semantics = [], scalar_prefetch = 0 : i64, scratch_operands = 0 : i64, tpu.core_type = #tpu.core_type<tc>} {
    %c0 = arith.constant 0 : index
    %c0_0 = arith.constant 0 : index
    %0 = vector.load %arg0[%c0, %c0_0] : memref<56x28xf32, #tpu.memory_space<vmem>>, vector<56x28xf32>
    %1 = arith.truncf %0 : vector<56x28xf32> to vector<56x28xbf16>
    %c0_1 = arith.constant 0 : index
    %c0_2 = arith.constant 0 : index
    %2 = vector.load %arg2[%c0_1, %c0_2] : memref<2880x128xbf16, #tpu.memory_space<vmem>>, vector<96x56xbf16>
    %cst = arith.constant dense<0.000000e+00> : vector<96x28xf32>
    %3 = tpu.matmul %2, %1, %cst {dimension_numbers = #tpu.dot_dimension_numbers<[1], [0], [0], [1], [0, 0, 1, 1], [], []>} : vector<96x56xbf16>, vector<56x28xbf16>, vector<96x28xf32> -> vector<96x28xf32>
    %4 = arith.truncf %3 : vector<96x28xf32> to vector<96x28xbf16>
    %c96 = arith.constant 96 : index
    %c0_3 = arith.constant 0 : index
    %5 = vector.load %arg2[%c96, %c0_3] : memref<2880x128xbf16, #tpu.memory_space<vmem>>, vector<28x112xbf16>
    %6 = vector.extract_strided_slice %4 {offsets = [0, 0], sizes = [28, 28], strides = [1, 1]} : vector<96x28xbf16> to vector<28x28xbf16>
    %cst_4 = arith.constant dense<0.000000e+00> : vector<28x112xf32>
    %7 = tpu.matmul %6, %5, %cst_4 {dimension_numbers = #tpu.dot_dimension_numbers<[1], [0], [0], [1], [0, 0, 1, 1], [], []>} : vector<28x28xbf16>, vector<28x112xbf16>, vector<28x112xf32> -> vector<28x112xf32>
    %c128 = arith.constant 128 : index
    %c0_5 = arith.constant 0 : index
    %8 = vector.load %arg2[%c128, %c0_5] : memref<2880x128xbf16, #tpu.memory_space<vmem>>, vector<28x112xbf16>
    %9 = vector.extract_strided_slice %4 {offsets = [32, 0], sizes = [28, 28], strides = [1, 1]} : vector<96x28xbf16> to vector<28x28xbf16>
    %cst_6 = arith.constant dense<0.000000e+00> : vector<28x112xf32>
    %10 = tpu.matmul %9, %8, %cst_6 {dimension_numbers = #tpu.dot_dimension_numbers<[1], [0], [0], [1], [0, 0, 1, 1], [], []>} : vector<28x28xbf16>, vector<28x112xbf16>, vector<28x112xf32> -> vector<28x112xf32>
    %11 = arith.addf %7, %10 : vector<28x112xf32>
    %c160 = arith.constant 160 : index
    %c0_7 = arith.constant 0 : index
    %12 = vector.load %arg2[%c160, %c0_7] : memref<2880x128xbf16, #tpu.memory_space<vmem>>, vector<28x112xbf16>
    %13 = vector.extract_strided_slice %4 {offsets = [64, 0], sizes = [28, 28], strides = [1, 1]} : vector<96x28xbf16> to vector<28x28xbf16>
    %cst_8 = arith.constant dense<0.000000e+00> : vector<28x112xf32>
    %14 = tpu.matmul %13, %12, %cst_8 {dimension_numbers = #tpu.dot_dimension_numbers<[1], [0], [0], [1], [0, 0, 1, 1], [], []>} : vector<28x28xbf16>, vector<28x112xbf16>, vector<28x112xf32> -> vector<28x112xf32>
    %15 = arith.addf %11, %14 : vector<28x112xf32>
    %c0_9 = arith.constant 0 : index
    %c0_10 = arith.constant 0 : index
    %16 = vector.load %arg4[%c0_9, %c0_10] : memref<416x128xf32, #tpu.memory_space<vmem>>, vector<1x112xf32>
    %17 = vector.broadcast %16 : vector<1x112xf32> to vector<28x112xf32>
    %18 = arith.addf %15, %17 : vector<28x112xf32>
    %cst_11 = arith.constant 0.000000e+00 : f32
    %19 = vector.broadcast %cst_11 : f32 to vector<28x112xf32>
    %20 = arith.maximumf %18, %19 : vector<28x112xf32>
    %21 = arith.truncf %20 : vector<28x112xf32> to vector<28x112xbf16>
    %c192 = arith.constant 192 : index
    %c0_12 = arith.constant 0 : index
    %22 = vector.load %arg2[%c192, %c0_12] : memref<2880x128xbf16, #tpu.memory_space<vmem>>, vector<48x28xbf16>
    %cst_13 = arith.constant dense<0.000000e+00> : vector<48x112xf32>
    %23 = tpu.matmul %22, %21, %cst_13 {dimension_numbers = #tpu.dot_dimension_numbers<[1], [0], [0], [1], [0, 0, 1, 1], [], []>} : vector<48x28xbf16>, vector<28x112xbf16>, vector<48x112xf32> -> vector<48x112xf32>
    %24 = arith.truncf %23 : vector<48x112xf32> to vector<48x112xbf16>
    %c240 = arith.constant 240 : index
    %c0_14 = arith.constant 0 : index
    %25 = vector.load %arg2[%c240, %c0_14] : memref<2880x128xbf16, #tpu.memory_space<vmem>>, vector<112x112xbf16>
    %26 = vector.extract_strided_slice %24 {offsets = [0, 0], sizes = [14, 112], strides = [1, 1]} : vector<48x112xbf16> to vector<14x112xbf16>
    %cst_15 = arith.constant dense<0.000000e+00> : vector<14x112xf32>
    %27 = tpu.matmul %26, %25, %cst_15 {dimension_numbers = #tpu.dot_dimension_numbers<[1], [0], [0], [1], [0, 0, 1, 1], [], []>} : vector<14x112xbf16>, vector<112x112xbf16>, vector<14x112xf32> -> vector<14x112xf32>
    %c352 = arith.constant 352 : index
    %c0_16 = arith.constant 0 : index
    %28 = vector.load %arg2[%c352, %c0_16] : memref<2880x128xbf16, #tpu.memory_space<vmem>>, vector<112x112xbf16>
    %29 = vector.extract_strided_slice %24 {offsets = [16, 0], sizes = [14, 112], strides = [1, 1]} : vector<48x112xbf16> to vector<14x112xbf16>
    %cst_17 = arith.constant dense<0.000000e+00> : vector<14x112xf32>
    %30 = tpu.matmul %29, %28, %cst_17 {dimension_numbers = #tpu.dot_dimension_numbers<[1], [0], [0], [1], [0, 0, 1, 1], [], []>} : vector<14x112xbf16>, vector<112x112xbf16>, vector<14x112xf32> -> vector<14x112xf32>
    %31 = arith.addf %27, %30 : vector<14x112xf32>
    %c464 = arith.constant 464 : index
    %c0_18 = arith.constant 0 : index
    %32 = vector.load %arg2[%c464, %c0_18] : memref<2880x128xbf16, #tpu.memory_space<vmem>>, vector<112x112xbf16>
    %33 = vector.extract_strided_slice %24 {offsets = [32, 0], sizes = [14, 112], strides = [1, 1]} : vector<48x112xbf16> to vector<14x112xbf16>
    %cst_19 = arith.constant dense<0.000000e+00> : vector<14x112xf32>
    %34 = tpu.matmul %33, %32, %cst_19 {dimension_numbers = #tpu.dot_dimension_numbers<[1], [0], [0], [1], [0, 0, 1, 1], [], []>} : vector<14x112xbf16>, vector<112x112xbf16>, vector<14x112xf32> -> vector<14x112xf32>
    %35 = arith.addf %31, %34 : vector<14x112xf32>
    %c8 = arith.constant 8 : index
    %c0_20 = arith.constant 0 : index
    %36 = vector.load %arg4[%c8, %c0_20] : memref<416x128xf32, #tpu.memory_space<vmem>>, vector<1x112xf32>
    %37 = vector.broadcast %36 : vector<1x112xf32> to vector<14x112xf32>
    %38 = arith.addf %35, %37 : vector<14x112xf32>
    %c16 = arith.constant 16 : index
    %c0_21 = arith.constant 0 : index
    %39 = vector.load %arg4[%c16, %c0_21] : memref<416x128xf32, #tpu.memory_space<vmem>>, vector<112x16xf32>
    %cst_22 = arith.constant dense<0.000000e+00> : vector<112xf32>
    %40 = vector.multi_reduction <add>, %38, %cst_22 [0] : vector<14x112xf32> to vector<112xf32>
    %41 = vector.shape_cast %40 : vector<112xf32> to vector<1x112xf32>
    %cst_23 = arith.constant dense<0.000000e+00> : vector<1x16xf32>
    %42 = tpu.matmul %41, %39, %cst_23 {dimension_numbers = #tpu.dot_dimension_numbers<[1], [0], [0], [1], [0, 0, 1, 1], [], []>} : vector<1x112xf32>, vector<112x16xf32>, vector<1x16xf32> -> vector<1x16xf32>
    %cst_24 = arith.constant 0.0102040814 : f32
    %43 = vector.broadcast %cst_24 : f32 to vector<1x16xf32>
    %44 = arith.mulf %42, %43 : vector<1x16xf32>
    %45 = tpu.concatenate %44, %44, %44, %44, %44, %44, %44 in 1 : vector<1x16xf32>, vector<1x16xf32>, vector<1x16xf32>, vector<1x16xf32>, vector<1x16xf32>, vector<1x16xf32>, vector<1x16xf32> -> vector<1x112xf32>
    %46 = vector.broadcast %45 : vector<1x112xf32> to vector<14x112xf32>
    %47 = arith.subf %38, %46 : vector<14x112xf32>
    %48 = arith.mulf %47, %47 : vector<14x112xf32>
    %cst_25 = arith.constant dense<0.000000e+00> : vector<112xf32>
    %49 = vector.multi_reduction <add>, %48, %cst_25 [0] : vector<14x112xf32> to vector<112xf32>
    %50 = vector.shape_cast %49 : vector<112xf32> to vector<1x112xf32>
    %cst_26 = arith.constant dense<0.000000e+00> : vector<1x16xf32>
    %51 = tpu.matmul %50, %39, %cst_26 {dimension_numbers = #tpu.dot_dimension_numbers<[1], [0], [0], [1], [0, 0, 1, 1], [], []>} : vector<1x112xf32>, vector<112x16xf32>, vector<1x16xf32> -> vector<1x16xf32>
    %cst_27 = arith.constant 0.0102040814 : f32
    %52 = vector.broadcast %cst_27 : f32 to vector<1x16xf32>
    %53 = arith.mulf %51, %52 : vector<1x16xf32>
    %cst_28 = arith.constant 9.99999974E-6 : f32
    %54 = vector.broadcast %cst_28 : f32 to vector<1x16xf32>
    %55 = arith.addf %53, %54 : vector<1x16xf32>
    %56 = math.rsqrt %55 : vector<1x16xf32>
    %57 = tpu.concatenate %56, %56, %56, %56, %56, %56, %56 in 1 : vector<1x16xf32>, vector<1x16xf32>, vector<1x16xf32>, vector<1x16xf32>, vector<1x16xf32>, vector<1x16xf32>, vector<1x16xf32> -> vector<1x112xf32>
    %58 = vector.broadcast %57 : vector<1x112xf32> to vector<14x112xf32>
    %59 = arith.mulf %47, %58 : vector<14x112xf32>
    %cst_29 = arith.constant 0.000000e+00 : f32
    %60 = vector.broadcast %cst_29 : f32 to vector<14x112xf32>
    %61 = arith.maximumf %59, %60 : vector<14x112xf32>
    %62 = arith.truncf %61 : vector<14x112xf32> to vector<14x112xbf16>
    %c576 = arith.constant 576 : index
    %c0_30 = arith.constant 0 : index
    %63 = vector.load %arg2[%c576, %c0_30] : memref<2880x128xbf16, #tpu.memory_space<vmem>>, vector<48x14xbf16>
    %cst_31 = arith.constant dense<0.000000e+00> : vector<48x112xf32>
    %64 = tpu.matmul %63, %62, %cst_31 {dimension_numbers = #tpu.dot_dimension_numbers<[1], [0], [0], [1], [0, 0, 1, 1], [], []>} : vector<48x14xbf16>, vector<14x112xbf16>, vector<48x112xf32> -> vector<48x112xf32>
    %65 = arith.truncf %64 : vector<48x112xf32> to vector<48x112xbf16>
    %c624 = arith.constant 624 : index
    %c0_32 = arith.constant 0 : index
    %66 = vector.load %arg2[%c624, %c0_32] : memref<2880x128xbf16, #tpu.memory_space<vmem>>, vector<112x128xbf16>
    %67 = vector.extract_strided_slice %65 {offsets = [0, 0], sizes = [6, 112], strides = [1, 1]} : vector<48x112xbf16> to vector<6x112xbf16>
    %cst_33 = arith.constant dense<0.000000e+00> : vector<6x128xf32>
    %68 = tpu.matmul %67, %66, %cst_33 {dimension_numbers = #tpu.dot_dimension_numbers<[1], [0], [0], [1], [0, 0, 1, 1], [], []>} : vector<6x112xbf16>, vector<112x128xbf16>, vector<6x128xf32> -> vector<6x128xf32>
    %c736 = arith.constant 736 : index
    %c0_34 = arith.constant 0 : index
    %69 = vector.load %arg2[%c736, %c0_34] : memref<2880x128xbf16, #tpu.memory_space<vmem>>, vector<112x128xbf16>
    %70 = vector.extract_strided_slice %65 {offsets = [16, 0], sizes = [6, 112], strides = [1, 1]} : vector<48x112xbf16> to vector<6x112xbf16>
    %cst_35 = arith.constant dense<0.000000e+00> : vector<6x128xf32>
    %71 = tpu.matmul %70, %69, %cst_35 {dimension_numbers = #tpu.dot_dimension_numbers<[1], [0], [0], [1], [0, 0, 1, 1], [], []>} : vector<6x112xbf16>, vector<112x128xbf16>, vector<6x128xf32> -> vector<6x128xf32>
    %72 = arith.addf %68, %71 : vector<6x128xf32>
    %c848 = arith.constant 848 : index
    %c0_36 = arith.constant 0 : index
    %73 = vector.load %arg2[%c848, %c0_36] : memref<2880x128xbf16, #tpu.memory_space<vmem>>, vector<112x128xbf16>
    %74 = vector.extract_strided_slice %65 {offsets = [32, 0], sizes = [6, 112], strides = [1, 1]} : vector<48x112xbf16> to vector<6x112xbf16>
    %cst_37 = arith.constant dense<0.000000e+00> : vector<6x128xf32>
    %75 = tpu.matmul %74, %73, %cst_37 {dimension_numbers = #tpu.dot_dimension_numbers<[1], [0], [0], [1], [0, 0, 1, 1], [], []>} : vector<6x112xbf16>, vector<112x128xbf16>, vector<6x128xf32> -> vector<6x128xf32>
    %76 = arith.addf %72, %75 : vector<6x128xf32>
    %c128_38 = arith.constant 128 : index
    %c0_39 = arith.constant 0 : index
    %77 = vector.load %arg4[%c128_38, %c0_39] : memref<416x128xf32, #tpu.memory_space<vmem>>, vector<1x128xf32>
    %78 = vector.broadcast %77 : vector<1x128xf32> to vector<6x128xf32>
    %79 = arith.addf %76, %78 : vector<6x128xf32>
    %cst_40 = arith.constant 0.000000e+00 : f32
    %80 = vector.broadcast %cst_40 : f32 to vector<6x128xf32>
    %81 = arith.maximumf %79, %80 : vector<6x128xf32>
    %82 = arith.truncf %81 : vector<6x128xf32> to vector<6x128xbf16>
    %83 = vector.extract_strided_slice %82 {offsets = [0, 0], sizes = [2, 128], strides = [1, 1]} : vector<6x128xbf16> to vector<2x128xbf16>
    %84 = vector.extract_strided_slice %82 {offsets = [2, 0], sizes = [2, 128], strides = [1, 1]} : vector<6x128xbf16> to vector<2x128xbf16>
    %85 = vector.extract_strided_slice %82 {offsets = [4, 0], sizes = [2, 128], strides = [1, 1]} : vector<6x128xbf16> to vector<2x128xbf16>
    %86 = tpu.concatenate %83, %84, %85 in 1 : vector<2x128xbf16>, vector<2x128xbf16>, vector<2x128xbf16> -> vector<2x384xbf16>
    %c2352 = arith.constant 2352 : index
    %c0_41 = arith.constant 0 : index
    %87 = vector.load %arg2[%c2352, %c0_41] : memref<2880x128xbf16, #tpu.memory_space<vmem>>, vector<384x128xbf16>
    %cst_42 = arith.constant dense<0.000000e+00> : vector<2x128xf32>
    %88 = tpu.matmul %86, %87, %cst_42 {dimension_numbers = #tpu.dot_dimension_numbers<[1], [0], [0], [1], [0, 0, 1, 1], [], []>} : vector<2x384xbf16>, vector<384x128xbf16>, vector<2x128xf32> -> vector<2x128xf32>
    %c384 = arith.constant 384 : index
    %c0_43 = arith.constant 0 : index
    %89 = vector.load %arg4[%c384, %c0_43] : memref<416x128xf32, #tpu.memory_space<vmem>>, vector<1x128xf32>
    %90 = vector.broadcast %89 : vector<1x128xf32> to vector<2x128xf32>
    %91 = arith.addf %88, %90 : vector<2x128xf32>
    %cst_44 = arith.constant 0.000000e+00 : f32
    %92 = vector.broadcast %cst_44 : f32 to vector<2x128xf32>
    %93 = arith.maximumf %91, %92 : vector<2x128xf32>
    %94 = arith.truncf %93 : vector<2x128xf32> to vector<2x128xbf16>
    %c2736 = arith.constant 2736 : index
    %c0_45 = arith.constant 0 : index
    %95 = vector.load %arg2[%c2736, %c0_45] : memref<2880x128xbf16, #tpu.memory_space<vmem>>, vector<128x8xbf16>
    %cst_46 = arith.constant dense<0.000000e+00> : vector<2x8xf32>
    %96 = tpu.matmul %94, %95, %cst_46 {dimension_numbers = #tpu.dot_dimension_numbers<[1], [0], [0], [1], [0, 0, 1, 1], [], []>} : vector<2x128xbf16>, vector<128x8xbf16>, vector<2x8xf32> -> vector<2x8xf32>
    %c392 = arith.constant 392 : index
    %c0_47 = arith.constant 0 : index
    %97 = vector.load %arg4[%c392, %c0_47] : memref<416x128xf32, #tpu.memory_space<vmem>>, vector<1x8xf32>
    %98 = vector.broadcast %97 : vector<1x8xf32> to vector<2x8xf32>
    %99 = arith.addf %96, %98 : vector<2x8xf32>
    %100 = vector.extract_strided_slice %99 {offsets = [0, 0], sizes = [2, 4], strides = [1, 1]} : vector<2x8xf32> to vector<2x4xf32>
    %101 = vector.extract_strided_slice %99 {offsets = [0, 4], sizes = [2, 4], strides = [1, 1]} : vector<2x8xf32> to vector<2x4xf32>
    %102 = math.exp %101 : vector<2x4xf32>
    %c0_48 = arith.constant 0 : index
    %c0_49 = arith.constant 0 : index
    %103 = vector.load %arg1[%c0_48, %c0_49] : memref<2x4xf32, #tpu.memory_space<vmem>>, vector<2x4xf32>
    %104 = arith.mulf %102, %103 : vector<2x4xf32>
    %105 = arith.addf %100, %104 : vector<2x4xf32>
    %106 = arith.truncf %105 : vector<2x4xf32> to vector<2x4xbf16>
    %c2864 = arith.constant 2864 : index
    %c0_50 = arith.constant 0 : index
    %107 = vector.load %arg2[%c2864, %c0_50] : memref<2880x128xbf16, #tpu.memory_space<vmem>>, vector<4x128xbf16>
    %cst_51 = arith.constant dense<0.000000e+00> : vector<2x128xf32>
    %108 = tpu.matmul %106, %107, %cst_51 {dimension_numbers = #tpu.dot_dimension_numbers<[1], [0], [0], [1], [0, 0, 1, 1], [], []>} : vector<2x4xbf16>, vector<4x128xbf16>, vector<2x128xf32> -> vector<2x128xf32>
    %c400 = arith.constant 400 : index
    %c0_52 = arith.constant 0 : index
    %109 = vector.load %arg4[%c400, %c0_52] : memref<416x128xf32, #tpu.memory_space<vmem>>, vector<1x128xf32>
    %110 = vector.broadcast %109 : vector<1x128xf32> to vector<2x128xf32>
    %111 = arith.addf %108, %110 : vector<2x128xf32>
    %cst_53 = arith.constant 0.000000e+00 : f32
    %112 = vector.broadcast %cst_53 : f32 to vector<2x128xf32>
    %113 = arith.maximumf %111, %112 : vector<2x128xf32>
    %114 = arith.truncf %113 : vector<2x128xf32> to vector<2x128xbf16>
    %c0_54 = arith.constant 0 : index
    %c0_55 = arith.constant 0 : index
    %115 = vector.load %arg3[%c0_54, %c0_55] : memref<128x384xbf16, #tpu.memory_space<vmem>>, vector<128x384xbf16>
    %cst_56 = arith.constant dense<0.000000e+00> : vector<2x384xf32>
    %116 = tpu.matmul %114, %115, %cst_56 {dimension_numbers = #tpu.dot_dimension_numbers<[1], [0], [0], [1], [0, 0, 1, 1], [], []>} : vector<2x128xbf16>, vector<128x384xbf16>, vector<2x384xf32> -> vector<2x384xf32>
    %c408 = arith.constant 408 : index
    %c0_57 = arith.constant 0 : index
    %117 = vector.load %arg4[%c408, %c0_57] : memref<416x128xf32, #tpu.memory_space<vmem>>, vector<3x128xf32>
    %118 = vector.extract_strided_slice %116 {offsets = [0, 0], sizes = [2, 128], strides = [1, 1]} : vector<2x384xf32> to vector<2x128xf32>
    %119 = vector.extract_strided_slice %117 {offsets = [0, 0], sizes = [1, 128], strides = [1, 1]} : vector<3x128xf32> to vector<1x128xf32>
    %120 = vector.broadcast %119 : vector<1x128xf32> to vector<2x128xf32>
    %121 = arith.addf %118, %120 : vector<2x128xf32>
    %cst_58 = arith.constant 0.000000e+00 : f32
    %122 = vector.broadcast %cst_58 : f32 to vector<2x128xf32>
    %123 = arith.maximumf %121, %122 : vector<2x128xf32>
    %124 = vector.extract_strided_slice %116 {offsets = [0, 128], sizes = [2, 128], strides = [1, 1]} : vector<2x384xf32> to vector<2x128xf32>
    %125 = vector.extract_strided_slice %117 {offsets = [1, 0], sizes = [1, 128], strides = [1, 1]} : vector<3x128xf32> to vector<1x128xf32>
    %126 = vector.broadcast %125 : vector<1x128xf32> to vector<2x128xf32>
    %127 = arith.addf %124, %126 : vector<2x128xf32>
    %cst_59 = arith.constant 0.000000e+00 : f32
    %128 = vector.broadcast %cst_59 : f32 to vector<2x128xf32>
    %129 = arith.maximumf %127, %128 : vector<2x128xf32>
    %130 = vector.extract_strided_slice %116 {offsets = [0, 256], sizes = [2, 128], strides = [1, 1]} : vector<2x384xf32> to vector<2x128xf32>
    %131 = vector.extract_strided_slice %117 {offsets = [2, 0], sizes = [1, 128], strides = [1, 1]} : vector<3x128xf32> to vector<1x128xf32>
    %132 = vector.broadcast %131 : vector<1x128xf32> to vector<2x128xf32>
    %133 = arith.addf %130, %132 : vector<2x128xf32>
    %cst_60 = arith.constant 0.000000e+00 : f32
    %134 = vector.broadcast %cst_60 : f32 to vector<2x128xf32>
    %135 = arith.maximumf %133, %134 : vector<2x128xf32>
    %136 = tpu.concatenate %123, %129, %135 in 0 : vector<2x128xf32>, vector<2x128xf32>, vector<2x128xf32> -> vector<6x128xf32>
    %137 = arith.truncf %136 : vector<6x128xf32> to vector<6x128xbf16>
    %c960 = arith.constant 960 : index
    %c0_61 = arith.constant 0 : index
    %138 = vector.load %arg2[%c960, %c0_61] : memref<2880x128xbf16, #tpu.memory_space<vmem>>, vector<48x6xbf16>
    %cst_62 = arith.constant dense<0.000000e+00> : vector<48x128xf32>
    %139 = tpu.matmul %138, %137, %cst_62 {dimension_numbers = #tpu.dot_dimension_numbers<[1], [0], [0], [1], [0, 0, 1, 1], [], []>} : vector<48x6xbf16>, vector<6x128xbf16>, vector<48x128xf32> -> vector<48x128xf32>
    %140 = arith.truncf %139 : vector<48x128xf32> to vector<48x128xbf16>
    %c1008 = arith.constant 1008 : index
    %c0_63 = arith.constant 0 : index
    %141 = vector.load %arg2[%c1008, %c0_63] : memref<2880x128xbf16, #tpu.memory_space<vmem>>, vector<128x112xbf16>
    %142 = vector.extract_strided_slice %140 {offsets = [0, 0], sizes = [14, 128], strides = [1, 1]} : vector<48x128xbf16> to vector<14x128xbf16>
    %cst_64 = arith.constant dense<0.000000e+00> : vector<14x112xf32>
    %143 = tpu.matmul %142, %141, %cst_64 {dimension_numbers = #tpu.dot_dimension_numbers<[1], [0], [0], [1], [0, 0, 1, 1], [], []>} : vector<14x128xbf16>, vector<128x112xbf16>, vector<14x112xf32> -> vector<14x112xf32>
    %c1136 = arith.constant 1136 : index
    %c0_65 = arith.constant 0 : index
    %144 = vector.load %arg2[%c1136, %c0_65] : memref<2880x128xbf16, #tpu.memory_space<vmem>>, vector<128x112xbf16>
    %145 = vector.extract_strided_slice %140 {offsets = [16, 0], sizes = [14, 128], strides = [1, 1]} : vector<48x128xbf16> to vector<14x128xbf16>
    %cst_66 = arith.constant dense<0.000000e+00> : vector<14x112xf32>
    %146 = tpu.matmul %145, %144, %cst_66 {dimension_numbers = #tpu.dot_dimension_numbers<[1], [0], [0], [1], [0, 0, 1, 1], [], []>} : vector<14x128xbf16>, vector<128x112xbf16>, vector<14x112xf32> -> vector<14x112xf32>
    %147 = arith.addf %143, %146 : vector<14x112xf32>
    %c1264 = arith.constant 1264 : index
    %c0_67 = arith.constant 0 : index
    %148 = vector.load %arg2[%c1264, %c0_67] : memref<2880x128xbf16, #tpu.memory_space<vmem>>, vector<128x112xbf16>
    %149 = vector.extract_strided_slice %140 {offsets = [32, 0], sizes = [14, 128], strides = [1, 1]} : vector<48x128xbf16> to vector<14x128xbf16>
    %cst_68 = arith.constant dense<0.000000e+00> : vector<14x112xf32>
    %150 = tpu.matmul %149, %148, %cst_68 {dimension_numbers = #tpu.dot_dimension_numbers<[1], [0], [0], [1], [0, 0, 1, 1], [], []>} : vector<14x128xbf16>, vector<128x112xbf16>, vector<14x112xf32> -> vector<14x112xf32>
    %151 = arith.addf %147, %150 : vector<14x112xf32>
    %c136 = arith.constant 136 : index
    %c0_69 = arith.constant 0 : index
    %152 = vector.load %arg4[%c136, %c0_69] : memref<416x128xf32, #tpu.memory_space<vmem>>, vector<1x112xf32>
    %153 = vector.broadcast %152 : vector<1x112xf32> to vector<14x112xf32>
    %154 = arith.addf %151, %153 : vector<14x112xf32>
    %c144 = arith.constant 144 : index
    %c0_70 = arith.constant 0 : index
    %155 = vector.load %arg4[%c144, %c0_70] : memref<416x128xf32, #tpu.memory_space<vmem>>, vector<112x16xf32>
    %cst_71 = arith.constant dense<0.000000e+00> : vector<112xf32>
    %156 = vector.multi_reduction <add>, %154, %cst_71 [0] : vector<14x112xf32> to vector<112xf32>
    %157 = vector.shape_cast %156 : vector<112xf32> to vector<1x112xf32>
    %cst_72 = arith.constant dense<0.000000e+00> : vector<1x16xf32>
    %158 = tpu.matmul %157, %155, %cst_72 {dimension_numbers = #tpu.dot_dimension_numbers<[1], [0], [0], [1], [0, 0, 1, 1], [], []>} : vector<1x112xf32>, vector<112x16xf32>, vector<1x16xf32> -> vector<1x16xf32>
    %cst_73 = arith.constant 0.0102040814 : f32
    %159 = vector.broadcast %cst_73 : f32 to vector<1x16xf32>
    %160 = arith.mulf %158, %159 : vector<1x16xf32>
    %161 = tpu.concatenate %160, %160, %160, %160, %160, %160, %160 in 1 : vector<1x16xf32>, vector<1x16xf32>, vector<1x16xf32>, vector<1x16xf32>, vector<1x16xf32>, vector<1x16xf32>, vector<1x16xf32> -> vector<1x112xf32>
    %162 = vector.broadcast %161 : vector<1x112xf32> to vector<14x112xf32>
    %163 = arith.subf %154, %162 : vector<14x112xf32>
    %164 = arith.mulf %163, %163 : vector<14x112xf32>
    %cst_74 = arith.constant dense<0.000000e+00> : vector<112xf32>
    %165 = vector.multi_reduction <add>, %164, %cst_74 [0] : vector<14x112xf32> to vector<112xf32>
    %166 = vector.shape_cast %165 : vector<112xf32> to vector<1x112xf32>
    %cst_75 = arith.constant dense<0.000000e+00> : vector<1x16xf32>
    %167 = tpu.matmul %166, %155, %cst_75 {dimension_numbers = #tpu.dot_dimension_numbers<[1], [0], [0], [1], [0, 0, 1, 1], [], []>} : vector<1x112xf32>, vector<112x16xf32>, vector<1x16xf32> -> vector<1x16xf32>
    %cst_76 = arith.constant 0.0102040814 : f32
    %168 = vector.broadcast %cst_76 : f32 to vector<1x16xf32>
    %169 = arith.mulf %167, %168 : vector<1x16xf32>
    %cst_77 = arith.constant 9.99999974E-6 : f32
    %170 = vector.broadcast %cst_77 : f32 to vector<1x16xf32>
    %171 = arith.addf %169, %170 : vector<1x16xf32>
    %172 = math.rsqrt %171 : vector<1x16xf32>
    %173 = tpu.concatenate %172, %172, %172, %172, %172, %172, %172 in 1 : vector<1x16xf32>, vector<1x16xf32>, vector<1x16xf32>, vector<1x16xf32>, vector<1x16xf32>, vector<1x16xf32>, vector<1x16xf32> -> vector<1x112xf32>
    %174 = vector.broadcast %173 : vector<1x112xf32> to vector<14x112xf32>
    %175 = arith.mulf %163, %174 : vector<14x112xf32>
    %cst_78 = arith.constant 0.000000e+00 : f32
    %176 = vector.broadcast %cst_78 : f32 to vector<14x112xf32>
    %177 = arith.maximumf %175, %176 : vector<14x112xf32>
    %178 = arith.truncf %177 : vector<14x112xf32> to vector<14x112xbf16>
    %c1392 = arith.constant 1392 : index
    %c0_79 = arith.constant 0 : index
    %179 = vector.load %arg2[%c1392, %c0_79] : memref<2880x128xbf16, #tpu.memory_space<vmem>>, vector<96x14xbf16>
    %cst_80 = arith.constant dense<0.000000e+00> : vector<96x112xf32>
    %180 = tpu.matmul %179, %178, %cst_80 {dimension_numbers = #tpu.dot_dimension_numbers<[1], [0], [0], [1], [0, 0, 1, 1], [], []>} : vector<96x14xbf16>, vector<14x112xbf16>, vector<96x112xf32> -> vector<96x112xf32>
    %181 = arith.truncf %180 : vector<96x112xf32> to vector<96x112xbf16>
    %c1488 = arith.constant 1488 : index
    %c0_81 = arith.constant 0 : index
    %182 = vector.load %arg2[%c1488, %c0_81] : memref<2880x128xbf16, #tpu.memory_space<vmem>>, vector<112x112xbf16>
    %183 = vector.extract_strided_slice %181 {offsets = [0, 0], sizes = [28, 112], strides = [1, 1]} : vector<96x112xbf16> to vector<28x112xbf16>
    %cst_82 = arith.constant dense<0.000000e+00> : vector<28x112xf32>
    %184 = tpu.matmul %183, %182, %cst_82 {dimension_numbers = #tpu.dot_dimension_numbers<[1], [0], [0], [1], [0, 0, 1, 1], [], []>} : vector<28x112xbf16>, vector<112x112xbf16>, vector<28x112xf32> -> vector<28x112xf32>
    %c1600 = arith.constant 1600 : index
    %c0_83 = arith.constant 0 : index
    %185 = vector.load %arg2[%c1600, %c0_83] : memref<2880x128xbf16, #tpu.memory_space<vmem>>, vector<112x112xbf16>
    %186 = vector.extract_strided_slice %181 {offsets = [32, 0], sizes = [28, 112], strides = [1, 1]} : vector<96x112xbf16> to vector<28x112xbf16>
    %cst_84 = arith.constant dense<0.000000e+00> : vector<28x112xf32>
    %187 = tpu.matmul %186, %185, %cst_84 {dimension_numbers = #tpu.dot_dimension_numbers<[1], [0], [0], [1], [0, 0, 1, 1], [], []>} : vector<28x112xbf16>, vector<112x112xbf16>, vector<28x112xf32> -> vector<28x112xf32>
    %188 = arith.addf %184, %187 : vector<28x112xf32>
    %c1712 = arith.constant 1712 : index
    %c0_85 = arith.constant 0 : index
    %189 = vector.load %arg2[%c1712, %c0_85] : memref<2880x128xbf16, #tpu.memory_space<vmem>>, vector<112x112xbf16>
    %190 = vector.extract_strided_slice %181 {offsets = [64, 0], sizes = [28, 112], strides = [1, 1]} : vector<96x112xbf16> to vector<28x112xbf16>
    %cst_86 = arith.constant dense<0.000000e+00> : vector<28x112xf32>
    %191 = tpu.matmul %190, %189, %cst_86 {dimension_numbers = #tpu.dot_dimension_numbers<[1], [0], [0], [1], [0, 0, 1, 1], [], []>} : vector<28x112xbf16>, vector<112x112xbf16>, vector<28x112xf32> -> vector<28x112xf32>
    %192 = arith.addf %188, %191 : vector<28x112xf32>
    %c256 = arith.constant 256 : index
    %c0_87 = arith.constant 0 : index
    %193 = vector.load %arg4[%c256, %c0_87] : memref<416x128xf32, #tpu.memory_space<vmem>>, vector<1x112xf32>
    %194 = vector.broadcast %193 : vector<1x112xf32> to vector<28x112xf32>
    %195 = arith.addf %192, %194 : vector<28x112xf32>
    %c264 = arith.constant 264 : index
    %c0_88 = arith.constant 0 : index
    %196 = vector.load %arg4[%c264, %c0_88] : memref<416x128xf32, #tpu.memory_space<vmem>>, vector<112x8xf32>
    %cst_89 = arith.constant dense<0.000000e+00> : vector<112xf32>
    %197 = vector.multi_reduction <add>, %195, %cst_89 [0] : vector<28x112xf32> to vector<112xf32>
    %198 = vector.shape_cast %197 : vector<112xf32> to vector<1x112xf32>
    %cst_90 = arith.constant dense<0.000000e+00> : vector<1x8xf32>
    %199 = tpu.matmul %198, %196, %cst_90 {dimension_numbers = #tpu.dot_dimension_numbers<[1], [0], [0], [1], [0, 0, 1, 1], [], []>} : vector<1x112xf32>, vector<112x8xf32>, vector<1x8xf32> -> vector<1x8xf32>
    %cst_91 = arith.constant 0.00255102036 : f32
    %200 = vector.broadcast %cst_91 : f32 to vector<1x8xf32>
    %201 = arith.mulf %199, %200 : vector<1x8xf32>
    %202 = tpu.concatenate %201, %201, %201, %201, %201, %201, %201, %201, %201, %201, %201, %201, %201, %201 in 1 : vector<1x8xf32>, vector<1x8xf32>, vector<1x8xf32>, vector<1x8xf32>, vector<1x8xf32>, vector<1x8xf32>, vector<1x8xf32>, vector<1x8xf32>, vector<1x8xf32>, vector<1x8xf32>, vector<1x8xf32>, vector<1x8xf32>, vector<1x8xf32>, vector<1x8xf32> -> vector<1x112xf32>
    %203 = vector.broadcast %202 : vector<1x112xf32> to vector<28x112xf32>
    %204 = arith.subf %195, %203 : vector<28x112xf32>
    %205 = arith.mulf %204, %204 : vector<28x112xf32>
    %cst_92 = arith.constant dense<0.000000e+00> : vector<112xf32>
    %206 = vector.multi_reduction <add>, %205, %cst_92 [0] : vector<28x112xf32> to vector<112xf32>
    %207 = vector.shape_cast %206 : vector<112xf32> to vector<1x112xf32>
    %cst_93 = arith.constant dense<0.000000e+00> : vector<1x8xf32>
    %208 = tpu.matmul %207, %196, %cst_93 {dimension_numbers = #tpu.dot_dimension_numbers<[1], [0], [0], [1], [0, 0, 1, 1], [], []>} : vector<1x112xf32>, vector<112x8xf32>, vector<1x8xf32> -> vector<1x8xf32>
    %cst_94 = arith.constant 0.00255102036 : f32
    %209 = vector.broadcast %cst_94 : f32 to vector<1x8xf32>
    %210 = arith.mulf %208, %209 : vector<1x8xf32>
    %cst_95 = arith.constant 9.99999974E-6 : f32
    %211 = vector.broadcast %cst_95 : f32 to vector<1x8xf32>
    %212 = arith.addf %210, %211 : vector<1x8xf32>
    %213 = math.rsqrt %212 : vector<1x8xf32>
    %214 = tpu.concatenate %213, %213, %213, %213, %213, %213, %213, %213, %213, %213, %213, %213, %213, %213 in 1 : vector<1x8xf32>, vector<1x8xf32>, vector<1x8xf32>, vector<1x8xf32>, vector<1x8xf32>, vector<1x8xf32>, vector<1x8xf32>, vector<1x8xf32>, vector<1x8xf32>, vector<1x8xf32>, vector<1x8xf32>, vector<1x8xf32>, vector<1x8xf32>, vector<1x8xf32> -> vector<1x112xf32>
    %215 = vector.broadcast %214 : vector<1x112xf32> to vector<28x112xf32>
    %216 = arith.mulf %204, %215 : vector<28x112xf32>
    %cst_96 = arith.constant 0.000000e+00 : f32
    %217 = vector.broadcast %cst_96 : f32 to vector<28x112xf32>
    %218 = arith.maximumf %216, %217 : vector<28x112xf32>
    %219 = arith.truncf %218 : vector<28x112xf32> to vector<28x112xbf16>
    %c1824 = arith.constant 1824 : index
    %c0_97 = arith.constant 0 : index
    %220 = vector.load %arg2[%c1824, %c0_97] : memref<2880x128xbf16, #tpu.memory_space<vmem>>, vector<192x28xbf16>
    %cst_98 = arith.constant dense<0.000000e+00> : vector<192x112xf32>
    %221 = tpu.matmul %220, %219, %cst_98 {dimension_numbers = #tpu.dot_dimension_numbers<[1], [0], [0], [1], [0, 0, 1, 1], [], []>} : vector<192x28xbf16>, vector<28x112xbf16>, vector<192x112xf32> -> vector<192x112xf32>
    %222 = arith.truncf %221 : vector<192x112xf32> to vector<192x112xbf16>
    %c2016 = arith.constant 2016 : index
    %c0_99 = arith.constant 0 : index
    %223 = vector.load %arg2[%c2016, %c0_99] : memref<2880x128xbf16, #tpu.memory_space<vmem>>, vector<112x28xbf16>
    %224 = vector.extract_strided_slice %222 {offsets = [0, 0], sizes = [56, 112], strides = [1, 1]} : vector<192x112xbf16> to vector<56x112xbf16>
    %cst_100 = arith.constant dense<0.000000e+00> : vector<56x28xf32>
    %225 = tpu.matmul %224, %223, %cst_100 {dimension_numbers = #tpu.dot_dimension_numbers<[1], [0], [0], [1], [0, 0, 1, 1], [], []>} : vector<56x112xbf16>, vector<112x28xbf16>, vector<56x28xf32> -> vector<56x28xf32>
    %c2128 = arith.constant 2128 : index
    %c0_101 = arith.constant 0 : index
    %226 = vector.load %arg2[%c2128, %c0_101] : memref<2880x128xbf16, #tpu.memory_space<vmem>>, vector<112x28xbf16>
    %227 = vector.extract_strided_slice %222 {offsets = [64, 0], sizes = [56, 112], strides = [1, 1]} : vector<192x112xbf16> to vector<56x112xbf16>
    %cst_102 = arith.constant dense<0.000000e+00> : vector<56x28xf32>
    %228 = tpu.matmul %227, %226, %cst_102 {dimension_numbers = #tpu.dot_dimension_numbers<[1], [0], [0], [1], [0, 0, 1, 1], [], []>} : vector<56x112xbf16>, vector<112x28xbf16>, vector<56x28xf32> -> vector<56x28xf32>
    %229 = arith.addf %225, %228 : vector<56x28xf32>
    %c2240 = arith.constant 2240 : index
    %c0_103 = arith.constant 0 : index
    %230 = vector.load %arg2[%c2240, %c0_103] : memref<2880x128xbf16, #tpu.memory_space<vmem>>, vector<112x28xbf16>
    %231 = vector.extract_strided_slice %222 {offsets = [128, 0], sizes = [56, 112], strides = [1, 1]} : vector<192x112xbf16> to vector<56x112xbf16>
    %cst_104 = arith.constant dense<0.000000e+00> : vector<56x28xf32>
    %232 = tpu.matmul %231, %230, %cst_104 {dimension_numbers = #tpu.dot_dimension_numbers<[1], [0], [0], [1], [0, 0, 1, 1], [], []>} : vector<56x112xbf16>, vector<112x28xbf16>, vector<56x28xf32> -> vector<56x28xf32>
    %233 = arith.addf %229, %232 : vector<56x28xf32>
    %c376 = arith.constant 376 : index
    %c0_105 = arith.constant 0 : index
    %234 = vector.load %arg4[%c376, %c0_105] : memref<416x128xf32, #tpu.memory_space<vmem>>, vector<1x28xf32>
    %235 = vector.broadcast %234 : vector<1x28xf32> to vector<56x28xf32>
    %236 = arith.addf %233, %235 : vector<56x28xf32>
    %237 = arith.negf %236 : vector<56x28xf32>
    %238 = math.exp %237 : vector<56x28xf32>
    %cst_106 = arith.constant 1.000000e+00 : f32
    %239 = vector.broadcast %cst_106 : f32 to vector<56x28xf32>
    %240 = arith.addf %239, %238 : vector<56x28xf32>
    %241 = arith.divf %239, %240 : vector<56x28xf32>
    %c0_107 = arith.constant 0 : index
    %c0_108 = arith.constant 0 : index
    %242 = vector.load %arg5[%c0_107, %c0_108] : memref<56x28xf32, #tpu.memory_space<vmem>>, vector<56x28xf32>
    tpu.vector_store %arg5[%c0_107, %c0_108], %241 {strides = array<i32>} : memref<56x28xf32, #tpu.memory_space<vmem>>, vector<56x28xf32>,
    return
  }
}

</mosaic_0001>

<bundles_post_ra>
// kernel: mconv_vae_forward.1
= control target key start
LH: loop header
LB: loop body
LE: loop exit
PB: predicated region body
PF: predicated region fallthrough
CT: control target
= control target key end

     0   :  { %10 = vsyncpa [#allocation3], 0  ;;  %s6940_s0 = inlined_call_operand.hbm [shape: f32[56,28], index: 0, kind: input, shape index: {}]   ;;  %s6941_s1 = inlined_call_operand.vmem [shape: f32[2,4], index: 1, kind: input, shape index: {}]   ;;  %s6942_s2 = inlined_call_operand.hbm [shape: bf16[2880,128], index: 2, kind: input, shape index: {}]   ;;  %s6943_s3 = inlined_call_operand.hbm [shape: bf16[128,384], index: 3, kind: input, shape index: {}]   ;;  %s6944_s4 = inlined_call_operand.hbm [shape: f32[416,128], index: 4, kind: input, shape index: {}]   ;;  %s6945_s5 = inlined_call_operand.hbm [shape: f32[56,28], index: 5, kind: output, shape index: {}]  }
   0x1   :  { %11 = vsyncpa [#allocation6], 0 }
   0x2   :  { %12 = vsyncpa [#allocation9], 0 }
   0x3   :  { %13 = vsyncpa [#allocation4], 0  ;;  %s6351_s18 = smov [#allocation5]   ;;  %s6233_s22 = scalar_lea.hbm %s6942_s2, 23040 }
   0x4   :  { %s33_s19 = sshll.u32 %s6351_s18, 4  ;;  %p6234_p0 = scmp.ne.s32.totalorder %s6942_s2, %s6233_s22  ;;  %s34_s19 = int_to_ptr.vmem [resolvable:$true] %s33_s19 }
   0x5   :  { %p6237_p1 = scmp.lt.u32.totalorder %s6233_s22, %s6942_s2 }
   0x7   :  { %p6239_p2 = pnand %p6237_p1, %p6234_p0 }
   0x9   :  { %6242 = shalt.err (!%p6239_p2)
}
   0xa   :  { %s6243_s27 = scalar_lea.vmem %s34_s19, 23040  ;;  %p6248_p4 = scmp.lt.s32.totalorder %s34_s19, %s34_s19 }
   0xb   :  { %p6244_p3 = scmp.ne.s32.totalorder %s34_s19, %s6243_s27  ;;  %p6249_p5 = scmp.lt.s32.totalorder %s6243_s27, %s6243_s27 }
   0xd   :  { %p6250_p6 = por %p6249_p5, %p6248_p4 }
   0xf   :  { %p6251_p7 = pnand %p6250_p6, %p6244_p3 }
  0x11   :  { %6254 = shalt.err (!%p6251_p7)
}
  0x12   :  { %s6352_s28 = smov 64   ;;  %s6353_s29 = smov 4  }
  0x13   :  { %39 = dma.hbm_to_vmem [thread:$0]  %s6942_s2, 23040, %s34_s19, [#allocation6], %s6352_s28, %s6352_s28, %s6353_s29  }
  0x14   :  { %s6354_s7 = smov [#allocation2]   ;;  %s6255_s11 = scalar_lea.hbm %s6940_s0, 896 }
  0x15   :  { %s19_s8 = sshll.u32 %s6354_s7, 4  ;;  %p6256_p8 = scmp.ne.s32.totalorder %s6940_s0, %s6255_s11  ;;  %s20_s8 = int_to_ptr.vmem [resolvable:$true] %s19_s8 }
  0x16   :  { %p6259_p9 = scmp.lt.u32.totalorder %s6255_s11, %s6940_s0 }
  0x18   :  { %p6261_p10 = pnand %p6259_p9, %p6256_p8 }
  0x1a   :  { %6264 = shalt.err (!%p6261_p10)
}
  0x1b   :  { %s6265_s16 = scalar_lea.vmem %s20_s8, 896  ;;  %p6270_p12 = scmp.lt.s32.totalorder %s20_s8, %s20_s8 }
  0x1c   :  { %p6266_p11 = scmp.ne.s32.totalorder %s20_s8, %s6265_s16  ;;  %p6271_p13 = scmp.lt.s32.totalorder %s6265_s16, %s6265_s16 }
  0x1e   :  { %p6272_p0 = por %p6271_p13, %p6270_p12 }
  0x20   :  { %p6273_p1 = pnand %p6272_p0, %p6266_p11 }
  0x22   :  { %6276 = shalt.err (!%p6273_p1)
}
  0x23   :  { %s6355_s2 = smov 128   ;;  %s6356_s17 = smov 8  }
  0x24   :  { %25 = dma.hbm_to_vmem [thread:$0]  %s6940_s0, 896, %s20_s8, [#allocation3], %s6355_s2, %s6355_s2, %s6356_s17  }
  0x25   :  { %s6357_s20 = smov [#allocation7]   ;;  %s6277_s24 = scalar_lea.hbm %s6943_s3, 3072 }
  0x26   :  { %s45_s21 = sshll.u32 %s6357_s20, 4  ;;  %p6278_p2 = scmp.ne.s32.totalorder %s6943_s3, %s6277_s24  ;;  %s46_s21 = int_to_ptr.vmem [resolvable:$true] %s45_s21 }
  0x27   :  { %p6281_p3 = scmp.lt.u32.totalorder %s6277_s24, %s6943_s3 }
  0x29   :  { %p6283_p4 = pnand %p6281_p3, %p6278_p2 }
  0x2b   :  { %6286 = shalt.err (!%p6283_p4)
}
  0x2c   :  { %s6287_s6 = scalar_lea.vmem %s46_s21, 3072  ;;  %p6292_p6 = scmp.lt.s32.totalorder %s46_s21, %s46_s21 }
  0x2d   :  { %p6288_p5 = scmp.ne.s32.totalorder %s46_s21, %s6287_s6  ;;  %p6293_p7 = scmp.lt.s32.totalorder %s6287_s6, %s6287_s6 }
  0x2f   :  { %p6294_p8 = por %p6293_p7, %p6292_p6 }
  0x31   :  { %p6295_p9 = pnand %p6294_p8, %p6288_p5 }
  0x33   :  { %6298 = shalt.err (!%p6295_p9)
}
  0x34   :  { %s6358_s0 = smov 192   ;;  %s6359_s7 = smov 12  }
  0x35   :  { %51 = dma.hbm_to_vmem [thread:$0]  %s6943_s3, 3072, %s46_s21, [#allocation6], %s6358_s0, %s6358_s0, %s6359_s7  }
  0x36   :  { %s6360_s10 = smov [#allocation8]   ;;  %s6299_s14 = scalar_lea.hbm %s6944_s4, 6656 }
  0x37   :  { %s57_s11 = sshll.u32 %s6360_s10, 4  ;;  %p6300_p10 = scmp.ne.s32.totalorder %s6944_s4, %s6299_s14  ;;  %s58_s11 = int_to_ptr.vmem [resolvable:$true] %s57_s11 }
  0x38   :  { %p6303_p11 = scmp.lt.u32.totalorder %s6299_s14, %s6944_s4 }
  0x3a   :  { %p6305_p12 = pnand %p6303_p11, %p6300_p10 }
  0x3c   :  { %6308 = shalt.err (!%p6305_p12)
}
  0x3d   :  { %s6309_s20 = scalar_lea.vmem %s58_s11, 6656  ;;  %p6314_p0 = scmp.lt.s32.totalorder %s58_s11, %s58_s11 }
  0x3e   :  { %p6310_p13 = scmp.ne.s32.totalorder %s58_s11, %s6309_s20  ;;  %p6315_p1 = scmp.lt.s32.totalorder %s6309_s20, %s6309_s20 }
  0x40   :  { %p6316_p2 = por %p6315_p1, %p6314_p0 }
  0x42   :  { %p6317_p3 = pnand %p6316_p2, %p6310_p13 }
  0x44   :  { %6320 = shalt.err (!%p6317_p3)
}
  0x45   :  { %63 = dma.hbm_to_vmem [thread:$0]  %s6944_s4, 6656, %s58_s11, [#allocation9], %s6355_s2, %s6355_s2, %s6356_s17  }
  0x46   :  { %6343 = dma.done.wait [#allocation3], 896  }
  0x47   :  { %6344 = vsyncadd [#allocation3], 4294966400 }
  0x48   :  { %6345 = dma.done.wait [#allocation6], 26112  }
  0x49   :  { %6346 = vsyncadd [#allocation6], 4294941184 }
  0x4a   :  { %6347 = dma.done.wait [#allocation9], 6656  }
  0x4b   :  { %6348 = vsyncadd [#allocation9], 4294960640  ;;  %v77_v0 = vld [vmem:[#allocation2] sm:$0xff]  ;;  %v78_v1 = vld [vmem:[#allocation2 + $0x8] sm:$0xff]  ;;  %vm130_vm0 = vcmask 457728   ;;  %vm149_vm1 = vcmask 1043456  }
  0x4c   :  { %v79_v2 = vld [vmem:[#allocation2 + $0x10] sm:$0xff]  ;;  %v84_v3 = vpack.c.bf16 %v78_v1, %v77_v0  ;;  %v80_v4 = vld [vmem:[#allocation2 + $0x18] sm:$0xff]  ;;  %v81_v5 = vld [vmem:[#allocation2 + $0x20] sm:$0xff]  ;;  %vm6946_vm2 = vcmask 1045504   ;;  %vm6947_vm3 = vcmask 228352   ;;  %v6361_v45 = vmov 0.0  }
  0x4d   :  { %v82_v6 = vld [vmem:[#allocation2 + $0x28] sm:$0xff]  ;;  %v85_v7 = vpack.c.bf16 %v80_v4, %v79_v2  ;;  %v83_v8 = vld [vmem:[#allocation2 + $0x30] sm:$0xff]  ;;  %v5986_v9 = vld [vmem:[#allocation5] sm:$0xff]   ;;  %vm6362_vm4 = vmmov 0   ;;  %vm643_vm5 = vcmask 916480   ;;  %vm898_vm6 = vcmask 914432  }
  0x4e   :  { %5133 = vmatprep.subr.bf16.mxu0 %v84_v3  ;;  %v87_v10 = vpack.c.bf16 %v83_v8, %v83_v8  ;;  %v86_v11 = vpack.c.bf16 %v82_v6, %v81_v5  ;;  %5141 = vmatprep.mubr.msk.bf16.mxu0 %vm130_vm0, %v5986_v9  ;;  %v5987_v13 = vld [vmem:[#allocation5 + $0x8] sm:$0xff]   ;;  %v5988_v14 = vld [vmem:[#allocation5 + $0x10] sm:$0xff]   ;;  %v5989_v15 = vld [vmem:[#allocation5 + $0x18] sm:$0xff]   ;;  %s6364_s4 = smov 48   ;;  %s6365_s22 = smov 16   ;;  %vm1000_vm7 = vcmask 130048  }
  0x4f   :  { %5134 = vmatpush3.bf16.msra.mxu0 %v84_v3  ;;  %v5990_v16 = vld [vmem:[#allocation5 + $0x20] sm:$0xff]   ;;  %v5991_v17 = vld [vmem:[#allocation5 + $0x28] sm:$0xff]   ;;  %v5994_v21 = vld [vmem:[#allocation5 + $0x30] sm:$0xff]   ;;  %s6366_s23 = smov 32   ;;  %s6367_s24 = smov 96   ;;  %vm1002_vm8 = vcmask 261120  }
  0x50   :  { %5135 = vmatprep.subr.bf16.mxu0 %v85_v7  ;;  %v151_v12 = vsel %vm149_vm1, %v87_v10, 0  ;;  %v5992_v18 = vld [vmem:[#allocation5 + $0x40] sm:$0xff]   ;;  %v5993_v19 = vld [vmem:[#allocation5 + $0x48] sm:$0x3f]   ;;  %v5995_v34 = vld [vmem:[#allocation5 + $0x38] sm:$0x3f]  }
  0x51   :  { %5153 = vmatprep.subr.bf16.mxu1 %v5992_v18  ;;  %v268_v20 = vsel %vm6946_vm2, %v5993_v19, 0  ;;  %v337_v36 = vsel %vm6946_vm2, %v5995_v34, 0  ;;  %v5996_v38 = vld [vmem:[#allocation5 + $0x50] sm:$0xff]   ;;  %v5997_v43 = vld [vmem:[#allocation5 + $0x58] sm:$0x3f]   ;;  %v6007_v48 = vld [vmem:[#allocation5 + $0xc0] sm:$0xff]  }
  0x52   :  { %5154 = vmatpush3.bf16.msra.mxu1 %v5992_v18  ;;  %v410_v44 = vsel %vm6946_vm2, %v5997_v43, 0  ;;  %v6003_v46 = vld [vmem:[#allocation5 + $0xb0] sm:$0xff]   ;;  %v6005_v47 = vld [vmem:[#allocation5 + $0xb8] sm:$0xff]   ;;  %v6009_v49 = vld [vmem:[#allocation5 + $0xc8] sm:$0xff]   ;;  %s6368_s25 = smov 80   ;;  %vm1004_vm9 = vcmask 392192  }
  0x53   :  { %5136 = vmatpush3.bf16.msra.mxu0 %v85_v7  ;;  %5954 = vmatprep.subr.msk.bf16.mxu1 %vm6946_vm2, %v5993_v19  ;;  %v4536_v50 = vld [vmem:[#allocation8] ss:$0 sm:$0xff]  ;;  %v6001_v3 = vld [vmem:[#allocation5 + $0x78] sm:$0xff]   ;;  %v5999_v5 = vld [vmem:[#allocation5 + $0x68] sm:$0xff]   ;;  %vm1006_vm10 = vcmask 523264   ;;  %vm1008_vm11 = vcmask 654336  }
  0x54   :  { %5137 = vmatprep.subr.bf16.mxu0 %v86_v11  ;;  %v5998_v2 = vld [vmem:[#allocation5 + $0x60] sm:$0xff]   ;;  %v6004_v6 = vld [vmem:[#allocation5 + $0x88] sm:$0xff]   ;;  %v6006_v7 = vld [vmem:[#allocation5 + $0x90] sm:$0xff]   ;;  %vm1010_vm12 = vcmask 785408   ;;  %vm1170_vm13 = vcmask 1046528   ;;  %vm1160_vm14 = vcmask 113664  }
  0x55   :  { %v6002_v4 = vld [vmem:[#allocation5 + $0x80] sm:$0xff]   ;;  %v6000_v8 = vld [vmem:[#allocation5 + $0x70] sm:$0xff]   ;;  %v6008_v9 = vld [vmem:[#allocation5 + $0x98] sm:$0xff]   ;;  %vm1957_vm15 = vcmask 1041408   ;;  %s6372_s30 = smov 40   ;;  %s6373_s6 = smov 56  }
  0x56   :  { %5156 = vmatpush3.bf16.msra.mxu1 %v268_v20  ;;  %s6374_s0 = smov 72   ;;  %s6375_s7 = smov 88  }
  0x57   :  { %5138 = vmatpush3.bf16.msra.mxu0 %v86_v11  ;;  %5161 = vmatprep.subr.bf16.mxu1 %v5994_v21  ;;  %v6011_v11 = vld [vmem:[#allocation5 + $0xd0] sm:$0xff]   ;;  %s6376_s8 = smov 104  }
  0x58   :  { %5953 = vmatprep.subr.msk.bf16.mxu0 %vm149_vm1, %v87_v10  ;;  %v6010_v10 = vld [vmem:[#allocation5 + $0xa0] sm:$0xff]  }
  0x5b   :  { %5140 = vmatpush3.bf16.msra.mxu0 %v151_v12  ;;  %v6012_v12 = vld [vmem:[#allocation5 + $0xa8] sm:$0xff]  }
  0x5c   :  { %5193 = vmatprep.subr.bf16.mxu0 %v6361_v45 }
  0x5e   :  { %5142 = vmatmul.mubr.msk.bf16.vlgmr.msra.gmra.mrb[0].mxu0 %vm130_vm0, %v5987_v13  ;;  %v6013_v13 = vld [vmem:[#allocation5 + $0xd8] sm:$0xff]  }
  0x5f   :  { %5145 = vmatprep.mubr.msk.bf16.mxu0 %vm130_vm0, %v5988_v14  ;;  %5194 = vmatpush3.bf16.msra.mxu0 %v6003_v46  ;;  %v6014_v14 = vld [vmem:[#allocation5 + $0xe0] sm:$0xff]   ;;  %v888_v46 = vld [vmem:[#allocation8 + $0x38] sm:$0xff] }
  0x60   :  { %5195 = vmatprep.subr.bf16.mxu0 %v6361_v45 }
  0x63   :  { %5196 = vmatpush3.bf16.msra.mxu0 %v6005_v47 }
  0x64   :  { %5197 = vmatprep.subr.bf16.mxu0 %v6361_v45 }
  0x66   :  { %5146 = vmatmul.mubr.msk.bf16.gmra.mrb[4].mxu0 %vm130_vm0, %v5989_v15 }
  0x67   :  { %5149 = vmatprep.mubr.msk.bf16.mxu0 %vm130_vm0, %v5990_v16  ;;  %5198 = vmatpush3.bf16.msra.mxu0 %v6007_v48  ;;  %v889_v48 = vld [vmem:[#allocation8 + $0x40] sm:$0xff] }
  0x68   :  { %5199 = vmatprep.subr.bf16.mxu0 %v6361_v45 }
  0x6b   :  { %5200 = vmatpush3.bf16.msra.mxu0 %v6009_v49  ;;  %v890_v49 = vld [vmem:[#allocation8 + $0x48] sm:$0xff] }
  0x6c   :  { %5201 = vmatprep.subr.bf16.mxu0 %v6361_v45 }
  0x6e   :  { %5150 = vmatmul.mubr.msk.bf16.gmra.mrb[8].mxu0 %vm130_vm0, %v5991_v17 }
  0x6f   :  { %5207 = vmatprep.mubr.msk.bf16.mxu0 %vm6362_vm4, %v6361_v45  ;;  %5202 = vmatpush3.bf16.msra.mxu0 %v6011_v11 }
  0x70   :  { %5203 = vmatprep.subr.bf16.mxu0 %v6361_v45 }
  0x73   :  { %5204 = vmatpush3.bf16.msra.mxu0 %v6013_v13 }
  0x74   :  { %5205 = vmatprep.subr.bf16.mxu0 %v6361_v45 }
  0x77   :  { %5206 = vmatpush3.bf16.msra.mxu0 %v6014_v14 }
  0x78   :  { %5229 = vmatprep.subr.bf16.mxu0 %v6361_v45 }
 0x131   :  { %v5143_v22 = vpop.f32.mrb[0].mxu0 }
 0x132   :  { %v187_v23 = vpop.f32.mrb[1].mxu0 }
 0x133   :  { %v5144_v24 = vpop.f32.mrb[2].mxu0 }
 0x134   :  { %v235_v25 = vpack.c.bf16 %v5144_v24, %v5143_v22  ;;  %v190_v26 = vpop.f32.mrb[3].mxu0 }
 0x135   :  { %v234_v27 = vpack.c.bf16 %v190_v26, %v187_v23  ;;  %v6015_v23 = vld [vmem:[#allocation5 + $0xe8] sm:$0xff]   ;;  %v6016_v26 = vld [vmem:[#allocation5 + $0xf0] sm:$0xff]  }
 0x139   :  { %v5147_v28 = vpop.f32.mrb[4].mxu0 }
 0x13a   :  { %v203_v29 = vpop.f32.mrb[5].mxu0 }
 0x13b   :  { %v5148_v30 = vpop.f32.mrb[6].mxu0 }
 0x13c   :  { %v237_v31 = vpack.c.bf16 %v5148_v30, %v5147_v28  ;;  %v206_v32 = vpop.f32.mrb[7].mxu0 }
 0x13d   :  { %v236_v33 = vpack.c.bf16 %v206_v32, %v203_v29  ;;  %v6017_v29 = vld [vmem:[#allocation5 + $0xf8] sm:$0xff]  }
 0x13f   :  { %5157 = vmatprep.mubr.msk.bf16.mxu1 %vm6947_vm3, %v236_v33  ;;  %v6018_v33 = vld [vmem:[#allocation5 + $0x100] sm:$0xff]  }
 0x140   :  { %5158 = vmatmul.mubr.msk.bf16.vlgmr.msra.gmra.mrb[0].mxu1 %vm6947_vm3, %v237_v31 }
 0x141   :  { %5165 = vmatprep.mubr.msk.bf16.mxu1 %vm6947_vm3, %v234_v27  ;;  %5162 = vmatpush3.bf16.msra.mxu1 %v5994_v21  ;;  %v5151_v35 = vpop.f32.mrb[8].mxu0 }
 0x142   :  { %5955 = vmatprep.subr.msk.bf16.mxu1 %vm6946_vm2, %v5995_v34  ;;  %v219_v37 = vpop.f32.mrb[9].mxu0  ;;  %v6019_v34 = vld [vmem:[#allocation5 + $0x108] sm:$0xff]  }
 0x143   :  { %v5152_v39 = vpop.f32.mrb[10].mxu0 }
 0x144   :  { %v239_v40 = vpack.c.bf16 %v5152_v39, %v5151_v35  ;;  %v222_v41 = vpop.f32.mrb[11].mxu0  ;;  %v6020_v35 = vld [vmem:[#allocation5 + $0x110] sm:$0xff]   ;;  %v885_v39 = vld [vmem:[#allocation8 + $0x20] sm:$0xff] }
 0x145   :  { %5164 = vmatpush3.bf16.msra.mxu1 %v337_v36  ;;  %v238_v42 = vpack.c.bf16 %v222_v41, %v219_v37  ;;  %v6021_v36 = vld [vmem:[#allocation5 + $0x118] sm:$0xff]   ;;  %v883_v37 = vld [vmem:[#allocation8 + $0x10] sm:$0xff] }
 0x146   :  { %5169 = vmatprep.subr.bf16.mxu1 %v5996_v38 }
 0x14c   :  { %5166 = vmatmul.mubr.msk.bf16.vlgmr.msra.gmra.mrb[0].mxu1 %vm6947_vm3, %v235_v25 }
 0x14d   :  { %5170 = vmatpush3.bf16.msra.mxu1 %v5996_v38  ;;  %5173 = vmatprep.mubr.msk.bf16.mxu1 %vm6947_vm3, %v238_v42  ;;  %v884_v38 = vld [vmem:[#allocation8 + $0x18] sm:$0xff]  ;;  %v886_v42 = vld [vmem:[#allocation8 + $0x28] sm:$0xff] }
 0x14e   :  { %5956 = vmatprep.subr.msk.bf16.mxu1 %vm6946_vm2, %v5997_v43  ;;  %v5804_v41 = vpack.c.bf16 %v884_v38, %v883_v37  ;;  %v5807_v43 = vpack.c.bf16 %v886_v42, %v885_v39 }
 0x151   :  { %5172 = vmatpush3.bf16.msra.mxu1 %v410_v44  ;;  %v887_v44 = vld [vmem:[#allocation8 + $0x30] sm:$0xff] }
 0x152   :  { %5177 = vmatprep.subr.bf16.mxu1 %v6361_v45  ;;  %v5810_v47 = vpack.c.bf16 %v888_v46, %v887_v44 }
 0x158   :  { %5174 = vmatmul.mubr.msk.bf16.vlgmr.msra.gmra.mrb[0].mxu1 %vm6947_vm3, %v239_v40  ;;  %v6363_v40 = vmov 0.0|0.0  }
 0x159   :  { %5181 = vmatprep.mubr.msk.bf16.mxu1 %vm6362_vm4, %v6361_v45 }
 0x22b   :  { %v5175_v51 = vpop.f32.mrb[0].mxu1 }
 0x22c   :  { %v472_v52 = vadd.f32 %v5175_v51, %v4536_v50  ;;  %v446_v53 = vpop.f32.mrb[1].mxu1  ;;  %v891_v51 = vld [vmem:[#allocation8 + $0x50] sm:$0xff] }
 0x22d   :  { %v470_v54 = vadd.f32 %v4536_v50, %v446_v53  ;;  %v5176_v55 = vpop.f32.mrb[2].mxu1 }
 0x22e   :  { %v473_v56 = vadd.f32 %v5176_v55, %v4536_v50  ;;  %v449_v57 = vpop.f32.mrb[3].mxu1  ;;  %v476_v59 = vmax.f32 %v472_v52, 0.0  ;;  %v892_v52 = vld [vmem:[#allocation8 + $0x58] sm:$0xff]  ;;  %v894_v55 = vld [vmem:[#allocation8 + $0x68] sm:$0xff] }
 0x22f   :  { %v471_v58 = vadd.f32 %v4536_v50, %v449_v57  ;;  %v474_v61 = vmax.f32 %v470_v54, 0.0  ;;  %v5813_v50 = vpack.c.bf16 %v890_v49, %v889_v48  ;;  %v5816_v53 = vpack.c.bf16 %v892_v52, %v891_v51  ;;  %v893_v54 = vld [vmem:[#allocation8 + $0x60] sm:$0xff]  ;;  %v895_v57 = vld [vmem:[#allocation8 + $0x70] sm:$0xff] }
 0x230   :  { %v477_v60 = vmax.f32 %v473_v56, 0.0  ;;  %v5819_v56 = vpack.c.bf16 %v894_v55, %v893_v54 }
 0x231   :  { %v475_v62 = vmax.f32 %v471_v58, 0.0  ;;  %v896_v58 = vld [vmem:[#allocation8 + $0x78] sm:$0xff] }
 0x232   :  { %v479_v63 = vpack.c.bf16 %v477_v60, %v476_v59  ;;  %v5822_v59 = vpack.c.bf16 %v896_v58, %v895_v57 }
 0x233   :  { %v478_v0 = vpack.c.bf16 %v475_v62, %v474_v61 }
 0x234   :  { %v511_v1 = vsel %vm6946_vm2, %v479_v63, 0  ;;  %vm1953_vm2 = vcmask 31744  }
 0x235   :  { %5178 = vmatpush3.bf16.msra.mxu1 %v478_v0 }
 0x236   :  { %5179 = vmatprep.subr.bf16.mxu1 %v6361_v45 }
 0x239   :  { %5180 = vmatpush3.bf16.msra.mxu1 %v511_v1 }
 0x23a   :  { %5211 = vmatprep.subr.bf16.mxu1 %v6361_v45 }
 0x23c   :  { %5182 = vmatmul.mubr.msk.bf16.vlgmr.msra.gmra.mrb[4].mxu1 %vm6947_vm3, %v5998_v2 }
 0x23d   :  { %5185 = vmatprep.mubr.msk.bf16.mxu1 %vm6362_vm4, %v6361_v45  ;;  %5212 = vmatpush3.bf16.msra.mxu1 %v6001_v3 }
 0x23e   :  { %5213 = vmatprep.subr.bf16.mxu1 %v6361_v45 }
 0x241   :  { %5214 = vmatpush3.bf16.msra.mxu1 %v6002_v4 }
 0x242   :  { %5215 = vmatprep.subr.bf16.mxu1 %v6361_v45 }
 0x244   :  { %5186 = vmatmul.mubr.msk.bf16.gmra.mrb[8].mxu1 %vm6947_vm3, %v5999_v5 }
 0x245   :  { %5189 = vmatprep.mubr.msk.bf16.mxu1 %vm6362_vm4, %v6361_v45  ;;  %5216 = vmatpush3.bf16.msra.mxu1 %v6004_v6 }
 0x246   :  { %5217 = vmatprep.subr.bf16.mxu1 %v6361_v45 }
 0x249   :  { %5218 = vmatpush3.bf16.msra.mxu1 %v6006_v7  ;;  %v4567_v7 = vld [vmem:[#allocation8 + $0x8] ss:$0 sm:$0xff] }
 0x24a   :  { %5219 = vmatprep.subr.bf16.mxu1 %v6361_v45 }
 0x24c   :  { %5190 = vmatmul.mubr.msk.bf16.gmra.mrb[12].mxu1 %vm6947_vm3, %v6000_v8  ;;  %vm2293_vm3 = vcmask 48128  }
 0x24d   :  { %5220 = vmatpush3.bf16.msra.mxu1 %v6008_v9  ;;  %5225 = vmatprep.mubr.msk.bf16.mxu1 %vm6362_vm4, %v6361_v45 }
 0x24e   :  { %5221 = vmatprep.subr.bf16.mxu1 %v6361_v45 }
 0x251   :  { %5222 = vmatpush3.bf16.msra.mxu1 %v6010_v10 }
 0x252   :  { %5223 = vmatprep.subr.bf16.mxu1 %v6361_v45 }
 0x255   :  { %5224 = vmatpush3.bf16.msra.mxu1 %v6012_v12 }
 0x256   :  { %5803 = vmatprep.subr.bf16.mxu1 %v6363_v40 }
 0x30f   :  { %v547_v15 = vpop.f32.mrb[4].mxu1 }
 0x310   :  { %v5183_v16 = vpop.f32.mrb[5].mxu1 }
 0x311   :  { %v550_v17 = vpop.f32.mrb[6].mxu1 }
 0x312   :  { %v570_v18 = vpack.c.bf16 %v550_v17, %v547_v15  ;;  %v5184_v19 = vpop.f32.mrb[7].mxu1 }
 0x314   :  { %5226 = vmatmul.mubr.msk.bf16.vlgmr.msra.gmra.mrb[16].mxu1 %vm643_vm5, %v570_v18 }
 0x315   :  { %5275 = vmatprep.mubr.msk.f32.mxu1 %vm6362_vm4, %v6361_v45  ;;  %5805 = vmatpush3.bf16.msra.mxu1 %v5804_v41 }
 0x316   :  { %5806 = vmatprep.subr.bf16.mxu1 %v6363_v40 }
 0x317   :  { %v555_v20 = vpop.f32.mrb[8].mxu1 }
 0x318   :  { %v5187_v21 = vpop.f32.mrb[9].mxu1 }
 0x319   :  { %v558_v22 = vpop.f32.mrb[10].mxu1  ;;  %5808 = vmatpush3.bf16.msra.mxu1 %v5807_v43 }
 0x31a   :  { %v571_v24 = vpack.c.bf16 %v558_v22, %v555_v20  ;;  %v5188_v25 = vpop.f32.mrb[11].mxu1  ;;  %5809 = vmatprep.subr.bf16.mxu1 %v6363_v40 }
 0x31c   :  { %5208 = vmatmul.mubr.msk.bf16.vlgmr.msra.gmra.mrb[12].mxu0 %vm643_vm5, %v571_v24 }
 0x31d   :  { %5230 = vmatpush3.bf16.msra.mxu0 %v6015_v23  ;;  %5243 = vmatprep.mubr.msk.bf16.mxu0 %vm6362_vm4, %v6361_v45 }
 0x31e   :  { %5231 = vmatprep.subr.bf16.mxu0 %v6361_v45  ;;  %5811 = vmatpush3.bf16.msra.mxu1 %v5810_v47 }
 0x31f   :  { %v563_v27 = vpop.f32.mrb[12].mxu1  ;;  %5812 = vmatprep.subr.bf16.mxu1 %v6363_v40 }
 0x320   :  { %v5191_v28 = vpop.f32.mrb[13].mxu1 }
 0x321   :  { %5232 = vmatpush3.bf16.msra.mxu0 %v6016_v26  ;;  %v566_v30 = vpop.f32.mrb[14].mxu1 }
 0x322   :  { %5233 = vmatprep.subr.bf16.mxu0 %v6361_v45  ;;  %v572_v31 = vpack.c.bf16 %v566_v30, %v563_v27  ;;  %v5192_v32 = vpop.f32.mrb[15].mxu1  ;;  %5814 = vmatpush3.bf16.msra.mxu1 %v5813_v50  ;;  %v1012_v27 = vlaneseq }
 0x323   :  { %5815 = vmatprep.subr.bf16.mxu1 %v6363_v40 }
 0x324   :  { %v6558_v30 = vshrl.u32 %v1012_v27, 7  ;;  %v6023_v27 = vld [vmem:[#allocation5 + $0x128] sm:$0xff]  }
 0x325   :  { %5234 = vmatpush3.bf16.msra.mxu0 %v6017_v29 }
 0x326   :  { %5235 = vmatprep.subr.bf16.mxu0 %v6361_v45  ;;  %5817 = vmatpush3.bf16.msra.mxu1 %v5816_v53  ;;  %v6565_v37 = vsub.s32 0, %v6558_v30 }
 0x327   :  { %5818 = vmatprep.subr.bf16.mxu1 %v6363_v40 }
 0x329   :  { %5236 = vmatpush3.bf16.msra.mxu0 %v6018_v33 }
 0x32a   :  { %5237 = vmatprep.subr.bf16.mxu0 %v6361_v45  ;;  %5820 = vmatpush3.bf16.msra.mxu1 %v5819_v56 }
 0x32b   :  { %5821 = vmatprep.subr.bf16.mxu1 %v6363_v40 }
 0x32d   :  { %5238 = vmatpush3.bf16.msra.mxu0 %v6019_v34 }
 0x32e   :  { %5239 = vmatprep.subr.bf16.mxu0 %v6361_v45  ;;  %5823 = vmatpush3.bf16.msra.mxu1 %v5822_v59 }
 0x32f   :  { %5309 = vmatprep.subr.bf16.mxu1 %v6361_v45 }
 0x331   :  { %5240 = vmatpush3.bf16.msra.mxu0 %v6020_v35 }
 0x332   :  { %5241 = vmatprep.subr.bf16.mxu0 %v6361_v45 }
 0x335   :  { %5242 = vmatpush3.bf16.msra.mxu0 %v6021_v36 }
 0x336   :  { %5824 = vmatprep.subr.bf16.mxu0 %v6363_v40 }
 0x338   :  { %5244 = vmatmul.mubr.msk.bf16.vlgmr.msra.gmra.mrb[16].mxu0 %vm643_vm5, %v572_v31 }
 0x339   :  { %5306 = vmatprep.mubr.msk.f32.mxu0 %vm6362_vm4, %v6361_v45  ;;  %5826 = vmatpush3.bf16.msra.mxu0 %v5804_v41 }
 0x33a   :  { %5827 = vmatprep.subr.bf16.mxu0 %v6363_v40 }
 0x33d   :  { %5829 = vmatpush3.bf16.msra.mxu0 %v5807_v43 }
 0x33e   :  { %5830 = vmatprep.subr.bf16.mxu0 %v6363_v40 }
 0x341   :  { %5832 = vmatpush3.bf16.msra.mxu0 %v5810_v47 }
 0x342   :  { %5833 = vmatprep.subr.bf16.mxu0 %v6363_v40 }
 0x345   :  { %5835 = vmatpush3.bf16.msra.mxu0 %v5813_v50 }
 0x346   :  { %5836 = vmatprep.subr.bf16.mxu0 %v6363_v40 }
 0x349   :  { %5838 = vmatpush3.bf16.msra.mxu0 %v5816_v53 }
 0x34a   :  { %5839 = vmatprep.subr.bf16.mxu0 %v6363_v40 }
 0x34d   :  { %5841 = vmatpush3.bf16.msra.mxu0 %v5819_v56 }
 0x34e   :  { %5842 = vmatprep.subr.bf16.mxu0 %v6363_v40 }
 0x351   :  { %5844 = vmatpush3.bf16.msra.mxu0 %v5822_v59 }
 0x352   :  { %5341 = vmatprep.subr.bf16.mxu0 %v6361_v45 }
 0x3e7   :  { %v767_v60 = vpop.f32.mrb[16].mxu1 }
 0x3e8   :  { %v5227_v61 = vpop.f32.mrb[17].mxu1 }
 0x3e9   :  { %v770_v62 = vpop.f32.mrb[18].mxu1 }
 0x3ea   :  { %v5228_v63 = vpop.f32.mrb[19].mxu1 }
 0x3eb   :  { %v6025_v63 = vld [vmem:[#allocation5 + $0x138] sm:$0xff]  }
 0x3ef   :  { %v681_v0 = vpop.f32.mrb[12].mxu0 }
 0x3f0   :  { %v768_v1 = vadd.f32 %v767_v60, %v681_v0  ;;  %v5209_v2 = vpop.f32.mrb[13].mxu0  ;;  %v6026_v0 = vld [vmem:[#allocation5 + $0x140] sm:$0xff]  }
 0x3f1   :  { %v684_v3 = vpop.f32.mrb[14].mxu0  ;;  %v6030_v2 = vld [vmem:[#allocation5 + $0x150] sm:$0xff]  }
 0x3f2   :  { %v771_v4 = vadd.f32 %v770_v62, %v684_v3  ;;  %v5210_v5 = vpop.f32.mrb[15].mxu0  ;;  %v6032_v3 = vld [vmem:[#allocation5 + $0x158] sm:$0xff]  }
 0x40b   :  { %v867_v6 = vpop.f32.mrb[16].mxu0 }
 0x40c   :  { %v874_v8 = vadd.f32 %v867_v6, %v768_v1  ;;  %v5245_v9 = vpop.f32.mrb[17].mxu0  ;;  %v6028_v1 = vld [vmem:[#allocation5 + $0x148] sm:$0xff]  }
 0x40d   :  { %v870_v10 = vpop.f32.mrb[18].mxu0 }
 0x40e   :  { %v881_v11 = vadd.f32 %v4567_v7, %v874_v8  ;;  %v875_v12 = vadd.f32 %v870_v10, %v771_v4  ;;  %v5246_v13 = vpop.f32.mrb[19].mxu0  ;;  %v6034_v4 = vld [vmem:[#allocation5 + $0x160] sm:$0xff]  }
 0x410   :  { %v882_v14 = vadd.f32 %v4567_v7, %v875_v12  ;;  %v897_v15 = vsel %vm643_vm5, %v881_v11, 0.0 }
 0x412   :  { %v899_v16 = vsel %vm898_vm6, %v882_v14, 0.0 }
 0x413   :  { %v900_v17 = vadd.f32 %v899_v16, %v897_v15 }
 0x415   :  { %v901_v18 = vrot.slane %v900_v17, 4 }
 0x417   :  { %v902_v19 = vadd.f32 %v901_v18, %v900_v17 }
 0x419   :  { %v903_v20 = vrot.slane %v902_v19, 2 }
 0x41b   :  { %v904_v21 = vadd.f32 %v903_v20, %v902_v19 }
 0x41d   :  { %v905_v22 = vrot.slane %v904_v21, 1 }
 0x41f   :  { %v906_v23 = vadd.f32 %v905_v22, %v904_v21 }
 0x421   :  { %5276 = vmatmul.mubr.msk.f32.vlgmr.msra.gmra.mrb[20].mxu1 %vm643_vm5, %v906_v23 }
 0x422   :  { %5311 = vmatprep.mubr.msk.bf16.mxu1 %vm6362_vm4, %v6361_v45 }
 0x4f4   :  { %v976_v24 = vpop.f32.mrb[20].mxu1 }
 0x4f5   :  { %v980_v25 = vmul.f32 0.010204081, %v976_v24  ;;  %v5277_v26 = vpop.f32.mrb[21].mxu1  ;;  %v6022_v24 = vld [vmem:[#allocation5 + $0x120] sm:$0xff]  }
 0x4f6   :  { %v6029_v26 = vld [vmem:[#allocation5 + $0x178] sm:$0xff]  }
 0x4f7   :  { %988 = vrot.lane.b32.xlu1 %v980_v25, %s6364_s4  ;;  %982 = vrot.lane.b32.xlu0 %v980_v25, %s6365_s22 }
 0x4fb   :  { %991 = vrot.lane.b32.xlu1 %v980_v25, %s6352_s28  ;;  %985 = vrot.lane.b32.xlu0 %v980_v25, %s6366_s23 }
 0x4ff   :  { %997 = vrot.lane.b32.xlu1 %v980_v25, %s6367_s24  ;;  %994 = vrot.lane.b32.xlu0 %v980_v25, %s6368_s25 }
 0x569   :  { %v989_v28 = vpop.permute.xlu1 %988  ;;  %v983_v29 = vpop.permute.xlu0 %982 }
 0x56a   :  { %v1001_v31 = vsel %vm1000_vm7, %v980_v25, %v983_v29  ;;  %v6027_v25 = vld [vmem:[#allocation5 + $0x170] sm:$0xff]   ;;  %v6033_v29 = vld [vmem:[#allocation5 + $0x188] sm:$0xff]  }
 0x56d   :  { %v992_v32 = vpop.permute.xlu1 %991  ;;  %v986_v33 = vpop.permute.xlu0 %985 }
 0x56e   :  { %v1003_v34 = vsel %vm1002_vm8, %v1001_v31, %v986_v33  ;;  %v6024_v31 = vld [vmem:[#allocation5 + $0x130] sm:$0xff]   ;;  %v6036_v33 = vld [vmem:[#allocation5 + $0x168] sm:$0xff]  }
 0x56f   :  { %v1005_v35 = vsel %vm1004_vm9, %v1003_v34, %v989_v28  ;;  %v6031_v28 = vld [vmem:[#allocation5 + $0x180] sm:$0xff]   ;;  %v6037_v34 = vld [vmem:[#allocation5 + $0x198] sm:$0xff]  }
 0x570   :  { %v1007_v36 = vsel %vm1006_vm10, %v1005_v35, %v992_v32  ;;  %v6035_v32 = vld [vmem:[#allocation5 + $0x190] sm:$0xff]   ;;  %v6038_v35 = vld [vmem:[#allocation5 + $0x1a0] sm:$0xff]  }
 0x571   :  { %v998_v38 = vpop.permute.xlu1 %997  ;;  %v995_v39 = vpop.permute.xlu0 %994 }
 0x572   :  { %v1009_v41 = vsel %vm1008_vm11, %v1007_v36, %v995_v39 }
 0x573   :  { %v1011_v42 = vsel %vm1010_vm12, %v1009_v41, %v998_v38 }
 0x574   :  { %v1015_v43 = vrot.slane %v1011_v42, %v6565_v37 }
 0x576   :  { %v1016_v44 = vsub.f32 %v881_v11, %v1015_v43  ;;  %v1017_v46 = vsub.f32 %v882_v14, %v1015_v43 }
 0x578   :  { %v1018_v47 = vmul.f32 %v1016_v44, %v1016_v44  ;;  %v1019_v48 = vmul.f32 %v1017_v46, %v1017_v46 }
 0x57a   :  { %v1020_v49 = vsel %vm643_vm5, %v1018_v47, 0.0  ;;  %v1021_v50 = vsel %vm898_vm6, %v1019_v48, 0.0  ;;  %v6039_v47 = vld [vmem:[#allocation5 + $0x1a8] sm:$0xff]  }
 0x57b   :  { %v1022_v51 = vadd.f32 %v1021_v50, %v1020_v49  ;;  %v6040_v50 = vld [vmem:[#allocation5 + $0x1b0] sm:$0xff]  }
 0x57d   :  { %v1023_v52 = vrot.slane %v1022_v51, 4 }
 0x57f   :  { %v1024_v53 = vadd.f32 %v1023_v52, %v1022_v51 }
 0x581   :  { %v1025_v54 = vrot.slane %v1024_v53, 2 }
 0x583   :  { %v1026_v55 = vadd.f32 %v1025_v54, %v1024_v53  ;;  %v6041_v53 = vld [vmem:[#allocation5 + $0x1b8] sm:$0xff]  }
 0x585   :  { %v1027_v56 = vrot.slane %v1026_v55, 1 }
 0x587   :  { %v1028_v57 = vadd.f32 %v1027_v56, %v1026_v55 }
 0x589   :  { %5307 = vmatmul.mubr.msk.f32.vlgmr.msra.gmra.mrb[20].mxu0 %vm643_vm5, %v1028_v57  ;;  %v6042_v57 = vld [vmem:[#allocation5 + $0x1c0] sm:$0xff]  }
 0x58a   :  { %5355 = vmatprep.mubr.msk.bf16.mxu0 %vm6362_vm4, %v6361_v45  ;;  %5342 = vmatpush3.bf16.msra.mxu0 %v6025_v63  ;;  %v6048_v63 = vld [vmem:[#allocation5 + $0x498] sm:$0xff]  }
 0x58b   :  { %5343 = vmatprep.subr.bf16.mxu0 %v6361_v45 }
 0x58e   :  { %5344 = vmatpush3.bf16.msra.mxu0 %v6026_v0  ;;  %v6049_v0 = vld [vmem:[#allocation5 + $0x4e0] sm:$0xff]  }
 0x58f   :  { %5345 = vmatprep.subr.bf16.mxu0 %v6361_v45 }
 0x592   :  { %5346 = vmatpush3.bf16.msra.mxu0 %v6028_v1  ;;  %v6050_v1 = vld [vmem:[#allocation5 + $0x520] sm:$0xff]  }
 0x593   :  { %5347 = vmatprep.subr.bf16.mxu0 %v6361_v45 }
 0x596   :  { %5348 = vmatpush3.bf16.msra.mxu0 %v6030_v2  ;;  %v6051_v2 = vld [vmem:[#allocation5 + $0x4a0] sm:$0xff]  }
 0x597   :  { %5349 = vmatprep.subr.bf16.mxu0 %v6361_v45 }
 0x59a   :  { %5350 = vmatpush3.bf16.msra.mxu0 %v6032_v3  ;;  %v6052_v3 = vld [vmem:[#allocation5 + $0x4e8] sm:$0xff]  }
 0x59b   :  { %5351 = vmatprep.subr.bf16.mxu0 %v6361_v45 }
 0x59e   :  { %5352 = vmatpush3.bf16.msra.mxu0 %v6034_v4  ;;  %v6053_v4 = vld [vmem:[#allocation5 + $0x528] sm:$0xff]  }
 0x59f   :  { %5353 = vmatprep.subr.bf16.mxu0 %v6361_v45 }
 0x5a2   :  { %5354 = vmatpush3.bf16.msra.mxu0 %v6036_v33 }
 0x65c   :  { %v1098_v58 = vpop.f32.mrb[20].mxu0 }
 0x65d   :  { %v1102_v59 = vmul.f32 0.010204081, %v1098_v58  ;;  %v5308_v60 = vpop.f32.mrb[21].mxu0  ;;  %v6043_v58 = vld [vmem:[#allocation5 + $0x1c8] sm:$0xff]  }
 0x65e   :  { %v6045_v60 = vld [vmem:[#allocation5 + $0x1d8] sm:$0xff]  }
 0x65f   :  { %v1103_v61 = vadd.f32 1e-05, %v1102_v59  ;;  %v6044_v59 = vld [vmem:[#allocation5 + $0x1d0] sm:$0xff]  }
 0x661   :  { %6197 = vrsqrt.f32 %v1103_v61  ;;  %v6046_v61 = vld [vmem:[#allocation5 + $0x4d8] sm:$0xff]  }
 0x662   :  { %4910 = vmatprep.subr.bf16.mxu0 %v6046_v61 }
 0x66b   :  { %v6198_v62 = vpop.eup %6197 }
 0x66c   :  { %1109 = vrot.lane.b32.xlu1 %v6198_v62, %s6366_s23  ;;  %1106 = vrot.lane.b32.xlu0 %v6198_v62, %s6365_s22 }
 0x670   :  { %1115 = vrot.lane.b32.xlu1 %v6198_v62, %s6352_s28  ;;  %1112 = vrot.lane.b32.xlu0 %v6198_v62, %s6364_s4 }
 0x674   :  { %1121 = vrot.lane.b32.xlu1 %v6198_v62, %s6367_s24  ;;  %1118 = vrot.lane.b32.xlu0 %v6198_v62, %s6368_s25 }
 0x6de   :  { %v1110_v5 = vpop.permute.xlu1 %1109  ;;  %v1107_v6 = vpop.permute.xlu0 %1106 }
 0x6df   :  { %v1124_v7 = vsel %vm1000_vm7, %v6198_v62, %v1107_v6  ;;  %v6047_v62 = vld [vmem:[#allocation5 + $0x518] sm:$0xff]   ;;  %v6055_v6 = vld [vmem:[#allocation5 + $0x4f0] sm:$0xff]  }
 0x6e0   :  { %v1125_v9 = vsel %vm1002_vm8, %v1124_v7, %v1110_v5  ;;  %v6054_v5 = vld [vmem:[#allocation5 + $0x4a8] sm:$0xff]   ;;  %v6056_v7 = vld [vmem:[#allocation5 + $0x530] sm:$0xff]  }
 0x6e2   :  { %v1116_v8 = vpop.permute.xlu1 %1115  ;;  %v1113_v10 = vpop.permute.xlu0 %1112 }
 0x6e3   :  { %v1126_v11 = vsel %vm1004_vm9, %v1125_v9, %v1113_v10  ;;  %v6058_v9 = vld [vmem:[#allocation5 + $0x4f8] sm:$0xff]  }
 0x6e4   :  { %v1127_v13 = vsel %vm1006_vm10, %v1126_v11, %v1116_v8  ;;  %v6057_v8 = vld [vmem:[#allocation5 + $0x4b0] sm:$0xff]   ;;  %v6059_v10 = vld [vmem:[#allocation5 + $0x538] sm:$0xff]  }
 0x6e5   :  { %v6060_v11 = vld [vmem:[#allocation5 + $0x4b8] sm:$0xff]  }
 0x6e6   :  { %v1122_v12 = vpop.permute.xlu1 %1121  ;;  %v1119_v14 = vpop.permute.xlu0 %1118 }
 0x6e7   :  { %v1128_v15 = vsel %vm1008_vm11, %v1127_v13, %v1119_v14  ;;  %v6062_v13 = vld [vmem:[#allocation5 + $0x540] sm:$0xff]  }
 0x6e8   :  { %v1129_v16 = vsel %vm1010_vm12, %v1128_v15, %v1122_v12  ;;  %v6061_v12 = vld [vmem:[#allocation5 + $0x500] sm:$0xff]   ;;  %v6064_v15 = vld [vmem:[#allocation5 + $0x508] sm:$0xff]  }
 0x6e9   :  { %v1133_v17 = vrot.slane %v1129_v16, %v6565_v37  ;;  %v6063_v14 = vld [vmem:[#allocation5 + $0x4c0] sm:$0xff]   ;;  %v6065_v16 = vld [vmem:[#allocation5 + $0x548] sm:$0xff]  }
 0x6eb   :  { %v1134_v18 = vmul.f32 %v1133_v17, %v1016_v44  ;;  %v1135_v19 = vmul.f32 %v1133_v17, %v1017_v46  ;;  %v6066_v17 = vld [vmem:[#allocation5 + $0x4c8] sm:$0xff]  }
 0x6ed   :  { %v1136_v20 = vmax.f32 %v1134_v18, 0.0  ;;  %v1137_v21 = vmax.f32 %v1135_v19, 0.0  ;;  %v6067_v18 = vld [vmem:[#allocation5 + $0x510] sm:$0xff]  }
 0x6ee   :  { %v6068_v19 = vld [vmem:[#allocation5 + $0x550] sm:$0xff]  }
 0x6ef   :  { %v1138_v22 = vpack.c.bf16 %v1137_v21, %v1136_v20  ;;  %v6069_v20 = vld [vmem:[#allocation5 + $0x4d0] sm:$0xff]  }
 0x6f1   :  { %v1172_v23 = vsel %vm1170_vm13, %v1138_v22, 0 }
 0x6f2   :  { %5310 = vmatpush3.bf16.msra.mxu1 %v1172_v23 }
 0x6f3   :  { %5323 = vmatprep.subr.bf16.mxu1 %v6361_v45 }
 0x6f5   :  { %5312 = vmatmul.mubr.msk.bf16.vlgmr.msra.gmra.mrb[24].mxu1 %vm1160_vm14, %v6022_v24 }
 0x6f6   :  { %5315 = vmatprep.mubr.msk.bf16.mxu1 %vm6362_vm4, %v6361_v45  ;;  %5324 = vmatpush3.bf16.msra.mxu1 %v6027_v25 }
 0x6f7   :  { %5325 = vmatprep.subr.bf16.mxu1 %v6361_v45 }
 0x6fa   :  { %5326 = vmatpush3.bf16.msra.mxu1 %v6029_v26 }
 0x6fb   :  { %5327 = vmatprep.subr.bf16.mxu1 %v6361_v45 }
 0x6fd   :  { %5316 = vmatmul.mubr.msk.bf16.gmra.mrb[28].mxu1 %vm1160_vm14, %v6023_v27 }
 0x6fe   :  { %5319 = vmatprep.mubr.msk.bf16.mxu1 %vm6362_vm4, %v6361_v45  ;;  %5328 = vmatpush3.bf16.msra.mxu1 %v6031_v28 }
 0x6ff   :  { %5329 = vmatprep.subr.bf16.mxu1 %v6361_v45 }
 0x702   :  { %5330 = vmatpush3.bf16.msra.mxu1 %v6033_v29 }
 0x703   :  { %5331 = vmatprep.subr.bf16.mxu1 %v6361_v45 }
 0x705   :  { %5320 = vmatmul.mubr.msk.bf16.gmra.mrb[32].mxu1 %vm1160_vm14, %v6024_v31 }
 0x706   :  { %5337 = vmatprep.mubr.msk.bf16.mxu1 %vm6362_vm4, %v6361_v45  ;;  %5332 = vmatpush3.bf16.msra.mxu1 %v6035_v32  ;;  %v4600_v32 = vld [vmem:[#allocation8 + $0x80] ss:$0 sm:$0xff] }
 0x707   :  { %5333 = vmatprep.subr.bf16.mxu1 %v6361_v45 }
 0x70a   :  { %5334 = vmatpush3.bf16.msra.mxu1 %v6037_v34 }
 0x70b   :  { %5335 = vmatprep.subr.bf16.mxu1 %v6361_v45 }
 0x70e   :  { %5336 = vmatpush3.bf16.msra.mxu1 %v6038_v35 }
 0x70f   :  { %5359 = vmatprep.subr.bf16.mxu1 %v6361_v45 }
 0x7c8   :  { %v1208_v36 = vpop.f32.mrb[24].mxu1 }
 0x7c9   :  { %v5313_v38 = vpop.f32.mrb[25].mxu1 }
 0x7ca   :  { %v1211_v39 = vpop.f32.mrb[26].mxu1 }
 0x7cb   :  { %v1231_v41 = vpack.c.bf16 %v1211_v39, %v1208_v36  ;;  %v5314_v42 = vpop.f32.mrb[27].mxu1 }
 0x7cd   :  { %5356 = vmatmul.mubr.msk.bf16.vlgmr.msra.gmra.mrb[24].mxu0 %vm643_vm5, %v1231_v41 }
 0x7ce   :  { %4911 = vmatpush3.bf16.msra.mxu0 %v6048_v63 }
 0x7cf   :  { %4912 = vmatprep.subr.bf16.mxu0 %v6049_v0 }
 0x7d0   :  { %v1216_v43 = vpop.f32.mrb[28].mxu1 }
 0x7d1   :  { %v5317_v44 = vpop.f32.mrb[29].mxu1 }
 0x7d2   :  { %v1219_v46 = vpop.f32.mrb[30].mxu1  ;;  %4913 = vmatpush3.bf16.msra.mxu0 %v6051_v2  ;;  %v6070_v44 = vld [vmem:[#allocation5 + $0x558] sm:$0xff]  }
 0x7d3   :  { %v1232_v48 = vpack.c.bf16 %v1219_v46, %v1216_v43  ;;  %v5318_v49 = vpop.f32.mrb[31].mxu1  ;;  %4914 = vmatprep.subr.bf16.mxu0 %v6052_v3  ;;  %v6071_v46 = vld [vmem:[#allocation5 + $0x560] sm:$0xff]  }
 0x7d4   :  { %v6074_v49 = vld [vmem:[#allocation5 + $0x578] sm:$0xff]  }
 0x7d5   :  { %5338 = vmatmul.mubr.msk.bf16.vlgmr.msra.gmra.mrb[36].mxu1 %vm643_vm5, %v1232_v48  ;;  %v6073_v48 = vld [vmem:[#allocation5 + $0x570] sm:$0xff]  }
 0x7d6   :  { %5360 = vmatpush3.bf16.msra.mxu1 %v6039_v47  ;;  %5373 = vmatprep.mubr.msk.bf16.mxu1 %vm6362_vm4, %v6361_v45  ;;  %v6072_v47 = vld [vmem:[#allocation5 + $0x568] sm:$0xff]  }
 0x7d7   :  { %5361 = vmatprep.subr.bf16.mxu1 %v6361_v45  ;;  %4915 = vmatpush3.bf16.msra.mxu0 %v6054_v5 }
 0x7d8   :  { %v1224_v51 = vpop.f32.mrb[32].mxu1  ;;  %4916 = vmatprep.subr.bf16.mxu0 %v6055_v6 }
 0x7d9   :  { %v5321_v52 = vpop.f32.mrb[33].mxu1 }
 0x7da   :  { %5362 = vmatpush3.bf16.msra.mxu1 %v6040_v50  ;;  %v1227_v54 = vpop.f32.mrb[34].mxu1  ;;  %v6075_v50 = vld [vmem:[#allocation5 + $0x580] sm:$0xff]   ;;  %v6077_v52 = vld [vmem:[#allocation5 + $0x590] sm:$0xff]  }
 0x7db   :  { %5363 = vmatprep.subr.bf16.mxu1 %v6361_v45  ;;  %v1233_v55 = vpack.c.bf16 %v1227_v54, %v1224_v51  ;;  %v5322_v56 = vpop.f32.mrb[35].mxu1  ;;  %4917 = vmatpush3.bf16.msra.mxu0 %v6057_v8  ;;  %v6076_v51 = vld [vmem:[#allocation5 + $0x588] sm:$0xff]  }
 0x7dc   :  { %4918 = vmatprep.subr.bf16.mxu0 %v6058_v9 }
 0x7de   :  { %5364 = vmatpush3.bf16.msra.mxu1 %v6041_v53  ;;  %v1935_v53 = vld [vmem:[%s6941_s1] sm:$0x3]  ;;  %s6369_s1 = smov 124  }
 0x7df   :  { %5365 = vmatprep.subr.bf16.mxu1 %v6361_v45  ;;  %4919 = vmatpush3.bf16.msra.mxu0 %v6060_v11  ;;  %v1947_v11 = vld [vmem:[#allocation5 + $0x598] sm:$0x3] }
 0x7e0   :  { %4920 = vmatprep.subr.bf16.mxu0 %v6061_v12  ;;  %1937 = vrot.lane.b32.xlu0 %v1935_v53, %s6353_s29  ;;  %v1959_v12 = vsel %vm1957_vm15, %v1947_v11, 0  ;;  %s6371_s29 = smov 24  }
 0x7e2   :  { %5366 = vmatpush3.bf16.msra.mxu1 %v6042_v57  ;;  %v4601_v57 = vld [vmem:[#allocation8 + $0x180] ss:$0 sm:$0xff] }
 0x7e3   :  { %5367 = vmatprep.subr.bf16.mxu1 %v6361_v45  ;;  %4921 = vmatpush3.bf16.msra.mxu0 %v6063_v14  ;;  %v6081_v14 = vld [vmem:[#allocation7 + $0x8] ss:$12 sps:$4 sm:$0xff]  }
 0x7e4   :  { %4922 = vmatprep.subr.bf16.mxu0 %v6064_v15 }
 0x7e6   :  { %5368 = vmatpush3.bf16.msra.mxu1 %v6043_v58 }
 0x7e7   :  { %5369 = vmatprep.subr.bf16.mxu1 %v6361_v45  ;;  %4923 = vmatpush3.bf16.msra.mxu0 %v6066_v17 }
 0x7e8   :  { %4924 = vmatprep.subr.bf16.mxu0 %v6067_v18 }
 0x7ea   :  { %5370 = vmatpush3.bf16.msra.mxu1 %v6044_v59 }
 0x7eb   :  { %5371 = vmatprep.subr.bf16.mxu1 %v6361_v45  ;;  %4925 = vmatpush3.bf16.msra.mxu0 %v6069_v20  ;;  %v6093_v20 = vld [vmem:[#allocation7 + $0x50] ss:$12 sps:$4 sm:$0xff]  }
 0x7ec   :  { %5397 = vmatprep.subr.bf16.mxu0 %v6361_v45 }
 0x7ee   :  { %5372 = vmatpush3.bf16.msra.mxu1 %v6045_v60 }
 0x7ef   :  { %5377 = vmatprep.subr.bf16.mxu1 %v6361_v45 }
 0x7f1   :  { %5374 = vmatmul.mubr.msk.bf16.vlgmr.msra.gmra.mrb[40].mxu1 %vm643_vm5, %v1233_v55 }
 0x7f2   :  { %5393 = vmatprep.mubr.msk.bf16.mxu1 %vm6362_vm4, %v6361_v45  ;;  %5378 = vmatpush3.bf16.msra.mxu1 %v6047_v62 }
 0x7f3   :  { %5379 = vmatprep.subr.bf16.mxu1 %v6361_v45 }
 0x7f6   :  { %5380 = vmatpush3.bf16.msra.mxu1 %v6050_v1 }
 0x7f7   :  { %5381 = vmatprep.subr.bf16.mxu1 %v6361_v45 }
 0x7fa   :  { %5382 = vmatpush3.bf16.msra.mxu1 %v6053_v4  ;;  %v4626_v4 = vld [vmem:[#allocation8 + $0x188] ss:$0 sm:$0xff] }
 0x7fb   :  { %5383 = vmatprep.subr.bf16.mxu1 %v6361_v45 }
 0x7fe   :  { %5384 = vmatpush3.bf16.msra.mxu1 %v6056_v7 }
 0x7ff   :  { %5385 = vmatprep.subr.bf16.mxu1 %v6361_v45 }
 0x802   :  { %5386 = vmatpush3.bf16.msra.mxu1 %v6059_v10 }
 0x803   :  { %5387 = vmatprep.subr.bf16.mxu1 %v6361_v45 }
 0x806   :  { %5388 = vmatpush3.bf16.msra.mxu1 %v6062_v13  ;;  %v6080_v13 = vld [vmem:[#allocation7 + $0x4] ss:$12 sps:$4 sm:$0xff]  }
 0x807   :  { %5389 = vmatprep.subr.bf16.mxu1 %v6361_v45 }
 0x80a   :  { %5390 = vmatpush3.bf16.msra.mxu1 %v6065_v16  ;;  %v6085_v16 = vld [vmem:[#allocation7 + $0x20] ss:$12 sps:$4 sm:$0xff]  }
 0x80b   :  { %5391 = vmatprep.subr.bf16.mxu1 %v6361_v45 }
 0x80e   :  { %5392 = vmatpush3.bf16.msra.mxu1 %v6068_v19  ;;  %v6089_v19 = vld [vmem:[#allocation7 + $0x38] ss:$12 sps:$4 sm:$0xff]  }
 0x80f   :  { %5417 = vmatprep.subr.bf16.mxu1 %v6361_v45 }
 0x852   :  { %v1938_v15 = vpop.permute.xlu0 %1937 }
 0x8a0   :  { %v1426_v21 = vpop.f32.mrb[24].mxu0 }
 0x8a1   :  { %v5357_v22 = vpop.f32.mrb[25].mxu0 }
 0x8a2   :  { %v1429_v23 = vpop.f32.mrb[26].mxu0  ;;  %v6101_v22 = vld [vmem:[#allocation7 + $0x80] ss:$12 sps:$4 sm:$0xff]  }
 0x8a3   :  { %v5358_v24 = vpop.f32.mrb[27].mxu0 }
 0x8a8   :  { %v1341_v25 = vpop.f32.mrb[36].mxu1 }
 0x8a9   :  { %v1427_v26 = vadd.f32 %v1426_v21, %v1341_v25  ;;  %v5339_v27 = vpop.f32.mrb[37].mxu1  ;;  %v6097_v21 = vld [vmem:[#allocation7 + $0x68] ss:$12 sps:$4 sm:$0xff]   ;;  %v6078_v25 = vld [vmem:[#allocation7] ss:$12 sps:$4 sm:$0xff]  }
 0x8aa   :  { %v1344_v28 = vpop.f32.mrb[38].mxu1  ;;  %v6084_v27 = vld [vmem:[#allocation7 + $0x1c] ss:$12 sps:$4 sm:$0xff]  }
 0x8ab   :  { %v5340_v29 = vpop.f32.mrb[39].mxu1  ;;  %v6082_v28 = vld [vmem:[#allocation7 + $0x18] ss:$12 sps:$4 sm:$0xff]  }
 0x8ac   :  { %v6088_v29 = vld [vmem:[#allocation7 + $0x34] ss:$12 sps:$4 sm:$0xff]  }
 0x8c4   :  { %v1525_v31 = vpop.f32.mrb[40].mxu1 }
 0x8c5   :  { %v1531_v33 = vadd.f32 %v1525_v31, %v1427_v26  ;;  %v5375_v34 = vpop.f32.mrb[41].mxu1  ;;  %v6086_v31 = vld [vmem:[#allocation7 + $0x30] ss:$12 sps:$4 sm:$0xff]  }
 0x8c6   :  { %v1528_v35 = vpop.f32.mrb[42].mxu1  ;;  %v6096_v34 = vld [vmem:[#allocation7 + $0x64] ss:$12 sps:$4 sm:$0xff]  }
 0x8c7   :  { %v1537_v36 = vadd.f32 %v4600_v32, %v1531_v33  ;;  %v5376_v38 = vpop.f32.mrb[43].mxu1  ;;  %v6092_v32 = vld [vmem:[#allocation7 + $0x4c] ss:$12 sps:$4 sm:$0xff]   ;;  %v6090_v33 = vld [vmem:[#allocation7 + $0x48] ss:$12 sps:$4 sm:$0xff]  }
 0x8c8   :  { %v6094_v35 = vld [vmem:[#allocation7 + $0x60] ss:$12 sps:$4 sm:$0xff]   ;;  %v6098_v38 = vld [vmem:[#allocation7 + $0x78] ss:$12 sps:$4 sm:$0xff]  }
 0x8c9   :  { %v1538_v39 = vmax.f32 %v1537_v36, 0.0  ;;  %v6100_v36 = vld [vmem:[#allocation7 + $0x7c] ss:$12 sps:$4 sm:$0xff]  }
 0x8cb   :  { %v1539_v41 = vpack.c.bf16 %v1538_v39, %v1538_v39  ;;  %v6104_v39 = vld [vmem:[#allocation7 + $0x94] ss:$12 sps:$4 sm:$0xff]  }
 0x8cd   :  { %v1541_v42 = vrot.slane %v1539_v41, 1  ;;  %v1543_v43 = vrot.slane %v1539_v41, 2 }
 0x8cf   :  { %1774 = vmatprep.mubr.bf16.mxu0 %v1541_v42  ;;  %5394 = vmatmul.mubr.bf16.vlgmr.msra.gmra.mrb[44].mxu1 %v1543_v43  ;;  %v6105_v42 = vld [vmem:[#allocation7 + $0x98] ss:$12 sps:$4 sm:$0xff]  }
 0x8d0   :  { %1775 = vmatmul.mubr.bf16.vlgmr.msra.gmra.mrb[28].mxu0 %v1539_v41  ;;  %5419 = vmatprep.mubr.msk.bf16.mxu1 %vm6362_vm4, %v6361_v45  ;;  %v6102_v41 = vld [vmem:[#allocation7 + $0x90] ss:$12 sps:$4 sm:$0xff]   ;;  %v6108_v43 = vld [vmem:[#allocation7 + $0xac] ss:$12 sps:$4 sm:$0xff]  }
 0x8d1   :  { %5398 = vmatpush3.bf16.msra.mxu0 %v6070_v44  ;;  %5413 = vmatprep.mubr.msk.bf16.mxu0 %vm6362_vm4, %v6361_v45  ;;  %v6106_v44 = vld [vmem:[#allocation7 + $0xa8] ss:$12 sps:$4 sm:$0xff]  }
 0x8d2   :  { %5399 = vmatprep.subr.bf16.mxu0 %v6361_v45  ;;  %5418 = vmatpush3.bf16.msra.mxu1 %v1959_v12 }
 0x8d3   :  { %2163 = vmatprep.subr.bf16.mxu1 %v6080_v13 }
 0x8d5   :  { %5400 = vmatpush3.bf16.msra.mxu0 %v6071_v46  ;;  %v6109_v46 = vld [vmem:[#allocation7 + $0xb0] ss:$12 sps:$4 sm:$0xff]  }
 0x8d6   :  { %5401 = vmatprep.subr.bf16.mxu0 %v6361_v45 }
 0x8d9   :  { %5402 = vmatpush3.bf16.msra.mxu0 %v6072_v47  ;;  %v6370_v47 = vmov 0  }
 0x8da   :  { %5403 = vmatprep.subr.bf16.mxu0 %v6361_v45 }
 0x8dd   :  { %5404 = vmatpush3.bf16.msra.mxu0 %v6073_v48  ;;  %v4635_v48 = vld [vmem:[#allocation8 + $0x190] ss:$0 sm:$0xff] }
 0x8de   :  { %5405 = vmatprep.subr.bf16.mxu0 %v6361_v45 }
 0x8e1   :  { %5406 = vmatpush3.bf16.msra.mxu0 %v6074_v49 }
 0x8e2   :  { %5407 = vmatprep.subr.bf16.mxu0 %v6361_v45 }
 0x8e5   :  { %5408 = vmatpush3.bf16.msra.mxu0 %v6075_v50 }
 0x8e6   :  { %5409 = vmatprep.subr.bf16.mxu0 %v6361_v45 }
 0x8e9   :  { %5410 = vmatpush3.bf16.msra.mxu0 %v6076_v51 }
 0x8ea   :  { %5411 = vmatprep.subr.bf16.mxu0 %v6361_v45 }
 0x8ed   :  { %5412 = vmatpush3.bf16.msra.mxu0 %v6077_v52 }
 0x8ee   :  { %5423 = vmatprep.subr.bf16.mxu0 %v6361_v45 }
 0x9a2   :  { %v1816_v54 = vpop.f32.mrb[44].mxu1 }
 0x9a3   :  { %v4926_v55 = vpop.f32.mrb[28].mxu0  ;;  %v5395_v56 = vpop.f32.mrb[45].mxu1 }
 0x9a4   :  { %v4927_v58 = vpop.f32.mrb[29].mxu0  ;;  %v1819_v59 = vpop.f32.mrb[46].mxu1  ;;  %v6115_v56 = vld [vmem:[#allocation5 + $0x238] sm:$0xff]  }
 0x9a5   :  { %v4928_v60 = vadd.f32 %v4927_v58, %v4926_v55  ;;  %v4929_v61 = vpop.f32.mrb[30].mxu0  ;;  %v5396_v62 = vpop.f32.mrb[47].mxu1  ;;  %v6119_v58 = vld [vmem:[#allocation5 + $0x248] sm:$0xff]   ;;  %v6121_v59 = vld [vmem:[#allocation5 + $0x250] sm:$0xff]  }
 0x9a6   :  { %v4930_v63 = vpop.f32.mrb[31].mxu0  ;;  %v2259_v61 = vsub.s32 2, %v6558_v30  ;;  %v2244_v62 = vld [vmem:[#allocation8 + $0x198] sm:$0x7] }
 0x9a7   :  { %v1777_v0 = vadd.f32 %v4928_v60, %v4601_v57  ;;  %v6117_v57 = vld [vmem:[#allocation5 + $0x240] sm:$0xff]   ;;  %v6123_v60 = vld [vmem:[#allocation5 + $0x258] sm:$0xff]   ;;  %v2253_v63 = vsub.s32 1, %v6558_v30 }
 0x9a9   :  { %v1817_v1 = vadd.f32 %v1816_v54, %v1777_v0  ;;  %v2260_v0 = vrot.slane %v2244_v62, %v2259_v61  ;;  %v6135_v61 = vld [vmem:[#allocation5 + $0x2a8] sm:$0xff]  }
 0x9ab   :  { %v1822_v2 = vmax.f32 %v1817_v1, 0.0  ;;  %v2248_v1 = vrot.slane %v2244_v62, %v6565_v37 }
 0x9ad   :  { %v1823_v3 = vpack.c.bf16 %v1822_v2, %v1822_v2  ;;  %v2254_v2 = vrot.slane %v2244_v62, %v2253_v63  ;;  %v6136_v62 = vld [vmem:[#allocation5 + $0x2b0] sm:$0xff]  }
 0x9ae   :  { %v2691_v63 = vld [vmem:[#allocation8 + $0x90] sm:$0xff] }
 0x9af   :  { %5414 = vmatmul.mubr.bf16.vlgmr.msra.gmra.mrb[32].mxu0 %v1823_v3 }
 0x9b0   :  { %5439 = vmatprep.mubr.msk.bf16.mxu0 %vm6362_vm4, %v6361_v45  ;;  %5424 = vmatpush3.bf16.msra.mxu0 %v6081_v14 }
 0x9b1   :  { %5425 = vmatprep.subr.bf16.mxu0 %v6361_v45 }
 0x9b4   :  { %5426 = vmatpush3.bf16.msra.mxu0 %v6085_v16 }
 0x9b5   :  { %5427 = vmatprep.subr.bf16.mxu0 %v6361_v45 }
 0x9b8   :  { %5428 = vmatpush3.bf16.msra.mxu0 %v6089_v19 }
 0x9b9   :  { %5429 = vmatprep.subr.bf16.mxu0 %v6361_v45 }
 0x9bc   :  { %5430 = vmatpush3.bf16.msra.mxu0 %v6093_v20 }
 0x9bd   :  { %5431 = vmatprep.subr.bf16.mxu0 %v6361_v45 }
 0x9c0   :  { %5432 = vmatpush3.bf16.msra.mxu0 %v6097_v21 }
 0x9c1   :  { %5433 = vmatprep.subr.bf16.mxu0 %v6361_v45 }
 0x9c4   :  { %5434 = vmatpush3.bf16.msra.mxu0 %v6101_v22  ;;  %v6110_v22 = vld [vmem:[#allocation5 + $0x1e0] sm:$0xff]  }
 0x9c5   :  { %5435 = vmatprep.subr.bf16.mxu0 %v6361_v45 }
 0x9c8   :  { %5436 = vmatpush3.bf16.msra.mxu0 %v6105_v42 }
 0x9c9   :  { %5437 = vmatprep.subr.bf16.mxu0 %v6361_v45 }
 0x9cc   :  { %5438 = vmatpush3.bf16.msra.mxu0 %v6109_v46 }
 0x9cd   :  { %5457 = vmatprep.subr.bf16.mxu0 %v6361_v45 }
 0xa82   :  { %v1927_v5 = vpop.f32.mrb[32].mxu0 }
 0xa83   :  { %v1928_v6 = vadd.f32 %v4626_v4, %v1927_v5  ;;  %v5415_v7 = vpop.f32.mrb[33].mxu0 }
 0xa84   :  { %v1930_v8 = vpop.f32.mrb[34].mxu0 }
 0xa85   :  { %v1933_v9 = vmul.f32 1.442695, %v1928_v6  ;;  %v5416_v10 = vpop.f32.mrb[35].mxu0 }
 0xa87   :  { %6199 = vpow2.f32 %v1933_v9 }
 0xa91   :  { %v6200_v17 = vpop.eup %6199 }
 0xa92   :  { %v1940_v18 = vmul.f32 %v6200_v17, %v1938_v15 }
 0xa94   :  { %1942 = vrot.lane.b32.xlu1 %v1940_v18, %s6369_s1 }
 0xb06   :  { %v1943_v23 = vpop.permute.xlu1 %1942 }
 0xb07   :  { %v1945_v24 = vadd.f32 %v1943_v23, %v1928_v6  ;;  %v6113_v23 = vld [vmem:[#allocation5 + $0x1f8] sm:$0xff]  }
 0xb09   :  { %v1946_v26 = vpack.c.bf16 %v1945_v24, %v1945_v24  ;;  %v6114_v24 = vld [vmem:[#allocation5 + $0x200] sm:$0xff]  }
 0xb0b   :  { %5420 = vmatmul.mubr.msk.bf16.vlgmr.msra.gmra.mrb[48].mxu1 %vm1953_vm2, %v1946_v26  ;;  %vm2303_vm2 = vcmask 1042432   ;;  %v6116_v26 = vld [vmem:[#allocation5 + $0x208] sm:$0xff]  }
 0xb0c   :  { %2164 = vmatpush1.bf16.msra.mxu1 %v6078_v25  ;;  %2195 = vmatprep.mubr.bf16.mxu1 %v6370_v47  ;;  %v6111_v25 = vld [vmem:[#allocation5 + $0x1e8] sm:$0xff]  }
 0xb0d   :  { %2165 = vmatprep.subr.bf16.mxu1 %v6084_v27  ;;  %v6118_v27 = vld [vmem:[#allocation5 + $0x210] sm:$0xff]  }
 0xb10   :  { %2166 = vmatpush1.bf16.msra.mxu1 %v6082_v28  ;;  %v6112_v28 = vld [vmem:[#allocation5 + $0x1f0] sm:$0xff]  }
 0xb11   :  { %2167 = vmatprep.subr.bf16.mxu1 %v6088_v29  ;;  %v6120_v29 = vld [vmem:[#allocation5 + $0x218] sm:$0xff]  }
 0xb14   :  { %2168 = vmatpush1.bf16.msra.mxu1 %v6086_v31  ;;  %v6122_v31 = vld [vmem:[#allocation5 + $0x220] sm:$0xff]  }
 0xb15   :  { %2169 = vmatprep.subr.bf16.mxu1 %v6092_v32  ;;  %v6124_v32 = vld [vmem:[#allocation5 + $0x228] sm:$0xff]  }
 0xb18   :  { %2170 = vmatpush1.bf16.msra.mxu1 %v6090_v33  ;;  %v6125_v33 = vld [vmem:[#allocation5 + $0x260] sm:$0xff]  }
 0xb19   :  { %2171 = vmatprep.subr.bf16.mxu1 %v6096_v34  ;;  %v6126_v34 = vld [vmem:[#allocation5 + $0x230] sm:$0xff]  }
 0xb1c   :  { %2172 = vmatpush1.bf16.msra.mxu1 %v6094_v35  ;;  %v6127_v35 = vld [vmem:[#allocation5 + $0x268] sm:$0xff]  }
 0xb1d   :  { %2173 = vmatprep.subr.bf16.mxu1 %v6100_v36  ;;  %v6128_v36 = vld [vmem:[#allocation5 + $0x270] sm:$0xff]  }
 0xb20   :  { %2174 = vmatpush1.bf16.msra.mxu1 %v6098_v38 }
 0xb21   :  { %2175 = vmatprep.subr.bf16.mxu1 %v6104_v39 }
 0xb24   :  { %2176 = vmatpush1.bf16.msra.mxu1 %v6102_v41 }
 0xb25   :  { %2177 = vmatprep.subr.bf16.mxu1 %v6108_v43 }
 0xb28   :  { %2178 = vmatpush1.bf16.msra.mxu1 %v6106_v44 }
 0xb29   :  { %5443 = vmatprep.subr.bf16.mxu1 %v6361_v45 }
 0xbde   :  { %v1995_v49 = vpop.f32.mrb[48].mxu1 }
 0xbdf   :  { %v1996_v50 = vadd.f32 %v4635_v48, %v1995_v49  ;;  %v5421_v51 = vpop.f32.mrb[49].mxu1  ;;  %v6129_v48 = vld [vmem:[#allocation5 + $0x278] sm:$0xff]  }
 0xbe0   :  { %v1998_v52 = vpop.f32.mrb[50].mxu1  ;;  %v6130_v51 = vld [vmem:[#allocation5 + $0x280] sm:$0xff]  }
 0xbe1   :  { %v2001_v53 = vmax.f32 %v1996_v50, 0.0  ;;  %v5422_v54 = vpop.f32.mrb[51].mxu1 }
 0xbe2   :  { %v6131_v54 = vld [vmem:[#allocation5 + $0x288] sm:$0xff]  }
 0xbe3   :  { %v2002_v55 = vpack.c.bf16 %v2001_v53, %v2001_v53 }
 0xbe5   :  { %2196 = vmatmul.mubr.bf16.vlgmr.msra.gmra.mrb[52].mxu1 %v2002_v55  ;;  %5440 = vmatmul.mubr.bf16.vlgmr.msra.gmra.mrb[36].mxu0 %v2002_v55 }
 0xbe6   :  { %5445 = vmatprep.mubr.msk.bf16.mxu1 %vm6362_vm4, %v6361_v45  ;;  %5473 = vmatprep.mubr.msk.bf16.mxu0 %vm6362_vm4, %v6361_v45 }
 0xbe7   :  { %5458 = vmatpush3.bf16.msra.mxu0 %v6115_v56 }
 0xbe8   :  { %5459 = vmatprep.subr.bf16.mxu0 %v6361_v45 }
 0xbeb   :  { %5460 = vmatpush3.bf16.msra.mxu0 %v6117_v57 }
 0xbec   :  { %5461 = vmatprep.subr.bf16.mxu0 %v6361_v45 }
 0xbef   :  { %5462 = vmatpush3.bf16.msra.mxu0 %v6119_v58  ;;  %v6132_v58 = vld [vmem:[#allocation5 + $0x290] sm:$0xff]  }
 0xbf0   :  { %5463 = vmatprep.subr.bf16.mxu0 %v6361_v45 }
 0xbf3   :  { %5464 = vmatpush3.bf16.msra.mxu0 %v6121_v59  ;;  %v6133_v59 = vld [vmem:[#allocation5 + $0x298] sm:$0xff]  }
 0xbf4   :  { %5465 = vmatprep.subr.bf16.mxu0 %v6361_v45 }
 0xbf7   :  { %5466 = vmatpush3.bf16.msra.mxu0 %v6123_v60  ;;  %v6134_v60 = vld [vmem:[#allocation5 + $0x2a0] sm:$0xff]  }
 0xbf8   :  { %5467 = vmatprep.subr.bf16.mxu0 %v6361_v45 }
 0xbfb   :  { %5468 = vmatpush3.bf16.msra.mxu0 %v6125_v33 }
 0xbfc   :  { %5469 = vmatprep.subr.bf16.mxu0 %v6361_v45 }
 0xbff   :  { %5470 = vmatpush3.bf16.msra.mxu0 %v6127_v35 }
 0xc00   :  { %5471 = vmatprep.subr.bf16.mxu0 %v6361_v45 }
 0xc03   :  { %5472 = vmatpush3.bf16.msra.mxu0 %v6128_v36 }
 0xc04   :  { %5497 = vmatprep.subr.bf16.mxu0 %v6361_v45 }
 0xcb8   :  { %v2197_v3 = vpop.f32.mrb[52].mxu1  ;;  %v2238_v4 = vpop.f32.mrb[36].mxu0 }
 0xcb9   :  { %v2261_v5 = vadd.f32 %v2260_v0, %v2238_v4  ;;  %v2199_v6 = vpop.f32.mrb[53].mxu1  ;;  %v5441_v7 = vpop.f32.mrb[37].mxu0  ;;  %v2249_v8 = vadd.f32 %v2248_v1, %v2197_v3  ;;  %v2692_v0 = vld [vmem:[#allocation8 + $0x98] sm:$0xff]  ;;  %v2693_v1 = vld [vmem:[#allocation8 + $0xa0] sm:$0xff]  ;;  %v2694_v3 = vld [vmem:[#allocation8 + $0xa8] sm:$0xff] }
 0xcba   :  { %v2255_v9 = vadd.f32 %v2254_v2, %v2199_v6  ;;  %v2201_v10 = vpop.f32.mrb[54].mxu1  ;;  %v2241_v11 = vpop.f32.mrb[38].mxu0  ;;  %v5846_v2 = vpack.c.bf16 %v2692_v0, %v2691_v63  ;;  %v5849_v4 = vpack.c.bf16 %v2694_v3, %v2693_v1  ;;  %v2696_v6 = vld [vmem:[#allocation8 + $0xb8] sm:$0xff] }
 0xcbb   :  { %v2262_v12 = vmax.f32 %v2261_v5, 0.0  ;;  %v2202_v13 = vpop.f32.mrb[55].mxu1  ;;  %v5442_v14 = vpop.f32.mrb[39].mxu0  ;;  %v2250_v16 = vmax.f32 %v2249_v8, 0.0  ;;  %v2695_v5 = vld [vmem:[#allocation8 + $0xb0] sm:$0xff]  ;;  %v2697_v8 = vld [vmem:[#allocation8 + $0xc0] sm:$0xff] }
 0xcbc   :  { %v2256_v15 = vmax.f32 %v2255_v9, 0.0  ;;  %v5852_v7 = vpack.c.bf16 %v2696_v6, %v2695_v5  ;;  %v2698_v9 = vld [vmem:[#allocation8 + $0xc8] sm:$0xff]  ;;  %v2699_v11 = vld [vmem:[#allocation8 + $0xd0] sm:$0xff]  ;;  %v2701_v14 = vld [vmem:[#allocation8 + $0xe0] sm:$0xff] }
 0xcbd   :  { %v2267_v30 = vrot.slane %v2262_v12, 4  ;;  %v5855_v10 = vpack.c.bf16 %v2698_v9, %v2697_v8  ;;  %v2700_v12 = vld [vmem:[#allocation8 + $0xd8] sm:$0xff] }
 0xcbe   :  { %v2264_v17 = vrot.slane %v2256_v15, 6  ;;  %v5858_v13 = vpack.c.bf16 %v2700_v12, %v2699_v11  ;;  %v2702_v15 = vld [vmem:[#allocation8 + $0xe8] sm:$0xff] }
 0xcc0   :  { %v2269_v18 = vsel %vm1957_vm15, %v2250_v16, %v2264_v17  ;;  %v5861_v16 = vpack.c.bf16 %v2702_v15, %v2701_v14  ;;  %v2703_v17 = vld [vmem:[#allocation8 + $0xf0] sm:$0xff]  ;;  %vm3595_vm15 = vcmask 850944  }
 0xcc1   :  { %v2270_v19 = vsel %vm149_vm1, %v2269_v18, %v2267_v30  ;;  %v2704_v30 = vld [vmem:[#allocation8 + $0xf8] sm:$0xff]  ;;  %vm3455_vm1 = vcmask 912384  }
 0xcc2   :  { %v2271_v20 = vpack.c.bf16 %v2270_v19, %v2270_v19  ;;  %v5864_v18 = vpack.c.bf16 %v2704_v30, %v2703_v17 }
 0xcc4   :  { %v2305_v21 = vsel %vm2303_vm2, %v2271_v20, 0  ;;  %vm6948_vm2 = vcmask 228352  }
 0xcc5   :  { %5444 = vmatpush3.bf16.msra.mxu1 %v2305_v21 }
 0xcc6   :  { %5477 = vmatprep.subr.bf16.mxu1 %v6361_v45 }
 0xcc8   :  { %5446 = vmatmul.mubr.msk.bf16.vlgmr.msra.gmra.mrb[56].mxu1 %vm2293_vm3, %v6110_v22 }
 0xcc9   :  { %5449 = vmatprep.mubr.msk.bf16.mxu1 %vm6362_vm4, %v6361_v45  ;;  %5478 = vmatpush3.bf16.msra.mxu1 %v6113_v23 }
 0xcca   :  { %5479 = vmatprep.subr.bf16.mxu1 %v6361_v45 }
 0xccd   :  { %5480 = vmatpush3.bf16.msra.mxu1 %v6114_v24 }
 0xcce   :  { %5481 = vmatprep.subr.bf16.mxu1 %v6361_v45 }
 0xcd0   :  { %5450 = vmatmul.mubr.msk.bf16.gmra.mrb[60].mxu1 %vm2293_vm3, %v6111_v25 }
 0xcd1   :  { %5453 = vmatprep.mubr.msk.bf16.mxu1 %vm6362_vm4, %v6361_v45  ;;  %5482 = vmatpush3.bf16.msra.mxu1 %v6116_v26 }
 0xcd2   :  { %5483 = vmatprep.subr.bf16.mxu1 %v6361_v45 }
 0xcd5   :  { %5484 = vmatpush3.bf16.msra.mxu1 %v6118_v27 }
 0xcd6   :  { %5485 = vmatprep.subr.bf16.mxu1 %v6361_v45 }
 0xcd8   :  { %5454 = vmatmul.mubr.msk.bf16.gmra.mrb[64].mxu1 %vm2293_vm3, %v6112_v28  ;;  %vm3578_vm3 = vcmask 64512  }
 0xcd9   :  { %5486 = vmatpush3.bf16.msra.mxu1 %v6120_v29  ;;  %5493 = vmatprep.mubr.msk.bf16.mxu1 %vm6362_vm4, %v6361_v45 }
 0xcda   :  { %5487 = vmatprep.subr.bf16.mxu1 %v6361_v45 }
 0xcdd   :  { %5488 = vmatpush3.bf16.msra.mxu1 %v6122_v31  ;;  %v4691_v31 = vld [vmem:[#allocation8 + $0x88] ss:$0 sm:$0xff] }
 0xcde   :  { %5489 = vmatprep.subr.bf16.mxu1 %v6361_v45 }
 0xce1   :  { %5490 = vmatpush3.bf16.msra.mxu1 %v6124_v32 }
 0xce2   :  { %5491 = vmatprep.subr.bf16.mxu1 %v6361_v45 }
 0xce5   :  { %5492 = vmatpush3.bf16.msra.mxu1 %v6126_v34 }
 0xce6   :  { %5845 = vmatprep.subr.bf16.mxu1 %v6363_v40 }
 0xd9b   :  { %v2341_v38 = vpop.f32.mrb[56].mxu1 }
 0xd9c   :  { %v5447_v39 = vpop.f32.mrb[57].mxu1 }
 0xd9d   :  { %v2344_v41 = vpop.f32.mrb[58].mxu1 }
 0xd9e   :  { %v2364_v42 = vpack.c.bf16 %v2344_v41, %v2341_v38  ;;  %v5448_v43 = vpop.f32.mrb[59].mxu1 }
 0xda0   :  { %5494 = vmatmul.mubr.bf16.vlgmr.msra.gmra.mrb[68].mxu1 %v2364_v42 }
 0xda1   :  { %5545 = vmatprep.mubr.msk.f32.mxu1 %vm6362_vm4, %v6361_v45  ;;  %5847 = vmatpush3.bf16.msra.mxu1 %v5846_v2 }
 0xda2   :  { %5848 = vmatprep.subr.bf16.mxu1 %v6363_v40 }
 0xda3   :  { %v2349_v44 = vpop.f32.mrb[60].mxu1 }
 0xda4   :  { %v5451_v46 = vpop.f32.mrb[61].mxu1 }
 0xda5   :  { %v2352_v47 = vpop.f32.mrb[62].mxu1  ;;  %5850 = vmatpush3.bf16.msra.mxu1 %v5849_v4 }
 0xda6   :  { %v2365_v49 = vpack.c.bf16 %v2352_v47, %v2349_v44  ;;  %v5452_v50 = vpop.f32.mrb[63].mxu1  ;;  %5851 = vmatprep.subr.bf16.mxu1 %v6363_v40 }
 0xda8   :  { %5474 = vmatmul.mubr.bf16.vlgmr.msra.gmra.mrb[40].mxu0 %v2365_v49 }
 0xda9   :  { %5498 = vmatpush3.bf16.msra.mxu0 %v6129_v48  ;;  %5513 = vmatprep.mubr.msk.bf16.mxu0 %vm6362_vm4, %v6361_v45 }
 0xdaa   :  { %5499 = vmatprep.subr.bf16.mxu0 %v6361_v45  ;;  %5853 = vmatpush3.bf16.msra.mxu1 %v5852_v7 }
 0xdab   :  { %v2357_v52 = vpop.f32.mrb[64].mxu1  ;;  %5854 = vmatprep.subr.bf16.mxu1 %v6363_v40 }
 0xdac   :  { %v5455_v53 = vpop.f32.mrb[65].mxu1 }
 0xdad   :  { %5500 = vmatpush3.bf16.msra.mxu0 %v6130_v51  ;;  %v2360_v55 = vpop.f32.mrb[66].mxu1 }
 0xdae   :  { %5501 = vmatprep.subr.bf16.mxu0 %v6361_v45  ;;  %v2366_v56 = vpack.c.bf16 %v2360_v55, %v2357_v52  ;;  %v5456_v57 = vpop.f32.mrb[67].mxu1  ;;  %5856 = vmatpush3.bf16.msra.mxu1 %v5855_v10 }
 0xdaf   :  { %5857 = vmatprep.subr.bf16.mxu1 %v6363_v40 }
 0xdb1   :  { %5502 = vmatpush3.bf16.msra.mxu0 %v6131_v54 }
 0xdb2   :  { %5503 = vmatprep.subr.bf16.mxu0 %v6361_v45  ;;  %5859 = vmatpush3.bf16.msra.mxu1 %v5858_v13 }
 0xdb3   :  { %5860 = vmatprep.subr.bf16.mxu1 %v6363_v40 }
 0xdb5   :  { %5504 = vmatpush3.bf16.msra.mxu0 %v6132_v58 }
 0xdb6   :  { %5505 = vmatprep.subr.bf16.mxu0 %v6361_v45  ;;  %5862 = vmatpush3.bf16.msra.mxu1 %v5861_v16 }
 0xdb7   :  { %5863 = vmatprep.subr.bf16.mxu1 %v6363_v40 }
 0xdb9   :  { %5506 = vmatpush3.bf16.msra.mxu0 %v6133_v59 }
 0xdba   :  { %5507 = vmatprep.subr.bf16.mxu0 %v6361_v45  ;;  %5865 = vmatpush3.bf16.msra.mxu1 %v5864_v18 }
 0xdbd   :  { %5508 = vmatpush3.bf16.msra.mxu0 %v6134_v60 }
 0xdbe   :  { %5509 = vmatprep.subr.bf16.mxu0 %v6361_v45 }
 0xdc1   :  { %5510 = vmatpush3.bf16.msra.mxu0 %v6135_v61 }
 0xdc2   :  { %5511 = vmatprep.subr.bf16.mxu0 %v6361_v45 }
 0xdc5   :  { %5512 = vmatpush3.bf16.msra.mxu0 %v6136_v62 }
 0xdc6   :  { %5866 = vmatprep.subr.bf16.mxu0 %v6363_v40 }
 0xdc8   :  { %5514 = vmatmul.mubr.bf16.vlgmr.msra.gmra.mrb[44].mxu0 %v2366_v56 }
 0xdc9   :  { %5576 = vmatprep.mubr.msk.f32.mxu0 %vm6362_vm4, %v6361_v45  ;;  %5868 = vmatpush3.bf16.msra.mxu0 %v5846_v2 }
 0xdca   :  { %5869 = vmatprep.subr.bf16.mxu0 %v6363_v40 }
 0xdcd   :  { %5871 = vmatpush3.bf16.msra.mxu0 %v5849_v4 }
 0xdce   :  { %5872 = vmatprep.subr.bf16.mxu0 %v6363_v40 }
 0xdd1   :  { %5874 = vmatpush3.bf16.msra.mxu0 %v5852_v7 }
 0xdd2   :  { %5875 = vmatprep.subr.bf16.mxu0 %v6363_v40 }
 0xdd5   :  { %5877 = vmatpush3.bf16.msra.mxu0 %v5855_v10 }
 0xdd6   :  { %5878 = vmatprep.subr.bf16.mxu0 %v6363_v40 }
 0xdd9   :  { %5880 = vmatpush3.bf16.msra.mxu0 %v5858_v13 }
 0xdda   :  { %5881 = vmatprep.subr.bf16.mxu0 %v6363_v40 }
 0xddd   :  { %5883 = vmatpush3.bf16.msra.mxu0 %v5861_v16 }
 0xdde   :  { %5884 = vmatprep.subr.bf16.mxu0 %v6363_v40 }
 0xde1   :  { %5886 = vmatpush3.bf16.msra.mxu0 %v5864_v18 }
 0xde2   :  { %5887 = vmatprep.subr.bf16.mxu0 %v6363_v40 }
 0xe73   :  { %v2570_v19 = vpop.f32.mrb[68].mxu1 }
 0xe74   :  { %v5495_v20 = vpop.f32.mrb[69].mxu1 }
 0xe75   :  { %v2573_v21 = vpop.f32.mrb[70].mxu1  ;;  %v6137_v20 = vld [vmem:[#allocation5 + $0x2b8] sm:$0xff]  }
 0xe76   :  { %v5496_v22 = vpop.f32.mrb[71].mxu1 }
 0xe7b   :  { %v2481_v23 = vpop.f32.mrb[40].mxu0 }
 0xe7c   :  { %v2571_v24 = vadd.f32 %v2570_v19, %v2481_v23  ;;  %v5475_v25 = vpop.f32.mrb[41].mxu0 }
 0xe7d   :  { %v2484_v26 = vpop.f32.mrb[42].mxu0 }
 0xe7e   :  { %v2574_v27 = vadd.f32 %v2573_v21, %v2484_v26  ;;  %v5476_v28 = vpop.f32.mrb[43].mxu0 }
 0xe9b   :  { %v2675_v29 = vpop.f32.mrb[44].mxu0 }
 0xe9c   :  { %v2682_v32 = vadd.f32 %v2675_v29, %v2571_v24  ;;  %v5515_v33 = vpop.f32.mrb[45].mxu0 }
 0xe9d   :  { %v2678_v34 = vpop.f32.mrb[46].mxu0 }
 0xe9e   :  { %v2689_v35 = vadd.f32 %v4691_v31, %v2682_v32  ;;  %v2683_v36 = vadd.f32 %v2678_v34, %v2574_v27  ;;  %v5516_v38 = vpop.f32.mrb[47].mxu0 }
 0xea0   :  { %v2690_v39 = vadd.f32 %v4691_v31, %v2683_v36  ;;  %v2705_v41 = vsel %vm643_vm5, %v2689_v35, 0.0 }
 0xea2   :  { %v2706_v42 = vsel %vm898_vm6, %v2690_v39, 0.0 }
 0xea3   :  { %v2707_v43 = vadd.f32 %v2706_v42, %v2705_v41  ;;  %v6143_v42 = vld [vmem:[#allocation5 + $0x320] sm:$0xff]  }
 0xea5   :  { %v2708_v44 = vrot.slane %v2707_v43, 4 }
 0xea7   :  { %v2709_v46 = vadd.f32 %v2708_v44, %v2707_v43  ;;  %v6138_v44 = vld [vmem:[#allocation5 + $0x2c0] sm:$0xff]  }
 0xea9   :  { %v2710_v47 = vrot.slane %v2709_v46, 2 }
 0xeab   :  { %v2711_v48 = vadd.f32 %v2710_v47, %v2709_v46  ;;  %v6139_v46 = vld [vmem:[#allocation5 + $0x2c8] sm:$0xff]  }
 0xeac   :  { %v6144_v47 = vld [vmem:[#allocation5 + $0x328] sm:$0xff]  }
 0xead   :  { %v2712_v49 = vrot.slane %v2711_v48, 1 }
 0xeaf   :  { %v2713_v50 = vadd.f32 %v2712_v49, %v2711_v48  ;;  %v6145_v48 = vld [vmem:[#allocation5 + $0x330] sm:$0xff]  }
 0xeb0   :  { %v6140_v49 = vld [vmem:[#allocation5 + $0x2d0] sm:$0xff]  }
 0xeb1   :  { %5546 = vmatmul.mubr.msk.f32.vlgmr.msra.gmra.mrb[22].mxu1 %vm643_vm5, %v2713_v50  ;;  %v6141_v50 = vld [vmem:[#allocation5 + $0x2d8] sm:$0xff]  }
 0xeb2   :  { %5581 = vmatprep.mubr.msk.bf16.mxu1 %vm1160_vm14, %v6137_v20  ;;  %v6158_v20 = vld [vmem:[#allocation5 + $0x360] sm:$0xff]  }
 0xf84   :  { %v2783_v51 = vpop.f32.mrb[22].mxu1 }
 0xf85   :  { %v2787_v52 = vmul.f32 0.010204081, %v2783_v51  ;;  %v5547_v53 = vpop.f32.mrb[23].mxu1  ;;  %v6146_v51 = vld [vmem:[#allocation5 + $0x338] sm:$0xff]  }
 0xf86   :  { %v6147_v53 = vld [vmem:[#allocation5 + $0x340] sm:$0xff]  }
 0xf87   :  { %2792 = vrot.lane.b32.xlu1 %v2787_v52, %s6366_s23  ;;  %2789 = vrot.lane.b32.xlu0 %v2787_v52, %s6365_s22 }
 0xf8b   :  { %2798 = vrot.lane.b32.xlu1 %v2787_v52, %s6352_s28  ;;  %2795 = vrot.lane.b32.xlu0 %v2787_v52, %s6364_s4 }
 0xf8f   :  { %2804 = vrot.lane.b32.xlu1 %v2787_v52, %s6367_s24  ;;  %2801 = vrot.lane.b32.xlu0 %v2787_v52, %s6368_s25 }
 0xff9   :  { %v2793_v54 = vpop.permute.xlu1 %2792  ;;  %v2790_v55 = vpop.permute.xlu0 %2789 }
 0xffa   :  { %v2807_v56 = vsel %vm1000_vm7, %v2787_v52, %v2790_v55  ;;  %v6142_v52 = vld [vmem:[#allocation5 + $0x2e0] sm:$0xff]   ;;  %v6149_v55 = vld [vmem:[#allocation5 + $0x350] sm:$0xff]  }
 0xffb   :  { %v2808_v58 = vsel %vm1002_vm8, %v2807_v56, %v2793_v54  ;;  %v6148_v54 = vld [vmem:[#allocation5 + $0x348] sm:$0xff]  }
 0xffc   :  { %v6150_v56 = vld [vmem:[#allocation5 + $0x2e8] sm:$0xff]  }
 0xffd   :  { %v2799_v57 = vpop.permute.xlu1 %2798  ;;  %v2796_v59 = vpop.permute.xlu0 %2795 }
 0xffe   :  { %v2809_v60 = vsel %vm1004_vm9, %v2808_v58, %v2796_v59  ;;  %v3437_v58 = vld [vmem:[#allocation8 + $0x110] sm:$0xff] }
 0xfff   :  { %v2810_v62 = vsel %vm1006_vm10, %v2809_v60, %v2799_v57  ;;  %v3436_v57 = vld [vmem:[#allocation8 + $0x108] sm:$0xff] }
0x1000   :  { %v6767_v59 = vpack.c.bf16 %v3437_v58, %v3436_v57 }
0x1001   :  { %v2805_v61 = vpop.permute.xlu1 %2804  ;;  %v2802_v63 = vpop.permute.xlu0 %2801 }
0x1002   :  { %v2811_v0 = vsel %vm1008_vm11, %v2810_v62, %v2802_v63 }
0x1003   :  { %v2812_v1 = vsel %vm1010_vm12, %v2811_v0, %v2805_v61 }
0x1004   :  { %v2816_v2 = vrot.slane %v2812_v1, %v6565_v37 }
0x1006   :  { %v2817_v3 = vsub.f32 %v2689_v35, %v2816_v2  ;;  %v2818_v4 = vsub.f32 %v2690_v39, %v2816_v2 }
0x1008   :  { %v2819_v5 = vmul.f32 %v2817_v3, %v2817_v3  ;;  %v2820_v6 = vmul.f32 %v2818_v4, %v2818_v4 }
0x100a   :  { %v2821_v7 = vsel %vm643_vm5, %v2819_v5, 0.0  ;;  %v2822_v8 = vsel %vm898_vm6, %v2820_v6, 0.0  ;;  %vm3584_vm6 = vcmask 326656  }
0x100b   :  { %v2823_v9 = vadd.f32 %v2822_v8, %v2821_v7  ;;  %v6151_v8 = vld [vmem:[#allocation5 + $0x2f0] sm:$0xff]  }
0x100d   :  { %v2824_v10 = vrot.slane %v2823_v9, 4 }
0x100f   :  { %v2825_v11 = vadd.f32 %v2824_v10, %v2823_v9  ;;  %v6152_v10 = vld [vmem:[#allocation5 + $0x2f8] sm:$0xff]  }
0x1011   :  { %v2826_v12 = vrot.slane %v2825_v11, 2 }
0x1013   :  { %v2827_v13 = vadd.f32 %v2826_v12, %v2825_v11 }
0x1015   :  { %v2828_v14 = vrot.slane %v2827_v13, 1 }
0x1017   :  { %v2829_v15 = vadd.f32 %v2828_v14, %v2827_v13 }
0x1019   :  { %5577 = vmatmul.mubr.msk.f32.vlgmr.msra.gmra.mrb[22].mxu0 %vm643_vm5, %v2829_v15 }
0x101a   :  { %5675 = vmatprep.mubr.msk.f32.mxu0 %vm6362_vm4, %v6361_v45  ;;  %5889 = vmatpush3.bf16.msra.mxu0 %v6767_v59 }
0x101b   :  { %5890 = vmatprep.subr.bf16.mxu0 %v6363_v40 }
0x10ec   :  { %v2899_v16 = vpop.f32.mrb[22].mxu0 }
0x10ed   :  { %v2903_v17 = vmul.f32 0.010204081, %v2899_v16  ;;  %v5578_v30 = vpop.f32.mrb[23].mxu0  ;;  %v6153_v16 = vld [vmem:[#allocation5 + $0x300] sm:$0xff]  }
0x10ee   :  { %v6155_v30 = vld [vmem:[#allocation5 + $0x310] sm:$0xff]  }
0x10ef   :  { %v2904_v18 = vadd.f32 1e-05, %v2903_v17  ;;  %v6154_v17 = vld [vmem:[#allocation5 + $0x308] sm:$0xff]  }
0x10f1   :  { %6201 = vrsqrt.f32 %v2904_v18  ;;  %v6156_v18 = vld [vmem:[#allocation5 + $0x318] sm:$0xff]  }
0x10fb   :  { %v6202_v19 = vpop.eup %6201 }
0x10fc   :  { %2910 = vrot.lane.b32.xlu1 %v6202_v19, %s6366_s23  ;;  %2907 = vrot.lane.b32.xlu0 %v6202_v19, %s6365_s22 }
0x1100   :  { %2916 = vrot.lane.b32.xlu1 %v6202_v19, %s6352_s28  ;;  %2913 = vrot.lane.b32.xlu0 %v6202_v19, %s6364_s4 }
0x1104   :  { %2922 = vrot.lane.b32.xlu1 %v6202_v19, %s6367_s24  ;;  %2919 = vrot.lane.b32.xlu0 %v6202_v19, %s6368_s25 }
0x116e   :  { %v2911_v21 = vpop.permute.xlu1 %2910  ;;  %v2908_v22 = vpop.permute.xlu0 %2907 }
0x116f   :  { %v2925_v23 = vsel %vm1000_vm7, %v6202_v19, %v2908_v22  ;;  %v6157_v19 = vld [vmem:[#allocation5 + $0x358] sm:$0xff]   ;;  %v6160_v22 = vld [vmem:[#allocation5 + $0x370] sm:$0xff]  }
0x1170   :  { %v2926_v25 = vsel %vm1002_vm8, %v2925_v23, %v2911_v21  ;;  %v6159_v21 = vld [vmem:[#allocation5 + $0x368] sm:$0xff]   ;;  %v6161_v23 = vld [vmem:[#allocation5 + $0x378] sm:$0xff]  }
0x1172   :  { %v2917_v24 = vpop.permute.xlu1 %2916  ;;  %v2914_v26 = vpop.permute.xlu0 %2913 }
0x1173   :  { %v2927_v27 = vsel %vm1004_vm9, %v2926_v25, %v2914_v26  ;;  %v6163_v25 = vld [vmem:[#allocation5 + $0x388] sm:$0xff]   ;;  %v3438_v26 = vld [vmem:[#allocation8 + $0x118] sm:$0xff] }
0x1174   :  { %v2928_v29 = vsel %vm1006_vm10, %v2927_v27, %v2917_v24  ;;  %v6162_v24 = vld [vmem:[#allocation5 + $0x380] sm:$0xff]  }
0x1175   :  { %v3439_v27 = vld [vmem:[#allocation8 + $0x120] sm:$0xff] }
0x1176   :  { %v2923_v28 = vpop.permute.xlu1 %2922  ;;  %v2920_v31 = vpop.permute.xlu0 %2919 }
0x1177   :  { %v2929_v32 = vsel %vm1008_vm11, %v2928_v29, %v2920_v31  ;;  %v3440_v29 = vld [vmem:[#allocation8 + $0x128] sm:$0xff]  ;;  %v3441_v31 = vld [vmem:[#allocation8 + $0x130] sm:$0xff] }
0x1178   :  { %v2930_v33 = vsel %vm1010_vm12, %v2929_v32, %v2923_v28  ;;  %v5891_v28 = vpack.c.bf16 %v3439_v27, %v3438_v26  ;;  %v5894_v32 = vpack.c.bf16 %v3441_v31, %v3440_v29 }
0x1179   :  { %v2934_v34 = vrot.slane %v2930_v33, %v6565_v37  ;;  %v3442_v33 = vld [vmem:[#allocation8 + $0x138] sm:$0xff] }
0x117a   :  { %5892 = vmatpush3.bf16.msra.mxu0 %v5891_v28 }
0x117b   :  { %v2935_v35 = vmul.f32 %v2934_v34, %v2817_v3  ;;  %v2936_v36 = vmul.f32 %v2934_v34, %v2818_v4  ;;  %5893 = vmatprep.subr.bf16.mxu0 %v6363_v40  ;;  %v3443_v34 = vld [vmem:[#allocation8 + $0x140] sm:$0xff] }
0x117d   :  { %v2937_v38 = vmax.f32 %v2935_v35, 0.0  ;;  %v2938_v39 = vmax.f32 %v2936_v36, 0.0  ;;  %v5897_v35 = vpack.c.bf16 %v3443_v34, %v3442_v33  ;;  %v3444_v36 = vld [vmem:[#allocation8 + $0x148] sm:$0xff] }
0x117e   :  { %5895 = vmatpush3.bf16.msra.mxu0 %v5894_v32 }
0x117f   :  { %v2939_v41 = vpack.c.bf16 %v2938_v39, %v2937_v38  ;;  %5896 = vmatprep.subr.bf16.mxu0 %v6363_v40  ;;  %v3445_v38 = vld [vmem:[#allocation8 + $0x150] sm:$0xff] }
0x1180   :  { %v5900_v39 = vpack.c.bf16 %v3445_v38, %v3444_v36 }
0x1181   :  { %5957 = vmatprep.subr.msk.bf16.mxu1 %vm1170_vm13, %v2939_v41  ;;  %v3001_v43 = vsel %vm1170_vm13, %v2939_v41, 0  ;;  %v3446_v41 = vld [vmem:[#allocation8 + $0x158] sm:$0xff]  ;;  %vm3589_vm13 = vcmask 588800  }
0x1182   :  { %5580 = vmatpush3.bf16.msra.mxu1 %v3001_v43  ;;  %5898 = vmatpush3.bf16.msra.mxu0 %v5897_v35 }
0x1183   :  { %5593 = vmatprep.subr.bf16.mxu1 %v6143_v42  ;;  %5899 = vmatprep.subr.bf16.mxu0 %v6363_v40 }
0x1185   :  { %5582 = vmatmul.mubr.msk.bf16.vlgmr.msra.gmra.mrb[72].mxu1 %vm1160_vm14, %v6138_v44  ;;  %v3448_v44 = vld [vmem:[#allocation8 + $0x168] sm:$0xff] }
0x1186   :  { %5585 = vmatprep.mubr.msk.bf16.mxu1 %vm1160_vm14, %v6139_v46  ;;  %5594 = vmatpush3.bf16.msra.mxu1 %v6143_v42  ;;  %v3447_v42 = vld [vmem:[#allocation8 + $0x160] sm:$0xff]  ;;  %v3449_v46 = vld [vmem:[#allocation8 + $0x170] sm:$0xff] }
0x1187   :  { %5595 = vmatprep.subr.bf16.mxu1 %v6144_v47  ;;  %5901 = vmatpush3.bf16.msra.mxu0 %v5900_v39  ;;  %v5903_v43 = vpack.c.bf16 %v3447_v42, %v3446_v41 }
0x1188   :  { %5902 = vmatprep.subr.bf16.mxu0 %v6363_v40 }
0x118a   :  { %5596 = vmatpush3.bf16.msra.mxu1 %v6144_v47  ;;  %v5906_v47 = vpack.c.bf16 %v3449_v46, %v3448_v44 }
0x118b   :  { %5597 = vmatprep.subr.bf16.mxu1 %v6145_v48  ;;  %5904 = vmatpush3.bf16.msra.mxu0 %v5903_v43 }
0x118c   :  { %5905 = vmatprep.subr.bf16.mxu0 %v6363_v40 }
0x118d   :  { %5586 = vmatmul.mubr.msk.bf16.gmra.mrb[76].mxu1 %vm1160_vm14, %v6140_v49 }
0x118e   :  { %5589 = vmatprep.mubr.msk.bf16.mxu1 %vm1160_vm14, %v6141_v50  ;;  %5598 = vmatpush3.bf16.msra.mxu1 %v6145_v48  ;;  %v4733_v48 = vld [vmem:[#allocation8 + $0x100] ss:$0 sm:$0xff] }
0x118f   :  { %5599 = vmatprep.subr.bf16.mxu1 %v6146_v51  ;;  %5907 = vmatpush3.bf16.msra.mxu0 %v5906_v47 }
0x1190   :  { %5908 = vmatprep.subr.bf16.mxu0 %v6363_v40 }
0x1192   :  { %5600 = vmatpush3.bf16.msra.mxu1 %v6146_v51 }
0x1193   :  { %5601 = vmatprep.subr.bf16.mxu1 %v6147_v53 }
0x1195   :  { %5590 = vmatmul.mubr.msk.bf16.gmra.mrb[80].mxu1 %vm1160_vm14, %v6142_v52  ;;  %vm3592_vm14 = vcmask 719872  }
0x1196   :  { %5602 = vmatpush3.bf16.msra.mxu1 %v6147_v53 }
0x1197   :  { %5603 = vmatprep.subr.bf16.mxu1 %v6148_v54 }
0x119a   :  { %5604 = vmatpush3.bf16.msra.mxu1 %v6148_v54 }
0x119b   :  { %5605 = vmatprep.subr.bf16.mxu1 %v6149_v55 }
0x119e   :  { %5606 = vmatpush3.bf16.msra.mxu1 %v6149_v55 }
0x119f   :  { %5611 = vmatprep.subr.bf16.mxu1 %v6150_v56 }
0x1258   :  { %v5583_v60 = vpop.f32.mrb[72].mxu1 }
0x1259   :  { %v3037_v61 = vpop.f32.mrb[73].mxu1 }
0x125a   :  { %v5584_v62 = vpop.f32.mrb[74].mxu1 }
0x125b   :  { %v3085_v63 = vpack.c.bf16 %v5584_v62, %v5583_v60  ;;  %v3040_v0 = vpop.f32.mrb[75].mxu1 }
0x125c   :  { %v3084_v1 = vpack.c.bf16 %v3040_v0, %v3037_v61 }
0x1260   :  { %v5587_v2 = vpop.f32.mrb[76].mxu1 }
0x1261   :  { %v3053_v3 = vpop.f32.mrb[77].mxu1 }
0x1262   :  { %v5588_v4 = vpop.f32.mrb[78].mxu1 }
0x1263   :  { %v3087_v5 = vpack.c.bf16 %v5588_v4, %v5587_v2  ;;  %v3056_v6 = vpop.f32.mrb[79].mxu1 }
0x1264   :  { %v3086_v7 = vpack.c.bf16 %v3056_v6, %v3053_v3 }
0x1266   :  { %5607 = vmatprep.mubr.msk.bf16.mxu1 %vm643_vm5, %v3086_v7 }
0x1267   :  { %5608 = vmatmul.mubr.msk.bf16.vlgmr.msra.gmra.mrb[84].mxu1 %vm643_vm5, %v3087_v5 }
0x1268   :  { %5612 = vmatpush3.bf16.msra.mxu1 %v6150_v56  ;;  %5625 = vmatprep.mubr.msk.bf16.mxu1 %vm643_vm5, %v3084_v1  ;;  %v5591_v9 = vpop.f32.mrb[80].mxu1 }
0x1269   :  { %5613 = vmatprep.subr.bf16.mxu1 %v6151_v8  ;;  %v3069_v11 = vpop.f32.mrb[81].mxu1 }
0x126a   :  { %v5592_v12 = vpop.f32.mrb[82].mxu1 }
0x126b   :  { %v3089_v13 = vpack.c.bf16 %v5592_v12, %v5591_v9  ;;  %v3072_v14 = vpop.f32.mrb[83].mxu1 }
0x126c   :  { %5614 = vmatpush3.bf16.msra.mxu1 %v6151_v8  ;;  %v3088_v15 = vpack.c.bf16 %v3072_v14, %v3069_v11 }
0x126d   :  { %5615 = vmatprep.subr.bf16.mxu1 %v6152_v10 }
0x1270   :  { %5616 = vmatpush3.bf16.msra.mxu1 %v6152_v10 }
0x1271   :  { %5617 = vmatprep.subr.bf16.mxu1 %v6153_v16 }
0x1274   :  { %5618 = vmatpush3.bf16.msra.mxu1 %v6153_v16 }
0x1275   :  { %5619 = vmatprep.subr.bf16.mxu1 %v6154_v17 }
0x1278   :  { %5620 = vmatpush3.bf16.msra.mxu1 %v6154_v17 }
0x1279   :  { %5621 = vmatprep.subr.bf16.mxu1 %v6155_v30 }
0x127c   :  { %5622 = vmatpush3.bf16.msra.mxu1 %v6155_v30 }
0x127d   :  { %5623 = vmatprep.subr.bf16.mxu1 %v6156_v18 }
0x1280   :  { %5624 = vmatpush3.bf16.msra.mxu1 %v6156_v18 }
0x1281   :  { %5629 = vmatprep.subr.bf16.mxu1 %v6157_v19 }
0x1283   :  { %5626 = vmatmul.mubr.msk.bf16.vlgmr.msra.gmra.mrb[84].mxu1 %vm643_vm5, %v3085_v63 }
0x1284   :  { %5630 = vmatpush3.bf16.msra.mxu1 %v6157_v19  ;;  %5643 = vmatprep.mubr.msk.bf16.mxu1 %vm643_vm5, %v3088_v15 }
0x1285   :  { %5631 = vmatprep.subr.bf16.mxu1 %v6158_v20 }
0x1288   :  { %5632 = vmatpush3.bf16.msra.mxu1 %v6158_v20 }
0x1289   :  { %5633 = vmatprep.subr.bf16.mxu1 %v6159_v21 }
0x128c   :  { %5634 = vmatpush3.bf16.msra.mxu1 %v6159_v21 }
0x128d   :  { %5635 = vmatprep.subr.bf16.mxu1 %v6160_v22 }
0x1290   :  { %5636 = vmatpush3.bf16.msra.mxu1 %v6160_v22 }
0x1291   :  { %5637 = vmatprep.subr.bf16.mxu1 %v6161_v23 }
0x1294   :  { %5638 = vmatpush3.bf16.msra.mxu1 %v6161_v23 }
0x1295   :  { %5639 = vmatprep.subr.bf16.mxu1 %v6162_v24 }
0x1298   :  { %5640 = vmatpush3.bf16.msra.mxu1 %v6162_v24 }
0x1299   :  { %5641 = vmatprep.subr.bf16.mxu1 %v6163_v25 }
0x129c   :  { %5642 = vmatpush3.bf16.msra.mxu1 %v6163_v25 }
0x129f   :  { %5644 = vmatmul.mubr.msk.bf16.vlgmr.msra.gmra.mrb[84].mxu1 %vm643_vm5, %v3089_v13 }
0x1372   :  { %v5645_v49 = vpop.f32.mrb[84].mxu1 }
0x1373   :  { %v3408_v50 = vpop.f32.mrb[85].mxu1  ;;  %v6785_v54 = vadd.f32 %v5645_v49, %v4733_v48 }
0x1374   :  { %v6783_v51 = vadd.f32 %v4733_v48, %v3408_v50  ;;  %v5646_v52 = vpop.f32.mrb[86].mxu1 }
0x1375   :  { %v3411_v53 = vpop.f32.mrb[87].mxu1  ;;  %v6791_v57 = vadd.f32 %v5646_v52, %v4733_v48  ;;  %v3453_v61 = vsel %vm643_vm5, %v6785_v54, 0.0 }
0x1376   :  { %v6787_v55 = vadd.f32 %v4733_v48, %v3411_v53  ;;  %v3450_v56 = vsel %vm643_vm5, %v6783_v51, 0.0 }
0x1377   :  { %v3456_v63 = vsel %vm3455_vm1, %v6791_v57, 0.0 }
0x1378   :  { %v3451_v58 = vsel %vm643_vm5, %v6787_v55, 0.0 }
0x1379   :  { %v3452_v60 = vadd.f32 %v3451_v58, %v3450_v56 }
0x137b   :  { %v3454_v62 = vadd.f32 %v3453_v61, %v3452_v60 }
0x137d   :  { %v3457_v0 = vadd.f32 %v3456_v63, %v3454_v62 }
0x137f   :  { %v3458_v1 = vrot.slane %v3457_v0, 4 }
0x1381   :  { %v3459_v2 = vadd.f32 %v3458_v1, %v3457_v0  ;;  %v6164_v0 = vld [vmem:[#allocation5 + $0x390] sm:$0xff]  }
0x1382   :  { %v6176_v1 = vld [vmem:[#allocation5 + $0x3f0] sm:$0xff]  }
0x1383   :  { %v3460_v3 = vrot.slane %v3459_v2, 2  ;;  %5759 = vmatprep.subr.bf16.mxu1 %v6176_v1 }
0x1384   :  { %5760 = vmatpush3.bf16.msra.mxu1 %v6176_v1 }
0x1385   :  { %v3461_v4 = vadd.f32 %v3460_v3, %v3459_v2  ;;  %v6177_v2 = vld [vmem:[#allocation5 + $0x3f8] sm:$0xff]   ;;  %v6178_v3 = vld [vmem:[#allocation5 + $0x400] sm:$0xff]  }
0x1386   :  { %5761 = vmatprep.subr.bf16.mxu1 %v6177_v2 }
0x1387   :  { %v3462_v5 = vrot.slane %v3461_v4, 1 }
0x1388   :  { %5762 = vmatpush3.bf16.msra.mxu1 %v6177_v2 }
0x1389   :  { %v3463_v6 = vadd.f32 %v3462_v5, %v3461_v4  ;;  %5763 = vmatprep.subr.bf16.mxu1 %v6178_v3  ;;  %v6179_v4 = vld [vmem:[#allocation5 + $0x408] sm:$0xff]   ;;  %v6181_v5 = vld [vmem:[#allocation5 + $0x410] sm:$0xff]  }
0x138b   :  { %5676 = vmatmul.mubr.msk.f32.vlgmr.msra.gmra.mrb[48].mxu0 %vm643_vm5, %v3463_v6  ;;  %v6183_v6 = vld [vmem:[#allocation5 + $0x418] sm:$0xff]  }
0x138c   :  { %5910 = vmatpush3.bf16.msra.mxu0 %v6767_v59  ;;  %5706 = vmatprep.mubr.msk.f32.mxu0 %vm6362_vm4, %v6361_v45  ;;  %vm3581_vm4 = vcmask 195584  }
0x138d   :  { %5911 = vmatprep.subr.bf16.mxu0 %v6363_v40  ;;  %5764 = vmatpush3.bf16.msra.mxu1 %v6178_v3 }
0x138e   :  { %5765 = vmatprep.subr.bf16.mxu1 %v6179_v4 }
0x1390   :  { %5913 = vmatpush3.bf16.msra.mxu0 %v5891_v28 }
0x1391   :  { %5914 = vmatprep.subr.bf16.mxu0 %v6363_v40  ;;  %5766 = vmatpush3.bf16.msra.mxu1 %v6179_v4 }
0x1392   :  { %5767 = vmatprep.subr.bf16.mxu1 %v6181_v5 }
0x1394   :  { %5916 = vmatpush3.bf16.msra.mxu0 %v5894_v32 }
0x1395   :  { %5917 = vmatprep.subr.bf16.mxu0 %v6363_v40  ;;  %5768 = vmatpush3.bf16.msra.mxu1 %v6181_v5 }
0x1396   :  { %5769 = vmatprep.subr.bf16.mxu1 %v6183_v6 }
0x1398   :  { %5919 = vmatpush3.bf16.msra.mxu0 %v5897_v35 }
0x1399   :  { %5920 = vmatprep.subr.bf16.mxu0 %v6363_v40  ;;  %5770 = vmatpush3.bf16.msra.mxu1 %v6183_v6 }
0x139c   :  { %5922 = vmatpush3.bf16.msra.mxu0 %v5900_v39 }
0x139d   :  { %5923 = vmatprep.subr.bf16.mxu0 %v6363_v40 }
0x13a0   :  { %5925 = vmatpush3.bf16.msra.mxu0 %v5903_v43 }
0x13a1   :  { %5926 = vmatprep.subr.bf16.mxu0 %v6363_v40 }
0x13a4   :  { %5928 = vmatpush3.bf16.msra.mxu0 %v5906_v47 }
0x145e   :  { %v3533_v59 = vpop.f32.mrb[48].mxu0 }
0x145f   :  { %v3537_v45 = vmul.f32 0.0025510204, %v3533_v59  ;;  %v5677_v7 = vpop.f32.mrb[49].mxu0 }
0x1461   :  { %3542 = vrot.lane.b32.xlu1 %v3537_v45, %s6365_s22  ;;  %3539 = vrot.lane.b32.xlu0 %v3537_v45, %s6356_s17 }
0x1465   :  { %3548 = vrot.lane.b32.xlu1 %v3537_v45, %s6366_s23  ;;  %3545 = vrot.lane.b32.xlu0 %v3537_v45, %s6371_s29 }
0x1469   :  { %3554 = vrot.lane.b32.xlu1 %v3537_v45, %s6364_s4  ;;  %3551 = vrot.lane.b32.xlu0 %v3537_v45, %s6372_s30 }
0x146d   :  { %3560 = vrot.lane.b32.xlu1 %v3537_v45, %s6352_s28  ;;  %3557 = vrot.lane.b32.xlu0 %v3537_v45, %s6373_s6 }
0x1471   :  { %3566 = vrot.lane.b32.xlu1 %v3537_v45, %s6368_s25  ;;  %3563 = vrot.lane.b32.xlu0 %v3537_v45, %s6374_s0 }
0x1475   :  { %3572 = vrot.lane.b32.xlu1 %v3537_v45, %s6367_s24  ;;  %3569 = vrot.lane.b32.xlu0 %v3537_v45, %s6375_s7 }
0x1479   :  { %3575 = vrot.lane.b32.xlu0 %v3537_v45, %s6376_s8 }
0x14d3   :  { %v3543_v40 = vpop.permute.xlu1 %3542  ;;  %v3540_v8 = vpop.permute.xlu0 %3539 }
0x14d4   :  { %v3579_v9 = vsel %vm3578_vm3, %v3537_v45, %v3540_v8 }
0x14d5   :  { %v3580_v11 = vsel %vm1000_vm7, %v3579_v9, %v3543_v40 }
0x14d7   :  { %v3549_v10 = vpop.permute.xlu1 %3548  ;;  %v3546_v12 = vpop.permute.xlu0 %3545 }
0x14d8   :  { %v3582_v13 = vsel %vm3581_vm4, %v3580_v11, %v3546_v12 }
0x14d9   :  { %v3583_v15 = vsel %vm1002_vm8, %v3582_v13, %v3549_v10 }
0x14db   :  { %v3555_v14 = vpop.permute.xlu1 %3554  ;;  %v3552_v16 = vpop.permute.xlu0 %3551 }
0x14dc   :  { %v3585_v17 = vsel %vm3584_vm6, %v3583_v15, %v3552_v16 }
0x14dd   :  { %v3586_v18 = vsel %vm1004_vm9, %v3585_v17, %v3555_v14 }
0x14df   :  { %v3561_v30 = vpop.permute.xlu1 %3560  ;;  %v3558_v19 = vpop.permute.xlu0 %3557 }
0x14e0   :  { %v3587_v20 = vsel %vm130_vm0, %v3586_v18, %v3558_v19 }
0x14e1   :  { %v3588_v22 = vsel %vm1006_vm10, %v3587_v20, %v3561_v30 }
0x14e3   :  { %v3567_v21 = vpop.permute.xlu1 %3566  ;;  %v3564_v23 = vpop.permute.xlu0 %3563 }
0x14e4   :  { %v3590_v24 = vsel %vm3589_vm13, %v3588_v22, %v3564_v23 }
0x14e5   :  { %v3591_v25 = vsel %vm1008_vm11, %v3590_v24, %v3567_v21 }
0x14e7   :  { %v3570_v26 = vpop.permute.xlu0 %3569  ;;  %v3573_v27 = vpop.permute.xlu1 %3572 }
0x14e8   :  { %v3593_v28 = vsel %vm3592_vm14, %v3591_v25, %v3570_v26 }
0x14e9   :  { %v3594_v29 = vsel %vm1010_vm12, %v3593_v28, %v3573_v27 }
0x14eb   :  { %v3576_v31 = vpop.permute.xlu0 %3575 }
0x14ec   :  { %v3596_v32 = vsel %vm3595_vm15, %v3594_v29, %v3576_v31 }
0x14ed   :  { %v3600_v33 = vrot.slane %v3596_v32, %v6565_v37 }
0x14ef   :  { %v6837_v34 = vsub.f32 %v6783_v51, %v3600_v33  ;;  %v6840_v35 = vsub.f32 %v6787_v55, %v3600_v33  ;;  %v6843_v36 = vsub.f32 %v6785_v54, %v3600_v33  ;;  %v6846_v38 = vsub.f32 %v6791_v57, %v3600_v33 }
0x14f1   :  { %v3605_v39 = vmul.f32 %v6837_v34, %v6837_v34  ;;  %v3606_v41 = vmul.f32 %v6840_v35, %v6840_v35  ;;  %v3607_v42 = vmul.f32 %v6843_v36, %v6843_v36  ;;  %v3608_v43 = vmul.f32 %v6846_v38, %v6846_v38 }
0x14f3   :  { %v3609_v44 = vsel %vm643_vm5, %v3605_v39, 0.0  ;;  %v3610_v46 = vsel %vm643_vm5, %v3606_v41, 0.0  ;;  %v3612_v48 = vsel %vm643_vm5, %v3607_v42, 0.0  ;;  %v3614_v50 = vsel %vm3455_vm1, %v3608_v43, 0.0  ;;  %vm6956_vm1 = vmmov %vm6948_vm2 }
0x14f4   :  { %v3611_v47 = vadd.f32 %v3610_v46, %v3609_v44 }
0x14f6   :  { %v3613_v49 = vadd.f32 %v3612_v48, %v3611_v47  ;;  %v6180_v48 = vld [vmem:[#allocation5 + $0x428] sm:$0xff]  }
0x14f8   :  { %v3615_v51 = vadd.f32 %v3614_v50, %v3613_v49  ;;  %v6168_v49 = vld [vmem:[#allocation5 + $0x3b0] sm:$0xff]   ;;  %v6169_v50 = vld [vmem:[#allocation5 + $0x3b8] sm:$0xff]  }
0x14fa   :  { %v3616_v52 = vrot.slane %v3615_v51, 4 }
0x14fc   :  { %v3617_v53 = vadd.f32 %v3616_v52, %v3615_v51  ;;  %v6170_v51 = vld [vmem:[#allocation5 + $0x3c0] sm:$0xff]   ;;  %v6171_v52 = vld [vmem:[#allocation5 + $0x3c8] sm:$0xff]  }
0x14fe   :  { %v3618_v54 = vrot.slane %v3617_v53, 2 }
0x1500   :  { %v3619_v55 = vadd.f32 %v3618_v54, %v3617_v53  ;;  %v6172_v53 = vld [vmem:[#allocation5 + $0x3d0] sm:$0xff]   ;;  %v6173_v54 = vld [vmem:[#allocation5 + $0x3d8] sm:$0xff]  }
0x1502   :  { %v3620_v56 = vrot.slane %v3619_v55, 1 }
0x1504   :  { %v3621_v57 = vadd.f32 %v3620_v56, %v3619_v55  ;;  %v6174_v55 = vld [vmem:[#allocation5 + $0x3e0] sm:$0xff]   ;;  %v6175_v56 = vld [vmem:[#allocation5 + $0x3e8] sm:$0xff]  }
0x1506   :  { %5707 = vmatmul.mubr.msk.f32.vlgmr.msra.gmra.mrb[50].mxu0 %vm643_vm5, %v3621_v57  ;;  %v6184_v57 = vld [vmem:[#allocation5 + $0x438] sm:$0xff]  }
0x1507   :  { %5713 = vmatprep.mubr.msk.bf16.mxu0 %vm6948_vm2, %v6164_v0  ;;  %v6191_v0 = vld [vmem:[#allocation5 + $0x458] sm:$0xff]  }
0x15d9   :  { %v3691_v58 = vpop.f32.mrb[50].mxu0 }
0x15da   :  { %v3695_v60 = vmul.f32 0.0025510204, %v3691_v58  ;;  %v5708_v61 = vpop.f32.mrb[51].mxu0  ;;  %v6185_v58 = vld [vmem:[#allocation5 + $0x420] sm:$0xff]  }
0x15db   :  { %5771 = vmatprep.subr.bf16.mxu1 %v6185_v58  ;;  %v6187_v61 = vld [vmem:[#allocation5 + $0x448] sm:$0xff]  }
0x15dc   :  { %v3696_v62 = vadd.f32 1e-05, %v3695_v60  ;;  %5772 = vmatpush3.bf16.msra.mxu1 %v6185_v58  ;;  %v6186_v60 = vld [vmem:[#allocation5 + $0x440] sm:$0xff]   ;;  %v4793_v58 = vld [vmem:[#allocation8 + $0x178] ss:$0 sm:$0xff] }
0x15de   :  { %6203 = vrsqrt.f32 %v3696_v62  ;;  %v6188_v62 = vld [vmem:[#allocation5 + $0x460] sm:$0xff]  }
0x15df   :  { %5781 = vmatprep.subr.bf16.mxu1 %v6188_v62 }
0x15e8   :  { %v6204_v63 = vpop.eup %6203 }
0x15e9   :  { %3702 = vrot.lane.b32.xlu0 %v6204_v63, %s6365_s22  ;;  %3699 = vrot.lane.b32.xlu1 %v6204_v63, %s6356_s17 }
0x15ed   :  { %3708 = vrot.lane.b32.xlu0 %v6204_v63, %s6366_s23  ;;  %3705 = vrot.lane.b32.xlu1 %v6204_v63, %s6371_s29 }
0x15f1   :  { %3714 = vrot.lane.b32.xlu0 %v6204_v63, %s6364_s4  ;;  %3711 = vrot.lane.b32.xlu1 %v6204_v63, %s6372_s30 }
0x15f5   :  { %3720 = vrot.lane.b32.xlu0 %v6204_v63, %s6352_s28  ;;  %3717 = vrot.lane.b32.xlu1 %v6204_v63, %s6373_s6  ;;  %s6377_s28 = smov [#allocation10]  }
0x15f6   :  { %s4498_s9 = sshll.u32 %s6377_s28, 4  ;;  %s4499_s9 = int_to_ptr.vmem [resolvable:$true] %s4498_s9 }
0x15f7   :  { %s6321_s10 = scalar_lea.vmem %s4499_s9, 896  ;;  %p6326_p5 = scmp.lt.s32.totalorder %s4499_s9, %s4499_s9 }
0x15f8   :  { %p6322_p4 = scmp.ne.s32.totalorder %s4499_s9, %s6321_s10  ;;  %p6327_p6 = scmp.lt.s32.totalorder %s6321_s10, %s6321_s10 }
0x15f9   :  { %3726 = vrot.lane.b32.xlu0 %v6204_v63, %s6368_s25  ;;  %3723 = vrot.lane.b32.xlu1 %v6204_v63, %s6374_s0 }
0x15fa   :  { %p6328_p7 = por %p6327_p6, %p6326_p5 }
0x15fc   :  { %p6329_p8 = pnand %p6328_p7, %p6322_p4 }
0x15fd   :  { %3732 = vrot.lane.b32.xlu0 %v6204_v63, %s6367_s24  ;;  %3729 = vrot.lane.b32.xlu1 %v6204_v63, %s6375_s7 }
0x1601   :  { %3735 = vrot.lane.b32.xlu1 %v6204_v63, %s6376_s8 }
0x165b   :  { %v3703_v59 = vpop.permute.xlu0 %3702  ;;  %v3700_v45 = vpop.permute.xlu1 %3699 }
0x165c   :  { %v3738_v7 = vsel %vm3578_vm3, %v6204_v63, %v3700_v45  ;;  %vm6957_vm3 = vmmov %vm6956_vm1  ;;  %v6189_v63 = vld [vmem:[#allocation5 + $0x450] sm:$0xff]  }
0x165d   :  { %v3739_v8 = vsel %vm1000_vm7, %v3738_v7, %v3703_v59  ;;  %v6190_v59 = vld [vmem:[#allocation5 + $0x468] sm:$0xff]  }
0x165f   :  { %v3709_v40 = vpop.permute.xlu0 %3708  ;;  %v3706_v9 = vpop.permute.xlu1 %3705 }
0x1660   :  { %v3740_v10 = vsel %vm3581_vm4, %v3739_v8, %v3706_v9  ;;  %vm6958_vm4 = vmmov %vm6956_vm1 }
0x1661   :  { %v3741_v12 = vsel %vm1002_vm8, %v3740_v10, %v3709_v40  ;;  %vm6951_vm8 = vmmov %vm6948_vm2  ;;  %v6192_v40 = vld [vmem:[#allocation5 + $0x470] sm:$0xff]  }
0x1663   :  { %v3715_v11 = vpop.permute.xlu0 %3714  ;;  %v3712_v13 = vpop.permute.xlu1 %3711 }
0x1664   :  { %v3742_v14 = vsel %vm3584_vm6, %v3741_v12, %v3712_v13  ;;  %vm6959_vm6 = vmmov %vm6956_vm1  ;;  %v6193_v12 = vld [vmem:[#allocation5 + $0x478] sm:$0xff]  }
0x1665   :  { %v3743_v16 = vsel %vm1004_vm9, %v3742_v14, %v3715_v11  ;;  %vm6952_vm9 = vmmov %vm6948_vm2 }
0x1667   :  { %v3721_v15 = vpop.permute.xlu0 %3720  ;;  %v3718_v17 = vpop.permute.xlu1 %3717 }
0x1668   :  { %v3744_v30 = vsel %vm130_vm0, %v3743_v16, %v3718_v17  ;;  %vm6949_vm0 = vcmask 1045504  }
0x1669   :  { %v3745_v19 = vsel %vm1006_vm10, %v3744_v30, %v3721_v15  ;;  %vm6950_vm7 = vmmov %vm6949_vm0  ;;  %v6194_v15 = vld [vmem:[#allocation5 + $0x480] sm:$0xff]  }
0x166a   :  { %vm6953_vm10 = vmmov %vm6948_vm2 }
0x166b   :  { %v3727_v18 = vpop.permute.xlu0 %3726  ;;  %v3724_v20 = vpop.permute.xlu1 %3723 }
0x166c   :  { %v3746_v21 = vsel %vm3589_vm13, %v3745_v19, %v3724_v20  ;;  %vm6960_vm13 = vmmov %vm6956_vm1  ;;  %v6195_v19 = vld [vmem:[#allocation5 + $0x488] sm:$0xff]  }
0x166d   :  { %v3747_v22 = vsel %vm1008_vm11, %v3746_v21, %v3727_v18  ;;  %vm6954_vm11 = vmmov %vm6948_vm2 }
0x166f   :  { %v3730_v23 = vpop.permute.xlu1 %3729  ;;  %v3733_v24 = vpop.permute.xlu0 %3732 }
0x1670   :  { %v3748_v25 = vsel %vm3592_vm14, %v3747_v22, %v3730_v23  ;;  %vm6961_vm14 = vmmov %vm6956_vm1  ;;  %v6196_v22 = vld [vmem:[#allocation5 + $0x490] sm:$0xff]  }
0x1671   :  { %v3749_v26 = vsel %vm1010_vm12, %v3748_v25, %v3733_v24  ;;  %vm6955_vm12 = vmmov %vm6948_vm2 }
0x1672   :  { %vm6964_vm2 = vmmov %vm6956_vm1 }
0x1673   :  { %v3736_v27 = vpop.permute.xlu1 %3735 }
0x1674   :  { %v3750_v28 = vsel %vm3595_vm15, %v3749_v26, %v3736_v27  ;;  %vm6963_vm15 = vmmov %vm6956_vm1 }
0x1675   :  { %v3754_v29 = vrot.slane %v3750_v28, %v6565_v37 }
0x1677   :  { %v3755_v31 = vmul.f32 %v3754_v29, %v6837_v34  ;;  %v3756_v32 = vmul.f32 %v3754_v29, %v6840_v35  ;;  %v3757_v33 = vmul.f32 %v3754_v29, %v6843_v36  ;;  %v3758_v39 = vmul.f32 %v3754_v29, %v6846_v38  ;;  %v6165_v34 = vld [vmem:[#allocation5 + $0x398] sm:$0xff]   ;;  %v6166_v35 = vld [vmem:[#allocation5 + $0x3a0] sm:$0xff]   ;;  %v6182_v36 = vld [vmem:[#allocation5 + $0x430] sm:$0xff]  }
0x1678   :  { %v6167_v38 = vld [vmem:[#allocation5 + $0x3a8] sm:$0xff]  }
0x1679   :  { %v3759_v41 = vmax.f32 %v3755_v31, 0.0  ;;  %v3760_v42 = vmax.f32 %v3756_v32, 0.0  ;;  %v3761_v43 = vmax.f32 %v3757_v33, 0.0  ;;  %v3762_v44 = vmax.f32 %v3758_v39, 0.0 }
0x167b   :  { %v3763_v46 = vpack.c.bf16 %v3760_v42, %v3759_v41  ;;  %v3764_v47 = vpack.c.bf16 %v3762_v44, %v3761_v43 }
0x167d   :  { %5709 = vmatprep.subr.bf16.mxu0 %v3763_v46  ;;  %v3886_v37 = vsel %vm6950_vm7, %v3764_v47, 0 }
0x167e   :  { %5710 = vmatpush3.bf16.msra.mxu0 %v3763_v46 }
0x167f   :  { %5958 = vmatprep.subr.msk.bf16.mxu0 %vm6949_vm0, %v3764_v47  ;;  %vm6965_vm0 = vmmov %vm6956_vm1 }
0x1680   :  { %vm6966_vm7 = vmmov %vm6965_vm0 }
0x1682   :  { %5712 = vmatpush3.bf16.msra.mxu0 %v3886_v37 }
0x1683   :  { %5737 = vmatprep.subr.bf16.mxu0 %v6180_v48 }
0x1685   :  { %5714 = vmatmul.mubr.msk.bf16.vlgmr.msra.gmra.mrb[52].mxu0 %vm6951_vm8, %v6165_v34  ;;  %vm6967_vm8 = vmmov %vm6965_vm0 }
0x1686   :  { %5717 = vmatprep.mubr.msk.bf16.mxu0 %vm6952_vm9, %v6166_v35  ;;  %5738 = vmatpush3.bf16.msra.mxu0 %v6180_v48  ;;  %vm6968_vm9 = vmmov %vm6965_vm0 }
0x1687   :  { %5739 = vmatprep.subr.bf16.mxu0 %v6182_v36 }
0x168a   :  { %5740 = vmatpush3.bf16.msra.mxu0 %v6182_v36 }
0x168b   :  { %5741 = vmatprep.subr.bf16.mxu0 %v6184_v57 }
0x168d   :  { %5718 = vmatmul.mubr.msk.bf16.gmra.mrb[56].mxu0 %vm6953_vm10, %v6167_v38 }
0x168e   :  { %5721 = vmatprep.mubr.msk.bf16.mxu0 %vm6954_vm11, %v6168_v49  ;;  %5742 = vmatpush3.bf16.msra.mxu0 %v6184_v57 }
0x168f   :  { %5743 = vmatprep.subr.bf16.mxu0 %v6186_v60 }
0x1692   :  { %5744 = vmatpush3.bf16.msra.mxu0 %v6186_v60 }
0x1693   :  { %5745 = vmatprep.subr.bf16.mxu0 %v6187_v61 }
0x1695   :  { %5722 = vmatmul.mubr.msk.bf16.gmra.mrb[60].mxu0 %vm6955_vm12, %v6169_v50 }
0x1696   :  { %5725 = vmatprep.mubr.msk.bf16.mxu0 %vm6956_vm1, %v6170_v51  ;;  %5746 = vmatpush3.bf16.msra.mxu0 %v6187_v61 }
0x1697   :  { %5747 = vmatprep.subr.bf16.mxu0 %v6189_v63 }
0x169a   :  { %5748 = vmatpush3.bf16.msra.mxu0 %v6189_v63 }
0x169b   :  { %5749 = vmatprep.subr.bf16.mxu0 %v6191_v0 }
0x169d   :  { %5726 = vmatmul.mubr.msk.bf16.gmra.mrb[64].mxu0 %vm6957_vm3, %v6171_v52 }
0x169e   :  { %5729 = vmatprep.mubr.msk.bf16.mxu0 %vm6958_vm4, %v6172_v53  ;;  %5750 = vmatpush3.bf16.msra.mxu0 %v6191_v0 }
0x16a5   :  { %5730 = vmatmul.mubr.msk.bf16.gmra.mrb[68].mxu0 %vm6959_vm6, %v6173_v54 }
0x16a6   :  { %5733 = vmatprep.mubr.msk.bf16.mxu0 %vm6960_vm13, %v6174_v55 }
0x16ad   :  { %5734 = vmatmul.mubr.msk.bf16.gmra.mrb[72].mxu0 %vm6961_vm14, %v6175_v56 }
0x1758   :  { %v5715_v1 = vpop.f32.mrb[52].mxu0 }
0x1759   :  { %v3922_v2 = vpop.f32.mrb[53].mxu0 }
0x175a   :  { %v5716_v3 = vpop.f32.mrb[54].mxu0 }
0x175b   :  { %v4018_v4 = vpack.c.bf16 %v5716_v3, %v5715_v1  ;;  %v3925_v5 = vpop.f32.mrb[55].mxu0 }
0x175c   :  { %v4017_v6 = vpack.c.bf16 %v3925_v5, %v3922_v2 }
0x175e   :  { %5773 = vmatprep.mubr.msk.bf16.mxu1 %vm643_vm5, %v4017_v6 }
0x175f   :  { %5774 = vmatmul.mubr.msk.bf16.vlgmr.msra.gmra.mrb[88].mxu1 %vm643_vm5, %v4018_v4 }
0x1760   :  { %v5719_v45 = vpop.f32.mrb[56].mxu0  ;;  %5782 = vmatpush3.bf16.msra.mxu1 %v6188_v62 }
0x1761   :  { %v3938_v7 = vpop.f32.mrb[57].mxu0  ;;  %5783 = vmatprep.subr.bf16.mxu1 %v6190_v59 }
0x1762   :  { %v5720_v8 = vpop.f32.mrb[58].mxu0 }
0x1763   :  { %v4020_v9 = vpack.c.bf16 %v5720_v8, %v5719_v45  ;;  %v3941_v10 = vpop.f32.mrb[59].mxu0 }
0x1764   :  { %v4019_v11 = vpack.c.bf16 %v3941_v10, %v3938_v7  ;;  %5784 = vmatpush3.bf16.msra.mxu1 %v6190_v59 }
0x1765   :  { %5785 = vmatprep.subr.bf16.mxu1 %v6192_v40 }
0x1766   :  { %5777 = vmatprep.mubr.msk.bf16.mxu1 %vm643_vm5, %v4019_v11 }
0x1767   :  { %5778 = vmatmul.mubr.msk.bf16.gmra.mrb[92].mxu1 %vm643_vm5, %v4020_v9 }
0x1768   :  { %v5723_v13 = vpop.f32.mrb[60].mxu0  ;;  %5786 = vmatpush3.bf16.msra.mxu1 %v6192_v40 }
0x1769   :  { %v3954_v14 = vpop.f32.mrb[61].mxu0  ;;  %5787 = vmatprep.subr.bf16.mxu1 %v6193_v12 }
0x176a   :  { %v5724_v16 = vpop.f32.mrb[62].mxu0 }
0x176b   :  { %v4022_v17 = vpack.c.bf16 %v5724_v16, %v5723_v13  ;;  %v3957_v30 = vpop.f32.mrb[63].mxu0 }
0x176c   :  { %v4021_v18 = vpack.c.bf16 %v3957_v30, %v3954_v14  ;;  %5788 = vmatpush3.bf16.msra.mxu1 %v6193_v12 }
0x176d   :  { %5789 = vmatprep.subr.bf16.mxu1 %v6194_v15 }
0x176e   :  { %5751 = vmatprep.mubr.msk.bf16.mxu0 %vm643_vm5, %v4021_v18 }
0x176f   :  { %5752 = vmatmul.mubr.msk.bf16.vlgmr.msra.gmra.mrb[76].mxu0 %vm643_vm5, %v4022_v17 }
0x1770   :  { %v5727_v20 = vpop.f32.mrb[64].mxu0  ;;  %5790 = vmatpush3.bf16.msra.mxu1 %v6194_v15 }
0x1771   :  { %v3970_v21 = vpop.f32.mrb[65].mxu0  ;;  %5791 = vmatprep.subr.bf16.mxu1 %v6195_v19 }
0x1772   :  { %v5728_v23 = vpop.f32.mrb[66].mxu0 }
0x1773   :  { %v4024_v24 = vpack.c.bf16 %v5728_v23, %v5727_v20  ;;  %v3973_v25 = vpop.f32.mrb[67].mxu0 }
0x1774   :  { %v4023_v26 = vpack.c.bf16 %v3973_v25, %v3970_v21  ;;  %5792 = vmatpush3.bf16.msra.mxu1 %v6195_v19 }
0x1775   :  { %5793 = vmatprep.subr.bf16.mxu1 %v6196_v22 }
0x1776   :  { %5755 = vmatprep.mubr.msk.bf16.mxu0 %vm643_vm5, %v4023_v26 }
0x1777   :  { %5756 = vmatmul.mubr.msk.bf16.gmra.mrb[80].mxu0 %vm643_vm5, %v4024_v24 }
0x1778   :  { %v5731_v27 = vpop.f32.mrb[68].mxu0  ;;  %5794 = vmatpush3.bf16.msra.mxu1 %v6196_v22 }
0x1779   :  { %v3986_v28 = vpop.f32.mrb[69].mxu0 }
0x177a   :  { %v5732_v29 = vpop.f32.mrb[70].mxu0 }
0x177b   :  { %v4026_v31 = vpack.c.bf16 %v5732_v29, %v5731_v27  ;;  %v3989_v32 = vpop.f32.mrb[71].mxu0 }
0x177c   :  { %v4025_v33 = vpack.c.bf16 %v3989_v32, %v3986_v28 }
0x177e   :  { %5795 = vmatprep.mubr.msk.bf16.mxu1 %vm643_vm5, %v4025_v33 }
0x177f   :  { %5796 = vmatmul.mubr.msk.bf16.vlgmr.msra.gmra.mrb[88].mxu1 %vm643_vm5, %v4026_v31 }
0x1780   :  { %v5735_v39 = vpop.f32.mrb[72].mxu0 }
0x1781   :  { %v4002_v41 = vpop.f32.mrb[73].mxu0 }
0x1782   :  { %v5736_v42 = vpop.f32.mrb[74].mxu0 }
0x1783   :  { %v4028_v43 = vpack.c.bf16 %v5736_v42, %v5735_v39  ;;  %v4005_v44 = vpop.f32.mrb[75].mxu0 }
0x1784   :  { %v4027_v46 = vpack.c.bf16 %v4005_v44, %v4002_v41 }
0x1786   :  { %5799 = vmatprep.mubr.msk.bf16.mxu1 %vm643_vm5, %v4027_v46 }
0x1787   :  { %5800 = vmatmul.mubr.msk.bf16.gmra.mrb[96].mxu1 %vm643_vm5, %v4028_v43  ;;  %vm6962_vm5 = vmmov %vm6956_vm1 }
0x183a   :  { %v5779_v47 = vpop.f32.mrb[92].mxu1 }
0x183b   :  { %v4279_v48 = vpop.f32.mrb[93].mxu1 }
0x183c   :  { %v5780_v37 = vpop.f32.mrb[94].mxu1 }
0x183d   :  { %v4282_v34 = vpop.f32.mrb[95].mxu1 }
0x1842   :  { %v5753_v35 = vpop.f32.mrb[76].mxu0 }
0x1843   :  { %v4145_v36 = vpop.f32.mrb[77].mxu0 }
0x1844   :  { %v5754_v38 = vpop.f32.mrb[78].mxu0 }
0x1845   :  { %v4148_v49 = vpop.f32.mrb[79].mxu0 }
0x184a   :  { %v5757_v50 = vpop.f32.mrb[80].mxu0 }
0x184b   :  { %v4288_v51 = vadd.f32 %v5779_v47, %v5757_v50  ;;  %v4161_v52 = vpop.f32.mrb[81].mxu0 }
0x184c   :  { %v4280_v53 = vadd.f32 %v4279_v48, %v4161_v52  ;;  %v5758_v54 = vpop.f32.mrb[82].mxu0 }
0x184d   :  { %v4164_v55 = vpop.f32.mrb[83].mxu0 }
0x184e   :  { %v4283_v56 = vadd.f32 %v4282_v34, %v4164_v55 }
0x1852   :  { %v5797_v57 = vpop.f32.mrb[88].mxu1 }
0x1853   :  { %v5929_v60 = vadd.f32 %v5797_v57, %v5753_v35  ;;  %v4395_v61 = vpop.f32.mrb[89].mxu1 }
0x1854   :  { %v5930_v62 = vadd.f32 %v4395_v61, %v4145_v36  ;;  %v5798_v63 = vpop.f32.mrb[90].mxu1 }
0x1855   :  { %v4439_v0 = vadd.f32 %v5929_v60, %v4793_v58  ;;  %v5931_v1 = vadd.f32 %v5798_v63, %v5754_v38  ;;  %v4398_v2 = vpop.f32.mrb[91].mxu1 }
0x1856   :  { %v4437_v3 = vadd.f32 %v5930_v62, %v4793_v58  ;;  %v5932_v4 = vadd.f32 %v4398_v2, %v4148_v49 }
0x1857   :  { %v4796_v5 = vmul.f32 -1.442695, %v4439_v0  ;;  %v4440_v6 = vadd.f32 %v5931_v1, %v4793_v58 }
0x1858   :  { %v4794_v59 = vmul.f32 -1.442695, %v4437_v3  ;;  %v4438_v45 = vadd.f32 %v5932_v4, %v4793_v58 }
0x1859   :  { %6205 = vpow2.f32 %v4796_v5  ;;  %v4797_v7 = vmul.f32 -1.442695, %v4440_v6 }
0x185a   :  { %6207 = vpow2.f32 %v4794_v59  ;;  %v4795_v40 = vmul.f32 -1.442695, %v4438_v45  ;;  %v5801_v8 = vpop.f32.mrb[96].mxu1 }
0x185b   :  { %6209 = vpow2.f32 %v4797_v7  ;;  %v4431_v9 = vadd.f32 %v5801_v8, %v4288_v51  ;;  %v4411_v10 = vpop.f32.mrb[97].mxu1 }
0x185c   :  { %6211 = vpow2.f32 %v4795_v40  ;;  %v4429_v11 = vadd.f32 %v4411_v10, %v4280_v53  ;;  %v5802_v12 = vpop.f32.mrb[98].mxu1 }
0x185d   :  { %v4443_v13 = vadd.f32 %v4793_v58, %v4431_v9  ;;  %v4414_v14 = vpop.f32.mrb[99].mxu1 }
0x185e   :  { %v4441_v15 = vadd.f32 %v4793_v58, %v4429_v11  ;;  %v4430_v16 = vadd.f32 %v4414_v14, %v4283_v56 }
0x185f   :  { %v4800_v17 = vmul.f32 -1.442695, %v4443_v13 }
0x1860   :  { %v4798_v30 = vmul.f32 -1.442695, %v4441_v15  ;;  %v4442_v18 = vadd.f32 %v4793_v58, %v4430_v16 }
0x1861   :  { %6213 = vpow2.f32 %v4800_v17 }
0x1862   :  { %6215 = vpow2.f32 %v4798_v30  ;;  %v4799_v19 = vmul.f32 -1.442695, %v4442_v18 }
0x1863   :  { %v6206_v20 = vpop.eup %6205 }
0x1864   :  { %v6208_v21 = vpop.eup %6207  ;;  %v4467_v22 = vadd.f32 1.0, %v6206_v20  ;;  %6217 = vpow2.f32 %v4799_v19 }
0x1865   :  { %v6210_v23 = vpop.eup %6209  ;;  %v4465_v24 = vadd.f32 1.0, %v6208_v21 }
0x1866   :  { %v6212_v25 = vpop.eup %6211  ;;  %6219 = vrcp.f32 %v4467_v22  ;;  %v4468_v26 = vadd.f32 1.0, %v6210_v23 }
0x1867   :  { %6221 = vrcp.f32 %v4465_v24  ;;  %v4466_v27 = vadd.f32 1.0, %v6212_v25 }
0x1868   :  { %6223 = vrcp.f32 %v4468_v26 }
0x1869   :  { %6225 = vrcp.f32 %v4466_v27 }
0x186b   :  { %v6214_v28 = vpop.eup %6213 }
0x186c   :  { %v6216_v29 = vpop.eup %6215  ;;  %v4471_v31 = vadd.f32 1.0, %v6214_v28 }
0x186d   :  { %v4469_v32 = vadd.f32 1.0, %v6216_v29 }
0x186e   :  { %v6218_v33 = vpop.eup %6217  ;;  %6227 = vrcp.f32 %v4471_v31 }
0x186f   :  { %6229 = vrcp.f32 %v4469_v32  ;;  %v4470_v39 = vadd.f32 1.0, %v6218_v33 }
0x1870   :  { %v6220_v41 = vpop.eup %6219 }
0x1871   :  { %v6222_v42 = vpop.eup %6221  ;;  %4488 = vst.msk [vmem:[#allocation10 + $0x10] sm:$0xff] %vm6962_vm5, %v6220_v41  ;;  %6231 = vrcp.f32 %v4470_v39 }
0x1872   :  { %v6224_v43 = vpop.eup %6223  ;;  %4486 = vst.msk [vmem:[#allocation10] sm:$0xff] %vm6963_vm15, %v6222_v42 }
0x1873   :  { %v6226_v44 = vpop.eup %6225  ;;  %4489 = vst.msk [vmem:[#allocation10 + $0x18] sm:$0xff] %vm6964_vm2, %v6224_v43 }
0x1874   :  { %4487 = vst.msk [vmem:[#allocation10 + $0x8] sm:$0xff] %vm6965_vm0, %v6226_v44 }
0x1878   :  { %v6228_v46 = vpop.eup %6227 }
0x1879   :  { %v6230_v47 = vpop.eup %6229  ;;  %4492 = vst.msk [vmem:[#allocation10 + $0x30] sm:$0xff] %vm6966_vm7, %v6228_v46 }
0x187a   :  { %4490 = vst.msk [vmem:[#allocation10 + $0x20] sm:$0xff] %vm6967_vm8, %v6230_v47 }
0x187b   :  { %v6232_v48 = vpop.eup %6231 }
0x187c   :  { %4491 = vst.msk [vmem:[#allocation10 + $0x28] sm:$0xff] %vm6968_vm9, %v6232_v48 }
0x187d   :  { %6332 = shalt.err (!%p6329_p8)
}
0x187e   :  { %s6333_s13 = scalar_lea.hbm %s6945_s5, 896 }
0x187f   :  { %p6334_p9 = scmp.ne.s32.totalorder %s6945_s5, %s6333_s13  ;;  %p6337_p10 = scmp.lt.u32.totalorder %s6333_s13, %s6945_s5 }
0x1881   :  { %p6339_p11 = pnand %p6337_p10, %p6334_p9 }
0x1883   :  { %6342 = shalt.err (!%p6339_p11)
}
0x1884   :  { %4504 = dma.vmem_to_hbm [thread:$0]  %s4499_s9, 896, %s6945_s5, [#allocation4], %s6355_s2, %s6355_s2, %s6356_s17  }
0x1885   :  { %6349 = dma.done.wait [#allocation4], 896  }
0x1886   :  { %6350 = vsyncadd [#allocation4], 4294966400 }
0x1887   :  { %4508 = vsyncpa [#allocation3], 1 }
0x1888   :  { %4509 = vsyncpa [#allocation6], 1 }
0x1889   :  { %4510 = vsyncpa [#allocation9], 1 }
0x188a   :  { %4511 = vsyncpa [#allocation4], 1 }

</bundles_post_ra>
